<compile_context>
chip_gen: v5e
topology: v5e:2x2
jax: 0.10.0
libtpu: 0.0.40
codegen_flags: <defaults>
</compile_context>

<pallas_src>
import functools

import jax
import jax.numpy as jnp
from jax.experimental import pallas as pl
from jax.experimental.pallas import tpu as pltpu


# ----------------------------------------------------------------------------
# Fused kernel: one grid step == B samples' full forward pass.
# ----------------------------------------------------------------------------
def _fused_forward_kernel(x_ref, w1_ref, b1_ref, w2_ref, b2_ref, wl_ref, bl_ref,
                          out_ref,
                          line1_ref, line2_ref, stack1_ref, stack2_ref, h2f_ref,
                          *, H, W, B, O):
    P = H * W
    PAD = W + 1                       # halo covers flat shifts in [-(W+1), W+1]
    OP = out_ref.shape[-1]            # 128 (lane-dense, zero-padded classes)
    Cin = x_ref.shape[2]
    C1 = w1_ref.shape[0]
    C2 = w2_ref.shape[0]
    OFFSETS = [(di, dj) for di in (-1, 0, 1) for dj in (-1, 0, 1)]

    # Column-validity masks, hoisted out of the tap/sample loops (JAX does not
    # CSE broadcast_in_dim).  dj == 0 taps never wrap, so they skip masking.
    col = jax.lax.broadcasted_iota(jnp.int32, (1, P), 1) % W
    ok_left, ok_right = col >= 1, col <= W - 2
    masks1 = (jnp.broadcast_to(ok_left, (Cin, P)),
              jnp.broadcast_to(ok_right, (Cin, P)))
    masks2 = (jnp.broadcast_to(ok_left, (C1, P)),
              jnp.broadcast_to(ok_right, (C1, P)))

    # Zero only the halo columns, once per grid step (the interior is fully
    # overwritten for every sample).  NOT under pl.when(program_id==0): on
    # megacore parts a "parallel" grid is split across cores and each core has
    # its own uninitialized scratch instance.
    for line_ref in (line1_ref, line2_ref):
        c = line_ref.shape[0]
        line_ref[:, :PAD] = jnp.zeros((c, PAD), jnp.float32)
        line_ref[:, PAD + P:] = jnp.zeros((c, PAD), jnp.float32)

    def conv3x3(line_ref, stack_ref, act_cf, wf_ref, bias_ref, masks):
        """3x3 'same' conv on a channels-first (C_in, H*W) activation.

        The activation is written into the zero-halo line buffer; the nine
        kernel taps are static slices of it, masked for row-wrap, and stacked
        into a (9*C_in, P) im2col operand so the whole conv is a single MXU
        matmul with K = 9*C_in:
            pre[co, p] = b[co] + sum_{k, ci} wf[co, k*C_in+ci] * stack[k*C_in+ci, p]
        """
        okl, okr = masks
        c_in = act_cf.shape[0]
        line_ref[:, PAD:PAD + P] = act_cf
        for k, (di, dj) in enumerate(OFFSETS):
            s = di * W + dj
            tap = line_ref[:, PAD + s:PAD + s + P]              # (c_in, P)
            if dj == -1:
                tap = jnp.where(okl, tap, 0.0)
            elif dj == 1:
                tap = jnp.where(okr, tap, 0.0)
            stack_ref[k * c_in:(k + 1) * c_in, :] = tap
        pre = jnp.dot(wf_ref[...], stack_ref[...],
                      preferred_element_type=jnp.float32)       # (c_out, P)
        return pre + bias_ref[...]

    # ---- per-sample convs + hook stats (fully unrolled over the block) ------
    stat_rows = []
    for b in range(B):
        # conv1 -> hook stats on its pre-activation -> ReLU
        pre1 = conv3x3(line1_ref, stack1_ref, x_ref[0, b], w1_ref, b1_ref, masks1)
        mx0 = jnp.max(pre1, keepdims=True)                      # (1, 1)
        mn0 = jnp.min(pre1, keepdims=True)
        h1 = jnp.maximum(pre1, 0.0)

        # conv2 -> hook stats on its pre-activation -> ReLU
        pre2 = conv3x3(line2_ref, stack2_ref, h1, w2_ref, b2_ref, masks2)
        mx1 = jnp.max(pre2, keepdims=True)
        mn1 = jnp.min(pre2, keepdims=True)
        h2 = jnp.maximum(pre2, 0.0)          # (C2, P): already NCHW flatten order

        # Scatter h2 into the (B, C2*P) classifier operand.  Lane offsets c*P
        # are multiples of 128, so these are aligned lane-dense stores.
        for c in range(C2):
            h2f_ref[b:b + 1, c * P:(c + 1) * P] = h2[c:c + 1, :]

        stat_rows.append(jnp.concatenate([mx0, mn0, mx1, mn1], axis=1))  # (1, 4)

    # ---- classifier head: ONE matmul for the whole block (M=B, K=C2*P) ------
    logits = jnp.dot(h2f_ref[...], wl_ref[...],
                     preferred_element_type=jnp.float32) + bl_ref[...]   # (B, OP)

    # Hook stats ride in the zero-padded lanes [O, O+4) of the logits slab so
    # the kernel makes one unmasked, lane-dense (B, 128) store.
    stats = jnp.concatenate(stat_rows, axis=0)                           # (B, 4)
    slab = jnp.concatenate(
        [jnp.zeros((B, O), jnp.float32), stats,
         jnp.zeros((B, OP - O - 4), jnp.float32)], axis=1)               # (B, OP)
    out_ref[0] = logits + slab


def _pick_block(n):
    """Samples per grid step: amortize step overhead / grow classifier M, but
    keep >= 2 grid steps so both TensorCores get work on megacore parts."""
    b = min(8, max(n, 1))
    while b > 1 and -(-n // b) < 2:
        b //= 2
    return max(b, 1)


# ----------------------------------------------------------------------------
# Wrapper (trace-time weight re-blocking only; no runtime activation transposes)
# ----------------------------------------------------------------------------
def feature_extractor_forward(x_nchw, params, *, block_n=None):
    """Equivalent of FeatureExtractor.forward: returns (logits, features)."""
    x_nchw = x_nchw.astype(jnp.float32)
    N, Cin, H, W = x_nchw.shape
    P = H * W
    PAD = W + 1
    C1 = params["w1"].shape[0]
    C2 = params["w2"].shape[0]
    O = params["wl"].shape[0]
    OP = 128                           # lane-dense classifier width
    assert O + 4 <= OP, "classifier width + 4 stat lanes must fit in 128 lanes"

    B = _pick_block(N) if block_n is None else block_n
    G = -(-N // B)
    N_pad = G * B

    # NCHW -> channels-first flat pixels, grouped into per-step blocks of B.
    x_cf = x_nchw.reshape(N, Cin, P)
    if N_pad != N:
        x_cf = jnp.concatenate(
            [x_cf, jnp.zeros((N_pad - N, Cin, P), jnp.float32)], axis=0)
    x_g = x_cf.reshape(G, B, Cin, P)

    # Trace-time weight re-blocking.
    # conv weights (Co, Ci, 3, 3) -> (Co, 9*Ci) matching the im2col stack order
    # stack[k*Ci + ci, p] with k = (di+1)*3 + (dj+1).
    w1f = jnp.transpose(params["w1"], (0, 2, 3, 1)).reshape(C1, 9 * Cin).astype(jnp.float32)
    w2f = jnp.transpose(params["w2"], (0, 2, 3, 1)).reshape(C2, 9 * C1).astype(jnp.float32)
    b1c = params["b1"].reshape(C1, 1).astype(jnp.float32)
    b2c = params["b2"].reshape(C2, 1).astype(jnp.float32)
    # PyTorch flattens NCHW as (c, h, w) == (c, p): the kernel's h2f rows use the
    # same order, so the classifier weight is just wl.T, class-padded to 128
    # lanes with zeros (the stat lanes stay exactly 0 before the stats are added).
    wlf = jnp.pad(params["wl"].astype(jnp.float32).T, ((0, 0), (0, OP - O)))
    blp = jnp.pad(params["bl"].astype(jnp.float32), (0, OP - O)).reshape(1, OP)

    kernel = functools.partial(_fused_forward_kernel, H=H, W=W, B=B, O=O)

    flops = N_pad * (2 * 9 * Cin * C1 * P + 2 * 9 * C1 * C2 * P + 2 * C2 * P * OP)
    bytes_accessed = 4 * (N_pad * Cin * P + N_pad * OP
                          + C1 * 9 * Cin + C2 * 9 * C1 + C1 + C2
                          + C2 * P * OP + OP)

    out = pl.pallas_call(
        kernel,
        out_shape=jax.ShapeDtypeStruct((G, B, OP), jnp.float32),
        grid=(G,),
        in_specs=[
            pl.BlockSpec((1, B, Cin, P), lambda g: (g, 0, 0, 0)),
            pl.BlockSpec((C1, 9 * Cin), lambda g: (0, 0)),
            pl.BlockSpec((C1, 1), lambda g: (0, 0)),
            pl.BlockSpec((C2, 9 * C1), lambda g: (0, 0)),
            pl.BlockSpec((C2, 1), lambda g: (0, 0)),
            pl.BlockSpec((C2 * P, OP), lambda g: (0, 0)),
            pl.BlockSpec((1, OP), lambda g: (0, 0)),
        ],
        out_specs=pl.BlockSpec((1, B, OP), lambda g: (g, 0, 0)),
        scratch_shapes=[
            pltpu.VMEM((Cin, P + 2 * PAD), jnp.float32),   # conv1 line buffer
            pltpu.VMEM((C1, P + 2 * PAD), jnp.float32),    # conv2 line buffer
            pltpu.VMEM((9 * Cin, P), jnp.float32),         # conv1 im2col stack
            pltpu.VMEM((9 * C1, P), jnp.float32),          # conv2 im2col stack
            pltpu.VMEM((B, C2 * P), jnp.float32),          # flattened h2 block
        ],
        compiler_params=pltpu.CompilerParams(
            dimension_semantics=("parallel",)),
        cost_estimate=pl.CostEstimate(
            flops=flops, transcendentals=0, bytes_accessed=bytes_accessed),
    )(x_g, w1f, b1c, w2f, b2c, wlf, blp)

    out = out.reshape(N_pad, OP)[:N]
    logits = out[:, :O]
    features = {
        "Max_relu_0": out[:, O + 0],
        "Min_relu_0": out[:, O + 1],
        "Max_relu_1": out[:, O + 2],
        "Min_relu_1": out[:, O + 3],
    }
    return logits, features


# ----------------------------------------------------------------------------
# Pure-XLA reference (used only for the correctness assert in __main__).
# ----------------------------------------------------------------------------
def _reference_forward(x_nchw, params):
    dn = ("NCHW", "OIHW", "NCHW")
    pre1 = jax.lax.conv_general_dilated(
        x_nchw, params["w1"], (1, 1), "SAME", dimension_numbers=dn
    ) + params["b1"].reshape(1, -1, 1, 1)
    h1 = jnp.maximum(pre1, 0.0)
    pre2 = jax.lax.conv_general_dilated(
        h1, params["w2"], (1, 1), "SAME", dimension_numbers=dn
    ) + params["b2"].reshape(1, -1, 1, 1)
    h2 = jnp.maximum(pre2, 0.0)
    n = x_nchw.shape[0]
    logits = h2.reshape(n, -1) @ params["wl"].T + params["bl"]
    feats = {
        "Max_relu_0": jnp.max(pre1.reshape(n, -1), axis=1),
        "Min_relu_0": jnp.min(pre1.reshape(n, -1), axis=1),
        "Max_relu_1": jnp.max(pre2.reshape(n, -1), axis=1),
        "Min_relu_1": jnp.min(pre2.reshape(n, -1), axis=1),
    }
    return logits, feats


# ----------------------------------------------------------------------------
# Driver
# ----------------------------------------------------------------------------
if __name__ == "__main__":
    key = jax.random.PRNGKey(0)
    kx, k1, k2, k3, k4, k5, k6 = jax.random.split(key, 7)

    N, Cin, H, W = 8, 4, 16, 16          # N=8 -> B=4 samples/step, grid=(2,)
    C1, C2, num_classes = 8, 8, 10

    x = jax.random.normal(kx, (N, Cin, H, W), dtype=jnp.float32)   # NCHW input

    params = {
        "w1": 0.1 * jax.random.normal(k1, (C1, Cin, 3, 3), dtype=jnp.float32),
        "b1": 0.1 * jax.random.normal(k2, (C1,), dtype=jnp.float32),
        "w2": 0.1 * jax.random.normal(k3, (C2, C1, 3, 3), dtype=jnp.float32),
        "b2": 0.1 * jax.random.normal(k4, (C2,), dtype=jnp.float32),
        "wl": 0.05 * jax.random.normal(k5, (num_classes, C2 * H * W), dtype=jnp.float32),
        "bl": 0.05 * jax.random.normal(k6, (num_classes,), dtype=jnp.float32),
    }

    logits, feats = jax.jit(feature_extractor_forward)(x, params)
    jax.block_until_ready(logits)
    for v in feats.values():
        jax.block_until_ready(v)

    # Contract of FeatureExtractor.forward: (output, features dict).
    assert logits.shape == (N, num_classes)
    assert set(feats) == {"Max_relu_0", "Min_relu_0", "Max_relu_1", "Min_relu_1"}
    for v in feats.values():
        assert v.shape == (N,)

    # Numerical check against a pure-JAX reference of the same forward.
    ref_logits, ref_feats = _reference_forward(x, params)
    assert jnp.allclose(logits, ref_logits, rtol=1e-3, atol=1e-3)
    for k in ref_feats:
        assert jnp.allclose(feats[k], ref_feats[k], rtol=1e-3, atol=1e-3)

    # TODO(synk): the PyTorch module's wrapped model / feat_fns are injected at
    # runtime; this script fixes a concrete small CNN with max/min hook features.
    print("KERNEL_OK")
</pallas_src>

<mosaic_0001>
module attributes {stable_mosaic.version = 11 : i64} {
  func.func @_fused_forward_kernel(%arg0: i32, %arg1: memref<1x4x4x256xf32, #tpu.memory_space<vmem>>, %arg2: memref<8x36xf32, #tpu.memory_space<vmem>>, %arg3: memref<8x1xf32, #tpu.memory_space<vmem>>, %arg4: memref<8x72xf32, #tpu.memory_space<vmem>>, %arg5: memref<8x1xf32, #tpu.memory_space<vmem>>, %arg6: memref<2048x128xf32, #tpu.memory_space<vmem>>, %arg7: memref<1x128xf32, #tpu.memory_space<vmem>>, %arg8: memref<1x4x128xf32, #tpu.memory_space<vmem>>, %arg9: memref<4x290xf32, #tpu.memory_space<vmem>>, %arg10: memref<8x290xf32, #tpu.memory_space<vmem>>, %arg11: memref<36x256xf32, #tpu.memory_space<vmem>>, %arg12: memref<72x256xf32, #tpu.memory_space<vmem>>, %arg13: memref<4x2048xf32, #tpu.memory_space<vmem>>) attributes {dimension_semantics = [#tpu.dimension_semantics<parallel>], iteration_bounds = array<i64: 2>, scalar_prefetch = 0 : i64, scratch_operands = 5 : i64, tpu.core_type = #tpu.core_type<tc>, window_params = [{transform_indices = @transform_0, window_bounds = array<i64: 1, 4, 4, 256>}, {pipeline_mode = #tpu.pipeline_mode<synchronous>, transform_indices = @transform_1, window_bounds = array<i64: 8, 36>}, {pipeline_mode = #tpu.pipeline_mode<synchronous>, transform_indices = @transform_2, window_bounds = array<i64: 8, 1>}, {pipeline_mode = #tpu.pipeline_mode<synchronous>, transform_indices = @transform_3, window_bounds = array<i64: 8, 72>}, {pipeline_mode = #tpu.pipeline_mode<synchronous>, transform_indices = @transform_4, window_bounds = array<i64: 8, 1>}, {pipeline_mode = #tpu.pipeline_mode<synchronous>, transform_indices = @transform_5, window_bounds = array<i64: 2048, 128>}, {pipeline_mode = #tpu.pipeline_mode<synchronous>, transform_indices = @transform_6, window_bounds = array<i64: 1, 128>}, {transform_indices = @transform_7, window_bounds = array<i64: 1, 4, 128>}]} {
    %0 = tpu.iota {dimensions = array<i32: 1>} : vector<1x256xi32>
    %c16_i32 = arith.constant 16 : i32
    %c0_i32 = arith.constant 0 : i32
    %1 = arith.cmpi eq, %c16_i32, %c0_i32 : i32
    %c1_i32 = arith.constant 1 : i32
    %2 = arith.select %1, %c1_i32, %c16_i32 : i32
    %3 = vector.broadcast %2 : i32 to vector<1x256xi32>
    %4 = arith.remsi %0, %3 : vector<1x256xi32>
    %c0_i32_0 = arith.constant 0 : i32
    %5 = vector.broadcast %c0_i32_0 : i32 to vector<1x256xi32>
    %6 = arith.cmpi ne, %4, %5 : vector<1x256xi32>
    %c0_i32_1 = arith.constant 0 : i32
    %7 = vector.broadcast %c0_i32_1 : i32 to vector<1x256xi32>
    %8 = arith.cmpi slt, %4, %7 : vector<1x256xi32>
    %c0_i32_2 = arith.constant 0 : i32
    %9 = arith.cmpi slt, %2, %c0_i32_2 : i32
    %10 = vector.broadcast %9 : i1 to vector<1x256xi1>
    %11 = vector.broadcast %10 : vector<1x256xi1> to vector<1x256xi1>
    %12 = arith.xori %8, %11 : vector<1x256xi1>
    %13 = arith.andi %12, %6 : vector<1x256xi1>
    %14 = vector.broadcast %2 : i32 to vector<1x256xi32>
    %15 = arith.addi %4, %14 : vector<1x256xi32>
    %16 = arith.select %13, %15, %4 : vector<1x256xi1>, vector<1x256xi32>
    %c1_i32_3 = arith.constant 1 : i32
    %17 = vector.broadcast %c1_i32_3 : i32 to vector<1x256xi32>
    %18 = arith.cmpi sge, %16, %17 : vector<1x256xi32>
    %c14_i32 = arith.constant 14 : i32
    %19 = vector.broadcast %c14_i32 : i32 to vector<1x256xi32>
    %20 = arith.cmpi sle, %16, %19 : vector<1x256xi32>
    %21 = vector.shape_cast %18 : vector<1x256xi1> to vector<1x256xi1>
    %22 = vector.broadcast %21 : vector<1x256xi1> to vector<4x256xi1>
    %23 = vector.shape_cast %20 : vector<1x256xi1> to vector<1x256xi1>
    %24 = vector.broadcast %23 : vector<1x256xi1> to vector<4x256xi1>
    %25 = vector.shape_cast %18 : vector<1x256xi1> to vector<1x256xi1>
    %26 = vector.broadcast %25 : vector<1x256xi1> to vector<8x256xi1>
    %27 = vector.shape_cast %20 : vector<1x256xi1> to vector<1x256xi1>
    %28 = vector.broadcast %27 : vector<1x256xi1> to vector<8x256xi1>
    %cst = arith.constant 0.000000e+00 : f32
    %29 = vector.broadcast %cst : f32 to vector<4x17xf32>
    %c0 = arith.constant 0 : index
    %c0_4 = arith.constant 0 : index
    %30 = vector.load %arg9[%c0, %c0_4] : memref<4x290xf32, #tpu.memory_space<vmem>>, vector<4x17xf32>
    tpu.vector_store %arg9[%c0, %c0_4], %29 {strides = array<i32>} : memref<4x290xf32, #tpu.memory_space<vmem>>, vector<4x17xf32>,
    %cst_5 = arith.constant 0.000000e+00 : f32
    %31 = vector.broadcast %cst_5 : f32 to vector<4x17xf32>
    %c0_6 = arith.constant 0 : index
    %c273 = arith.constant 273 : index
    %32 = vector.load %arg9[%c0_6, %c273] : memref<4x290xf32, #tpu.memory_space<vmem>>, vector<4x17xf32>
    tpu.vector_store %arg9[%c0_6, %c273], %31 {strides = array<i32>} : memref<4x290xf32, #tpu.memory_space<vmem>>, vector<4x17xf32>,
    %cst_7 = arith.constant 0.000000e+00 : f32
    %33 = vector.broadcast %cst_7 : f32 to vector<8x17xf32>
    %c0_8 = arith.constant 0 : index
    %c0_9 = arith.constant 0 : index
    %34 = vector.load %arg10[%c0_8, %c0_9] : memref<8x290xf32, #tpu.memory_space<vmem>>, vector<8x17xf32>
    tpu.vector_store %arg10[%c0_8, %c0_9], %33 {strides = array<i32>} : memref<8x290xf32, #tpu.memory_space<vmem>>, vector<8x17xf32>,
    %cst_10 = arith.constant 0.000000e+00 : f32
    %35 = vector.broadcast %cst_10 : f32 to vector<8x17xf32>
    %c0_11 = arith.constant 0 : index
    %c273_12 = arith.constant 273 : index
    %36 = vector.load %arg10[%c0_11, %c273_12] : memref<8x290xf32, #tpu.memory_space<vmem>>, vector<8x17xf32>
    tpu.vector_store %arg10[%c0_11, %c273_12], %35 {strides = array<i32>} : memref<8x290xf32, #tpu.memory_space<vmem>>, vector<8x17xf32>,
    %c0_13 = arith.constant 0 : index
    %c0_14 = arith.constant 0 : index
    %c0_15 = arith.constant 0 : index
    %c0_16 = arith.constant 0 : index
    %37 = vector.load %arg1[%c0_13, %c0_14, %c0_15, %c0_16] : memref<1x4x4x256xf32, #tpu.memory_space<vmem>>, vector<1x1x4x256xf32>
    %38 = vector.shape_cast %37 : vector<1x1x4x256xf32> to vector<4x256xf32>
    %c0_17 = arith.constant 0 : index
    %c17 = arith.constant 17 : index
    %39 = vector.load %arg9[%c0_17, %c17] : memref<4x290xf32, #tpu.memory_space<vmem>>, vector<4x256xf32>
    tpu.vector_store %arg9[%c0_17, %c17], %38 {strides = array<i32>} : memref<4x290xf32, #tpu.memory_space<vmem>>, vector<4x256xf32>,
    %c0_18 = arith.constant 0 : index
    %c0_19 = arith.constant 0 : index
    %40 = vector.load %arg9[%c0_18, %c0_19] : memref<4x290xf32, #tpu.memory_space<vmem>>, vector<4x256xf32>
    %cst_20 = arith.constant 0.000000e+00 : f32
    %41 = vector.broadcast %cst_20 : f32 to vector<4x256xf32>
    %42 = arith.select %22, %40, %41 : vector<4x256xi1>, vector<4x256xf32>
    %c0_21 = arith.constant 0 : index
    %c0_22 = arith.constant 0 : index
    %43 = vector.load %arg11[%c0_21, %c0_22] : memref<36x256xf32, #tpu.memory_space<vmem>>, vector<4x256xf32>
    tpu.vector_store %arg11[%c0_21, %c0_22], %42 {strides = array<i32>} : memref<36x256xf32, #tpu.memory_space<vmem>>, vector<4x256xf32>,
    %c0_23 = arith.constant 0 : index
    %c1 = arith.constant 1 : index
    %44 = vector.load %arg9[%c0_23, %c1] : memref<4x290xf32, #tpu.memory_space<vmem>>, vector<4x256xf32>
    %c4 = arith.constant 4 : index
    %c0_24 = arith.constant 0 : index
    %45 = vector.load %arg11[%c4, %c0_24] : memref<36x256xf32, #tpu.memory_space<vmem>>, vector<4x256xf32>
    tpu.vector_store %arg11[%c4, %c0_24], %44 {strides = array<i32>} : memref<36x256xf32, #tpu.memory_space<vmem>>, vector<4x256xf32>,
    %c0_25 = arith.constant 0 : index
    %c2 = arith.constant 2 : index
    %46 = vector.load %arg9[%c0_25, %c2] : memref<4x290xf32, #tpu.memory_space<vmem>>, vector<4x256xf32>
    %cst_26 = arith.constant 0.000000e+00 : f32
    %47 = vector.broadcast %cst_26 : f32 to vector<4x256xf32>
    %48 = arith.select %24, %46, %47 : vector<4x256xi1>, vector<4x256xf32>
    %c8 = arith.constant 8 : index
    %c0_27 = arith.constant 0 : index
    %49 = vector.load %arg11[%c8, %c0_27] : memref<36x256xf32, #tpu.memory_space<vmem>>, vector<4x256xf32>
    tpu.vector_store %arg11[%c8, %c0_27], %48 {strides = array<i32>} : memref<36x256xf32, #tpu.memory_space<vmem>>, vector<4x256xf32>,
    %c0_28 = arith.constant 0 : index
    %c16 = arith.constant 16 : index
    %50 = vector.load %arg9[%c0_28, %c16] : memref<4x290xf32, #tpu.memory_space<vmem>>, vector<4x256xf32>
    %cst_29 = arith.constant 0.000000e+00 : f32
    %51 = vector.broadcast %cst_29 : f32 to vector<4x256xf32>
    %52 = arith.select %22, %50, %51 : vector<4x256xi1>, vector<4x256xf32>
    %c12 = arith.constant 12 : index
    %c0_30 = arith.constant 0 : index
    %53 = vector.load %arg11[%c12, %c0_30] : memref<36x256xf32, #tpu.memory_space<vmem>>, vector<4x256xf32>
    tpu.vector_store %arg11[%c12, %c0_30], %52 {strides = array<i32>} : memref<36x256xf32, #tpu.memory_space<vmem>>, vector<4x256xf32>,
    %c0_31 = arith.constant 0 : index
    %c17_32 = arith.constant 17 : index
    %54 = vector.load %arg9[%c0_31, %c17_32] : memref<4x290xf32, #tpu.memory_space<vmem>>, vector<4x256xf32>
    %c16_33 = arith.constant 16 : index
    %c0_34 = arith.constant 0 : index
    %55 = vector.load %arg11[%c16_33, %c0_34] : memref<36x256xf32, #tpu.memory_space<vmem>>, vector<4x256xf32>
    tpu.vector_store %arg11[%c16_33, %c0_34], %54 {strides = array<i32>} : memref<36x256xf32, #tpu.memory_space<vmem>>, vector<4x256xf32>,
    %c0_35 = arith.constant 0 : index
    %c18 = arith.constant 18 : index
    %56 = vector.load %arg9[%c0_35, %c18] : memref<4x290xf32, #tpu.memory_space<vmem>>, vector<4x256xf32>
    %cst_36 = arith.constant 0.000000e+00 : f32
    %57 = vector.broadcast %cst_36 : f32 to vector<4x256xf32>
    %58 = arith.select %24, %56, %57 : vector<4x256xi1>, vector<4x256xf32>
    %c20 = arith.constant 20 : index
    %c0_37 = arith.constant 0 : index
    %59 = vector.load %arg11[%c20, %c0_37] : memref<36x256xf32, #tpu.memory_space<vmem>>, vector<4x256xf32>
    tpu.vector_store %arg11[%c20, %c0_37], %58 {strides = array<i32>} : memref<36x256xf32, #tpu.memory_space<vmem>>, vector<4x256xf32>,
    %c0_38 = arith.constant 0 : index
    %c32 = arith.constant 32 : index
    %60 = vector.load %arg9[%c0_38, %c32] : memref<4x290xf32, #tpu.memory_space<vmem>>, vector<4x256xf32>
    %cst_39 = arith.constant 0.000000e+00 : f32
    %61 = vector.broadcast %cst_39 : f32 to vector<4x256xf32>
    %62 = arith.select %22, %60, %61 : vector<4x256xi1>, vector<4x256xf32>
    %c24 = arith.constant 24 : index
    %c0_40 = arith.constant 0 : index
    %63 = vector.load %arg11[%c24, %c0_40] : memref<36x256xf32, #tpu.memory_space<vmem>>, vector<4x256xf32>
    tpu.vector_store %arg11[%c24, %c0_40], %62 {strides = array<i32>} : memref<36x256xf32, #tpu.memory_space<vmem>>, vector<4x256xf32>,
    %c0_41 = arith.constant 0 : index
    %c33 = arith.constant 33 : index
    %64 = vector.load %arg9[%c0_41, %c33] : memref<4x290xf32, #tpu.memory_space<vmem>>, vector<4x256xf32>
    %c28 = arith.constant 28 : index
    %c0_42 = arith.constant 0 : index
    %65 = vector.load %arg11[%c28, %c0_42] : memref<36x256xf32, #tpu.memory_space<vmem>>, vector<4x256xf32>
    tpu.vector_store %arg11[%c28, %c0_42], %64 {strides = array<i32>} : memref<36x256xf32, #tpu.memory_space<vmem>>, vector<4x256xf32>,
    %c0_43 = arith.constant 0 : index
    %c34 = arith.constant 34 : index
    %66 = vector.load %arg9[%c0_43, %c34] : memref<4x290xf32, #tpu.memory_space<vmem>>, vector<4x256xf32>
    %cst_44 = arith.constant 0.000000e+00 : f32
    %67 = vector.broadcast %cst_44 : f32 to vector<4x256xf32>
    %68 = arith.select %24, %66, %67 : vector<4x256xi1>, vector<4x256xf32>
    %c32_45 = arith.constant 32 : index
    %c0_46 = arith.constant 0 : index
    %69 = vector.load %arg11[%c32_45, %c0_46] : memref<36x256xf32, #tpu.memory_space<vmem>>, vector<4x256xf32>
    tpu.vector_store %arg11[%c32_45, %c0_46], %68 {strides = array<i32>} : memref<36x256xf32, #tpu.memory_space<vmem>>, vector<4x256xf32>,
    %c0_47 = arith.constant 0 : index
    %c0_48 = arith.constant 0 : index
    %70 = vector.load %arg2[%c0_47, %c0_48] : memref<8x36xf32, #tpu.memory_space<vmem>>, vector<8x36xf32>
    %c0_49 = arith.constant 0 : index
    %c0_50 = arith.constant 0 : index
    %71 = vector.load %arg11[%c0_49, %c0_50] : memref<36x256xf32, #tpu.memory_space<vmem>>, vector<36x256xf32>
    %cst_51 = arith.constant dense<0.000000e+00> : vector<8x256xf32>
    %72 = tpu.matmul %70, %71, %cst_51 {dimension_numbers = #tpu.dot_dimension_numbers<[1], [0], [0], [1], [0, 0, 1, 1], [], []>} : vector<8x36xf32>, vector<36x256xf32>, vector<8x256xf32> -> vector<8x256xf32>
    %c0_52 = arith.constant 0 : index
    %c0_53 = arith.constant 0 : index
    %73 = vector.load %arg3[%c0_52, %c0_53] : memref<8x1xf32, #tpu.memory_space<vmem>>, vector<8x1xf32>
    %74 = vector.broadcast %73 : vector<8x1xf32> to vector<8x256xf32>
    %75 = arith.addf %72, %74 : vector<8x256xf32>
    %76 = vector.shape_cast %75 : vector<8x256xf32> to vector<1x8x256xf32>
    %cst_54 = arith.constant dense<0xFF800000> : vector<1xf32>
    %77 = vector.multi_reduction <maximumf>, %76, %cst_54 [1, 2] : vector<1x8x256xf32> to vector<1xf32>
    %78 = vector.shape_cast %77 : vector<1xf32> to vector<1x1x1xf32>
    %79 = vector.extract %78[0, 0, 0] : f32 from vector<1x1x1xf32>
    %80 = vector.broadcast %79 : f32 to vector<1x1xf32>
    %81 = vector.shape_cast %75 : vector<8x256xf32> to vector<1x8x256xf32>
    %cst_55 = arith.constant dense<0x7F800000> : vector<1xf32>
    %82 = vector.multi_reduction <minimumf>, %81, %cst_55 [1, 2] : vector<1x8x256xf32> to vector<1xf32>
    %83 = vector.shape_cast %82 : vector<1xf32> to vector<1x1x1xf32>
    %84 = vector.extract %83[0, 0, 0] : f32 from vector<1x1x1xf32>
    %85 = vector.broadcast %84 : f32 to vector<1x1xf32>
    %cst_56 = arith.constant 0.000000e+00 : f32
    %86 = vector.broadcast %cst_56 : f32 to vector<8x256xf32>
    %87 = arith.maximumf %75, %86 : vector<8x256xf32>
    %c0_57 = arith.constant 0 : index
    %c17_58 = arith.constant 17 : index
    %88 = vector.load %arg10[%c0_57, %c17_58] : memref<8x290xf32, #tpu.memory_space<vmem>>, vector<8x256xf32>
    tpu.vector_store %arg10[%c0_57, %c17_58], %87 {strides = array<i32>} : memref<8x290xf32, #tpu.memory_space<vmem>>, vector<8x256xf32>,
    %c0_59 = arith.constant 0 : index
    %c0_60 = arith.constant 0 : index
    %89 = vector.load %arg10[%c0_59, %c0_60] : memref<8x290xf32, #tpu.memory_space<vmem>>, vector<8x256xf32>
    %cst_61 = arith.constant 0.000000e+00 : f32
    %90 = vector.broadcast %cst_61 : f32 to vector<8x256xf32>
    %91 = arith.select %26, %89, %90 : vector<8x256xi1>, vector<8x256xf32>
    %c0_62 = arith.constant 0 : index
    %c0_63 = arith.constant 0 : index
    %92 = vector.load %arg12[%c0_62, %c0_63] : memref<72x256xf32, #tpu.memory_space<vmem>>, vector<8x256xf32>
    tpu.vector_store %arg12[%c0_62, %c0_63], %91 {strides = array<i32>} : memref<72x256xf32, #tpu.memory_space<vmem>>, vector<8x256xf32>,
    %c0_64 = arith.constant 0 : index
    %c1_65 = arith.constant 1 : index
    %93 = vector.load %arg10[%c0_64, %c1_65] : memref<8x290xf32, #tpu.memory_space<vmem>>, vector<8x256xf32>
    %c8_66 = arith.constant 8 : index
    %c0_67 = arith.constant 0 : index
    %94 = vector.load %arg12[%c8_66, %c0_67] : memref<72x256xf32, #tpu.memory_space<vmem>>, vector<8x256xf32>
    tpu.vector_store %arg12[%c8_66, %c0_67], %93 {strides = array<i32>} : memref<72x256xf32, #tpu.memory_space<vmem>>, vector<8x256xf32>,
    %c0_68 = arith.constant 0 : index
    %c2_69 = arith.constant 2 : index
    %95 = vector.load %arg10[%c0_68, %c2_69] : memref<8x290xf32, #tpu.memory_space<vmem>>, vector<8x256xf32>
    %cst_70 = arith.constant 0.000000e+00 : f32
    %96 = vector.broadcast %cst_70 : f32 to vector<8x256xf32>
    %97 = arith.select %28, %95, %96 : vector<8x256xi1>, vector<8x256xf32>
    %c16_71 = arith.constant 16 : index
    %c0_72 = arith.constant 0 : index
    %98 = vector.load %arg12[%c16_71, %c0_72] : memref<72x256xf32, #tpu.memory_space<vmem>>, vector<8x256xf32>
    tpu.vector_store %arg12[%c16_71, %c0_72], %97 {strides = array<i32>} : memref<72x256xf32, #tpu.memory_space<vmem>>, vector<8x256xf32>,
    %c0_73 = arith.constant 0 : index
    %c16_74 = arith.constant 16 : index
    %99 = vector.load %arg10[%c0_73, %c16_74] : memref<8x290xf32, #tpu.memory_space<vmem>>, vector<8x256xf32>
    %cst_75 = arith.constant 0.000000e+00 : f32
    %100 = vector.broadcast %cst_75 : f32 to vector<8x256xf32>
    %101 = arith.select %26, %99, %100 : vector<8x256xi1>, vector<8x256xf32>
    %c24_76 = arith.constant 24 : index
    %c0_77 = arith.constant 0 : index
    %102 = vector.load %arg12[%c24_76, %c0_77] : memref<72x256xf32, #tpu.memory_space<vmem>>, vector<8x256xf32>
    tpu.vector_store %arg12[%c24_76, %c0_77], %101 {strides = array<i32>} : memref<72x256xf32, #tpu.memory_space<vmem>>, vector<8x256xf32>,
    %c0_78 = arith.constant 0 : index
    %c17_79 = arith.constant 17 : index
    %103 = vector.load %arg10[%c0_78, %c17_79] : memref<8x290xf32, #tpu.memory_space<vmem>>, vector<8x256xf32>
    %c32_80 = arith.constant 32 : index
    %c0_81 = arith.constant 0 : index
    %104 = vector.load %arg12[%c32_80, %c0_81] : memref<72x256xf32, #tpu.memory_space<vmem>>, vector<8x256xf32>
    tpu.vector_store %arg12[%c32_80, %c0_81], %103 {strides = array<i32>} : memref<72x256xf32, #tpu.memory_space<vmem>>, vector<8x256xf32>,
    %c0_82 = arith.constant 0 : index
    %c18_83 = arith.constant 18 : index
    %105 = vector.load %arg10[%c0_82, %c18_83] : memref<8x290xf32, #tpu.memory_space<vmem>>, vector<8x256xf32>
    %cst_84 = arith.constant 0.000000e+00 : f32
    %106 = vector.broadcast %cst_84 : f32 to vector<8x256xf32>
    %107 = arith.select %28, %105, %106 : vector<8x256xi1>, vector<8x256xf32>
    %c40 = arith.constant 40 : index
    %c0_85 = arith.constant 0 : index
    %108 = vector.load %arg12[%c40, %c0_85] : memref<72x256xf32, #tpu.memory_space<vmem>>, vector<8x256xf32>
    tpu.vector_store %arg12[%c40, %c0_85], %107 {strides = array<i32>} : memref<72x256xf32, #tpu.memory_space<vmem>>, vector<8x256xf32>,
    %c0_86 = arith.constant 0 : index
    %c32_87 = arith.constant 32 : index
    %109 = vector.load %arg10[%c0_86, %c32_87] : memref<8x290xf32, #tpu.memory_space<vmem>>, vector<8x256xf32>
    %cst_88 = arith.constant 0.000000e+00 : f32
    %110 = vector.broadcast %cst_88 : f32 to vector<8x256xf32>
    %111 = arith.select %26, %109, %110 : vector<8x256xi1>, vector<8x256xf32>
    %c48 = arith.constant 48 : index
    %c0_89 = arith.constant 0 : index
    %112 = vector.load %arg12[%c48, %c0_89] : memref<72x256xf32, #tpu.memory_space<vmem>>, vector<8x256xf32>
    tpu.vector_store %arg12[%c48, %c0_89], %111 {strides = array<i32>} : memref<72x256xf32, #tpu.memory_space<vmem>>, vector<8x256xf32>,
    %c0_90 = arith.constant 0 : index
    %c33_91 = arith.constant 33 : index
    %113 = vector.load %arg10[%c0_90, %c33_91] : memref<8x290xf32, #tpu.memory_space<vmem>>, vector<8x256xf32>
    %c56 = arith.constant 56 : index
    %c0_92 = arith.constant 0 : index
    %114 = vector.load %arg12[%c56, %c0_92] : memref<72x256xf32, #tpu.memory_space<vmem>>, vector<8x256xf32>
    tpu.vector_store %arg12[%c56, %c0_92], %113 {strides = array<i32>} : memref<72x256xf32, #tpu.memory_space<vmem>>, vector<8x256xf32>,
    %c0_93 = arith.constant 0 : index
    %c34_94 = arith.constant 34 : index
    %115 = vector.load %arg10[%c0_93, %c34_94] : memref<8x290xf32, #tpu.memory_space<vmem>>, vector<8x256xf32>
    %cst_95 = arith.constant 0.000000e+00 : f32
    %116 = vector.broadcast %cst_95 : f32 to vector<8x256xf32>
    %117 = arith.select %28, %115, %116 : vector<8x256xi1>, vector<8x256xf32>
    %c64 = arith.constant 64 : index
    %c0_96 = arith.constant 0 : index
    %118 = vector.load %arg12[%c64, %c0_96] : memref<72x256xf32, #tpu.memory_space<vmem>>, vector<8x256xf32>
    tpu.vector_store %arg12[%c64, %c0_96], %117 {strides = array<i32>} : memref<72x256xf32, #tpu.memory_space<vmem>>, vector<8x256xf32>,
    %c0_97 = arith.constant 0 : index
    %c0_98 = arith.constant 0 : index
    %119 = vector.load %arg4[%c0_97, %c0_98] : memref<8x72xf32, #tpu.memory_space<vmem>>, vector<8x72xf32>
    %c0_99 = arith.constant 0 : index
    %c0_100 = arith.constant 0 : index
    %120 = vector.load %arg12[%c0_99, %c0_100] : memref<72x256xf32, #tpu.memory_space<vmem>>, vector<72x256xf32>
    %cst_101 = arith.constant dense<0.000000e+00> : vector<8x256xf32>
    %121 = tpu.matmul %119, %120, %cst_101 {dimension_numbers = #tpu.dot_dimension_numbers<[1], [0], [0], [1], [0, 0, 1, 1], [], []>} : vector<8x72xf32>, vector<72x256xf32>, vector<8x256xf32> -> vector<8x256xf32>
    %c0_102 = arith.constant 0 : index
    %c0_103 = arith.constant 0 : index
    %122 = vector.load %arg5[%c0_102, %c0_103] : memref<8x1xf32, #tpu.memory_space<vmem>>, vector<8x1xf32>
    %123 = vector.broadcast %122 : vector<8x1xf32> to vector<8x256xf32>
    %124 = arith.addf %121, %123 : vector<8x256xf32>
    %125 = vector.shape_cast %124 : vector<8x256xf32> to vector<1x8x256xf32>
    %cst_104 = arith.constant dense<0xFF800000> : vector<1xf32>
    %126 = vector.multi_reduction <maximumf>, %125, %cst_104 [1, 2] : vector<1x8x256xf32> to vector<1xf32>
    %127 = vector.shape_cast %126 : vector<1xf32> to vector<1x1x1xf32>
    %128 = vector.extract %127[0, 0, 0] : f32 from vector<1x1x1xf32>
    %129 = vector.broadcast %128 : f32 to vector<1x1xf32>
    %130 = vector.shape_cast %124 : vector<8x256xf32> to vector<1x8x256xf32>
    %cst_105 = arith.constant dense<0x7F800000> : vector<1xf32>
    %131 = vector.multi_reduction <minimumf>, %130, %cst_105 [1, 2] : vector<1x8x256xf32> to vector<1xf32>
    %132 = vector.shape_cast %131 : vector<1xf32> to vector<1x1x1xf32>
    %133 = vector.extract %132[0, 0, 0] : f32 from vector<1x1x1xf32>
    %134 = vector.broadcast %133 : f32 to vector<1x1xf32>
    %cst_106 = arith.constant 0.000000e+00 : f32
    %135 = vector.broadcast %cst_106 : f32 to vector<8x256xf32>
    %136 = arith.maximumf %124, %135 : vector<8x256xf32>
    %137 = vector.extract_strided_slice %136 {offsets = [0, 0], sizes = [1, 256], strides = [1, 1]} : vector<8x256xf32> to vector<1x256xf32>
    %c0_107 = arith.constant 0 : index
    %c0_108 = arith.constant 0 : index
    %138 = vector.load %arg13[%c0_107, %c0_108] : memref<4x2048xf32, #tpu.memory_space<vmem>>, vector<1x256xf32>
    tpu.vector_store %arg13[%c0_107, %c0_108], %137 {strides = array<i32>} : memref<4x2048xf32, #tpu.memory_space<vmem>>, vector<1x256xf32>,
    %139 = vector.extract_strided_slice %136 {offsets = [1, 0], sizes = [1, 256], strides = [1, 1]} : vector<8x256xf32> to vector<1x256xf32>
    %c0_109 = arith.constant 0 : index
    %c256 = arith.constant 256 : index
    %140 = vector.load %arg13[%c0_109, %c256] : memref<4x2048xf32, #tpu.memory_space<vmem>>, vector<1x256xf32>
    tpu.vector_store %arg13[%c0_109, %c256], %139 {strides = array<i32>} : memref<4x2048xf32, #tpu.memory_space<vmem>>, vector<1x256xf32>,
    %141 = vector.extract_strided_slice %136 {offsets = [2, 0], sizes = [1, 256], strides = [1, 1]} : vector<8x256xf32> to vector<1x256xf32>
    %c0_110 = arith.constant 0 : index
    %c512 = arith.constant 512 : index
    %142 = vector.load %arg13[%c0_110, %c512] : memref<4x2048xf32, #tpu.memory_space<vmem>>, vector<1x256xf32>
    tpu.vector_store %arg13[%c0_110, %c512], %141 {strides = array<i32>} : memref<4x2048xf32, #tpu.memory_space<vmem>>, vector<1x256xf32>,
    %143 = vector.extract_strided_slice %136 {offsets = [3, 0], sizes = [1, 256], strides = [1, 1]} : vector<8x256xf32> to vector<1x256xf32>
    %c0_111 = arith.constant 0 : index
    %c768 = arith.constant 768 : index
    %144 = vector.load %arg13[%c0_111, %c768] : memref<4x2048xf32, #tpu.memory_space<vmem>>, vector<1x256xf32>
    tpu.vector_store %arg13[%c0_111, %c768], %143 {strides = array<i32>} : memref<4x2048xf32, #tpu.memory_space<vmem>>, vector<1x256xf32>,
    %145 = vector.extract_strided_slice %136 {offsets = [4, 0], sizes = [1, 256], strides = [1, 1]} : vector<8x256xf32> to vector<1x256xf32>
    %c0_112 = arith.constant 0 : index
    %c1024 = arith.constant 1024 : index
    %146 = vector.load %arg13[%c0_112, %c1024] : memref<4x2048xf32, #tpu.memory_space<vmem>>, vector<1x256xf32>
    tpu.vector_store %arg13[%c0_112, %c1024], %145 {strides = array<i32>} : memref<4x2048xf32, #tpu.memory_space<vmem>>, vector<1x256xf32>,
    %147 = vector.extract_strided_slice %136 {offsets = [5, 0], sizes = [1, 256], strides = [1, 1]} : vector<8x256xf32> to vector<1x256xf32>
    %c0_113 = arith.constant 0 : index
    %c1280 = arith.constant 1280 : index
    %148 = vector.load %arg13[%c0_113, %c1280] : memref<4x2048xf32, #tpu.memory_space<vmem>>, vector<1x256xf32>
    tpu.vector_store %arg13[%c0_113, %c1280], %147 {strides = array<i32>} : memref<4x2048xf32, #tpu.memory_space<vmem>>, vector<1x256xf32>,
    %149 = vector.extract_strided_slice %136 {offsets = [6, 0], sizes = [1, 256], strides = [1, 1]} : vector<8x256xf32> to vector<1x256xf32>
    %c0_114 = arith.constant 0 : index
    %c1536 = arith.constant 1536 : index
    %150 = vector.load %arg13[%c0_114, %c1536] : memref<4x2048xf32, #tpu.memory_space<vmem>>, vector<1x256xf32>
    tpu.vector_store %arg13[%c0_114, %c1536], %149 {strides = array<i32>} : memref<4x2048xf32, #tpu.memory_space<vmem>>, vector<1x256xf32>,
    %151 = vector.extract_strided_slice %136 {offsets = [7, 0], sizes = [1, 256], strides = [1, 1]} : vector<8x256xf32> to vector<1x256xf32>
    %c0_115 = arith.constant 0 : index
    %c1792 = arith.constant 1792 : index
    %152 = vector.load %arg13[%c0_115, %c1792] : memref<4x2048xf32, #tpu.memory_space<vmem>>, vector<1x256xf32>
    tpu.vector_store %arg13[%c0_115, %c1792], %151 {strides = array<i32>} : memref<4x2048xf32, #tpu.memory_space<vmem>>, vector<1x256xf32>,
    %153 = tpu.concatenate %80, %85, %129, %134 in 1 : vector<1x1xf32>, vector<1x1xf32>, vector<1x1xf32>, vector<1x1xf32> -> vector<1x4xf32>
    %c0_116 = arith.constant 0 : index
    %c1_117 = arith.constant 1 : index
    %c0_118 = arith.constant 0 : index
    %c0_119 = arith.constant 0 : index
    %154 = vector.load %arg1[%c0_116, %c1_117, %c0_118, %c0_119] : memref<1x4x4x256xf32, #tpu.memory_space<vmem>>, vector<1x1x4x256xf32>
    %155 = vector.shape_cast %154 : vector<1x1x4x256xf32> to vector<4x256xf32>
    %c0_120 = arith.constant 0 : index
    %c17_121 = arith.constant 17 : index
    %156 = vector.load %arg9[%c0_120, %c17_121] : memref<4x290xf32, #tpu.memory_space<vmem>>, vector<4x256xf32>
    tpu.vector_store %arg9[%c0_120, %c17_121], %155 {strides = array<i32>} : memref<4x290xf32, #tpu.memory_space<vmem>>, vector<4x256xf32>,
    %c0_122 = arith.constant 0 : index
    %c0_123 = arith.constant 0 : index
    %157 = vector.load %arg9[%c0_122, %c0_123] : memref<4x290xf32, #tpu.memory_space<vmem>>, vector<4x256xf32>
    %cst_124 = arith.constant 0.000000e+00 : f32
    %158 = vector.broadcast %cst_124 : f32 to vector<4x256xf32>
    %159 = arith.select %22, %157, %158 : vector<4x256xi1>, vector<4x256xf32>
    %c0_125 = arith.constant 0 : index
    %c0_126 = arith.constant 0 : index
    %160 = vector.load %arg11[%c0_125, %c0_126] : memref<36x256xf32, #tpu.memory_space<vmem>>, vector<4x256xf32>
    tpu.vector_store %arg11[%c0_125, %c0_126], %159 {strides = array<i32>} : memref<36x256xf32, #tpu.memory_space<vmem>>, vector<4x256xf32>,
    %c0_127 = arith.constant 0 : index
    %c1_128 = arith.constant 1 : index
    %161 = vector.load %arg9[%c0_127, %c1_128] : memref<4x290xf32, #tpu.memory_space<vmem>>, vector<4x256xf32>
    %c4_129 = arith.constant 4 : index
    %c0_130 = arith.constant 0 : index
    %162 = vector.load %arg11[%c4_129, %c0_130] : memref<36x256xf32, #tpu.memory_space<vmem>>, vector<4x256xf32>
    tpu.vector_store %arg11[%c4_129, %c0_130], %161 {strides = array<i32>} : memref<36x256xf32, #tpu.memory_space<vmem>>, vector<4x256xf32>,
    %c0_131 = arith.constant 0 : index
    %c2_132 = arith.constant 2 : index
    %163 = vector.load %arg9[%c0_131, %c2_132] : memref<4x290xf32, #tpu.memory_space<vmem>>, vector<4x256xf32>
    %cst_133 = arith.constant 0.000000e+00 : f32
    %164 = vector.broadcast %cst_133 : f32 to vector<4x256xf32>
    %165 = arith.select %24, %163, %164 : vector<4x256xi1>, vector<4x256xf32>
    %c8_134 = arith.constant 8 : index
    %c0_135 = arith.constant 0 : index
    %166 = vector.load %arg11[%c8_134, %c0_135] : memref<36x256xf32, #tpu.memory_space<vmem>>, vector<4x256xf32>
    tpu.vector_store %arg11[%c8_134, %c0_135], %165 {strides = array<i32>} : memref<36x256xf32, #tpu.memory_space<vmem>>, vector<4x256xf32>,
    %c0_136 = arith.constant 0 : index
    %c16_137 = arith.constant 16 : index
    %167 = vector.load %arg9[%c0_136, %c16_137] : memref<4x290xf32, #tpu.memory_space<vmem>>, vector<4x256xf32>
    %cst_138 = arith.constant 0.000000e+00 : f32
    %168 = vector.broadcast %cst_138 : f32 to vector<4x256xf32>
    %169 = arith.select %22, %167, %168 : vector<4x256xi1>, vector<4x256xf32>
    %c12_139 = arith.constant 12 : index
    %c0_140 = arith.constant 0 : index
    %170 = vector.load %arg11[%c12_139, %c0_140] : memref<36x256xf32, #tpu.memory_space<vmem>>, vector<4x256xf32>
    tpu.vector_store %arg11[%c12_139, %c0_140], %169 {strides = array<i32>} : memref<36x256xf32, #tpu.memory_space<vmem>>, vector<4x256xf32>,
    %c0_141 = arith.constant 0 : index
    %c17_142 = arith.constant 17 : index
    %171 = vector.load %arg9[%c0_141, %c17_142] : memref<4x290xf32, #tpu.memory_space<vmem>>, vector<4x256xf32>
    %c16_143 = arith.constant 16 : index
    %c0_144 = arith.constant 0 : index
    %172 = vector.load %arg11[%c16_143, %c0_144] : memref<36x256xf32, #tpu.memory_space<vmem>>, vector<4x256xf32>
    tpu.vector_store %arg11[%c16_143, %c0_144], %171 {strides = array<i32>} : memref<36x256xf32, #tpu.memory_space<vmem>>, vector<4x256xf32>,
    %c0_145 = arith.constant 0 : index
    %c18_146 = arith.constant 18 : index
    %173 = vector.load %arg9[%c0_145, %c18_146] : memref<4x290xf32, #tpu.memory_space<vmem>>, vector<4x256xf32>
    %cst_147 = arith.constant 0.000000e+00 : f32
    %174 = vector.broadcast %cst_147 : f32 to vector<4x256xf32>
    %175 = arith.select %24, %173, %174 : vector<4x256xi1>, vector<4x256xf32>
    %c20_148 = arith.constant 20 : index
    %c0_149 = arith.constant 0 : index
    %176 = vector.load %arg11[%c20_148, %c0_149] : memref<36x256xf32, #tpu.memory_space<vmem>>, vector<4x256xf32>
    tpu.vector_store %arg11[%c20_148, %c0_149], %175 {strides = array<i32>} : memref<36x256xf32, #tpu.memory_space<vmem>>, vector<4x256xf32>,
    %c0_150 = arith.constant 0 : index
    %c32_151 = arith.constant 32 : index
    %177 = vector.load %arg9[%c0_150, %c32_151] : memref<4x290xf32, #tpu.memory_space<vmem>>, vector<4x256xf32>
    %cst_152 = arith.constant 0.000000e+00 : f32
    %178 = vector.broadcast %cst_152 : f32 to vector<4x256xf32>
    %179 = arith.select %22, %177, %178 : vector<4x256xi1>, vector<4x256xf32>
    %c24_153 = arith.constant 24 : index
    %c0_154 = arith.constant 0 : index
    %180 = vector.load %arg11[%c24_153, %c0_154] : memref<36x256xf32, #tpu.memory_space<vmem>>, vector<4x256xf32>
    tpu.vector_store %arg11[%c24_153, %c0_154], %179 {strides = array<i32>} : memref<36x256xf32, #tpu.memory_space<vmem>>, vector<4x256xf32>,
    %c0_155 = arith.constant 0 : index
    %c33_156 = arith.constant 33 : index
    %181 = vector.load %arg9[%c0_155, %c33_156] : memref<4x290xf32, #tpu.memory_space<vmem>>, vector<4x256xf32>
    %c28_157 = arith.constant 28 : index
    %c0_158 = arith.constant 0 : index
    %182 = vector.load %arg11[%c28_157, %c0_158] : memref<36x256xf32, #tpu.memory_space<vmem>>, vector<4x256xf32>
    tpu.vector_store %arg11[%c28_157, %c0_158], %181 {strides = array<i32>} : memref<36x256xf32, #tpu.memory_space<vmem>>, vector<4x256xf32>,
    %c0_159 = arith.constant 0 : index
    %c34_160 = arith.constant 34 : index
    %183 = vector.load %arg9[%c0_159, %c34_160] : memref<4x290xf32, #tpu.memory_space<vmem>>, vector<4x256xf32>
    %cst_161 = arith.constant 0.000000e+00 : f32
    %184 = vector.broadcast %cst_161 : f32 to vector<4x256xf32>
    %185 = arith.select %24, %183, %184 : vector<4x256xi1>, vector<4x256xf32>
    %c32_162 = arith.constant 32 : index
    %c0_163 = arith.constant 0 : index
    %186 = vector.load %arg11[%c32_162, %c0_163] : memref<36x256xf32, #tpu.memory_space<vmem>>, vector<4x256xf32>
    tpu.vector_store %arg11[%c32_162, %c0_163], %185 {strides = array<i32>} : memref<36x256xf32, #tpu.memory_space<vmem>>, vector<4x256xf32>,
    %c0_164 = arith.constant 0 : index
    %c0_165 = arith.constant 0 : index
    %187 = vector.load %arg2[%c0_164, %c0_165] : memref<8x36xf32, #tpu.memory_space<vmem>>, vector<8x36xf32>
    %c0_166 = arith.constant 0 : index
    %c0_167 = arith.constant 0 : index
    %188 = vector.load %arg11[%c0_166, %c0_167] : memref<36x256xf32, #tpu.memory_space<vmem>>, vector<36x256xf32>
    %cst_168 = arith.constant dense<0.000000e+00> : vector<8x256xf32>
    %189 = tpu.matmul %187, %188, %cst_168 {dimension_numbers = #tpu.dot_dimension_numbers<[1], [0], [0], [1], [0, 0, 1, 1], [], []>} : vector<8x36xf32>, vector<36x256xf32>, vector<8x256xf32> -> vector<8x256xf32>
    %c0_169 = arith.constant 0 : index
    %c0_170 = arith.constant 0 : index
    %190 = vector.load %arg3[%c0_169, %c0_170] : memref<8x1xf32, #tpu.memory_space<vmem>>, vector<8x1xf32>
    %191 = vector.broadcast %190 : vector<8x1xf32> to vector<8x256xf32>
    %192 = arith.addf %189, %191 : vector<8x256xf32>
    %193 = vector.shape_cast %192 : vector<8x256xf32> to vector<1x8x256xf32>
    %cst_171 = arith.constant dense<0xFF800000> : vector<1xf32>
    %194 = vector.multi_reduction <maximumf>, %193, %cst_171 [1, 2] : vector<1x8x256xf32> to vector<1xf32>
    %195 = vector.shape_cast %194 : vector<1xf32> to vector<1x1x1xf32>
    %196 = vector.extract %195[0, 0, 0] : f32 from vector<1x1x1xf32>
    %197 = vector.broadcast %196 : f32 to vector<1x1xf32>
    %198 = vector.shape_cast %192 : vector<8x256xf32> to vector<1x8x256xf32>
    %cst_172 = arith.constant dense<0x7F800000> : vector<1xf32>
    %199 = vector.multi_reduction <minimumf>, %198, %cst_172 [1, 2] : vector<1x8x256xf32> to vector<1xf32>
    %200 = vector.shape_cast %199 : vector<1xf32> to vector<1x1x1xf32>
    %201 = vector.extract %200[0, 0, 0] : f32 from vector<1x1x1xf32>
    %202 = vector.broadcast %201 : f32 to vector<1x1xf32>
    %cst_173 = arith.constant 0.000000e+00 : f32
    %203 = vector.broadcast %cst_173 : f32 to vector<8x256xf32>
    %204 = arith.maximumf %192, %203 : vector<8x256xf32>
    %c0_174 = arith.constant 0 : index
    %c17_175 = arith.constant 17 : index
    %205 = vector.load %arg10[%c0_174, %c17_175] : memref<8x290xf32, #tpu.memory_space<vmem>>, vector<8x256xf32>
    tpu.vector_store %arg10[%c0_174, %c17_175], %204 {strides = array<i32>} : memref<8x290xf32, #tpu.memory_space<vmem>>, vector<8x256xf32>,
    %c0_176 = arith.constant 0 : index
    %c0_177 = arith.constant 0 : index
    %206 = vector.load %arg10[%c0_176, %c0_177] : memref<8x290xf32, #tpu.memory_space<vmem>>, vector<8x256xf32>
    %cst_178 = arith.constant 0.000000e+00 : f32
    %207 = vector.broadcast %cst_178 : f32 to vector<8x256xf32>
    %208 = arith.select %26, %206, %207 : vector<8x256xi1>, vector<8x256xf32>
    %c0_179 = arith.constant 0 : index
    %c0_180 = arith.constant 0 : index
    %209 = vector.load %arg12[%c0_179, %c0_180] : memref<72x256xf32, #tpu.memory_space<vmem>>, vector<8x256xf32>
    tpu.vector_store %arg12[%c0_179, %c0_180], %208 {strides = array<i32>} : memref<72x256xf32, #tpu.memory_space<vmem>>, vector<8x256xf32>,
    %c0_181 = arith.constant 0 : index
    %c1_182 = arith.constant 1 : index
    %210 = vector.load %arg10[%c0_181, %c1_182] : memref<8x290xf32, #tpu.memory_space<vmem>>, vector<8x256xf32>
    %c8_183 = arith.constant 8 : index
    %c0_184 = arith.constant 0 : index
    %211 = vector.load %arg12[%c8_183, %c0_184] : memref<72x256xf32, #tpu.memory_space<vmem>>, vector<8x256xf32>
    tpu.vector_store %arg12[%c8_183, %c0_184], %210 {strides = array<i32>} : memref<72x256xf32, #tpu.memory_space<vmem>>, vector<8x256xf32>,
    %c0_185 = arith.constant 0 : index
    %c2_186 = arith.constant 2 : index
    %212 = vector.load %arg10[%c0_185, %c2_186] : memref<8x290xf32, #tpu.memory_space<vmem>>, vector<8x256xf32>
    %cst_187 = arith.constant 0.000000e+00 : f32
    %213 = vector.broadcast %cst_187 : f32 to vector<8x256xf32>
    %214 = arith.select %28, %212, %213 : vector<8x256xi1>, vector<8x256xf32>
    %c16_188 = arith.constant 16 : index
    %c0_189 = arith.constant 0 : index
    %215 = vector.load %arg12[%c16_188, %c0_189] : memref<72x256xf32, #tpu.memory_space<vmem>>, vector<8x256xf32>
    tpu.vector_store %arg12[%c16_188, %c0_189], %214 {strides = array<i32>} : memref<72x256xf32, #tpu.memory_space<vmem>>, vector<8x256xf32>,
    %c0_190 = arith.constant 0 : index
    %c16_191 = arith.constant 16 : index
    %216 = vector.load %arg10[%c0_190, %c16_191] : memref<8x290xf32, #tpu.memory_space<vmem>>, vector<8x256xf32>
    %cst_192 = arith.constant 0.000000e+00 : f32
    %217 = vector.broadcast %cst_192 : f32 to vector<8x256xf32>
    %218 = arith.select %26, %216, %217 : vector<8x256xi1>, vector<8x256xf32>
    %c24_193 = arith.constant 24 : index
    %c0_194 = arith.constant 0 : index
    %219 = vector.load %arg12[%c24_193, %c0_194] : memref<72x256xf32, #tpu.memory_space<vmem>>, vector<8x256xf32>
    tpu.vector_store %arg12[%c24_193, %c0_194], %218 {strides = array<i32>} : memref<72x256xf32, #tpu.memory_space<vmem>>, vector<8x256xf32>,
    %c0_195 = arith.constant 0 : index
    %c17_196 = arith.constant 17 : index
    %220 = vector.load %arg10[%c0_195, %c17_196] : memref<8x290xf32, #tpu.memory_space<vmem>>, vector<8x256xf32>
    %c32_197 = arith.constant 32 : index
    %c0_198 = arith.constant 0 : index
    %221 = vector.load %arg12[%c32_197, %c0_198] : memref<72x256xf32, #tpu.memory_space<vmem>>, vector<8x256xf32>
    tpu.vector_store %arg12[%c32_197, %c0_198], %220 {strides = array<i32>} : memref<72x256xf32, #tpu.memory_space<vmem>>, vector<8x256xf32>,
    %c0_199 = arith.constant 0 : index
    %c18_200 = arith.constant 18 : index
    %222 = vector.load %arg10[%c0_199, %c18_200] : memref<8x290xf32, #tpu.memory_space<vmem>>, vector<8x256xf32>
    %cst_201 = arith.constant 0.000000e+00 : f32
    %223 = vector.broadcast %cst_201 : f32 to vector<8x256xf32>
    %224 = arith.select %28, %222, %223 : vector<8x256xi1>, vector<8x256xf32>
    %c40_202 = arith.constant 40 : index
    %c0_203 = arith.constant 0 : index
    %225 = vector.load %arg12[%c40_202, %c0_203] : memref<72x256xf32, #tpu.memory_space<vmem>>, vector<8x256xf32>
    tpu.vector_store %arg12[%c40_202, %c0_203], %224 {strides = array<i32>} : memref<72x256xf32, #tpu.memory_space<vmem>>, vector<8x256xf32>,
    %c0_204 = arith.constant 0 : index
    %c32_205 = arith.constant 32 : index
    %226 = vector.load %arg10[%c0_204, %c32_205] : memref<8x290xf32, #tpu.memory_space<vmem>>, vector<8x256xf32>
    %cst_206 = arith.constant 0.000000e+00 : f32
    %227 = vector.broadcast %cst_206 : f32 to vector<8x256xf32>
    %228 = arith.select %26, %226, %227 : vector<8x256xi1>, vector<8x256xf32>
    %c48_207 = arith.constant 48 : index
    %c0_208 = arith.constant 0 : index
    %229 = vector.load %arg12[%c48_207, %c0_208] : memref<72x256xf32, #tpu.memory_space<vmem>>, vector<8x256xf32>
    tpu.vector_store %arg12[%c48_207, %c0_208], %228 {strides = array<i32>} : memref<72x256xf32, #tpu.memory_space<vmem>>, vector<8x256xf32>,
    %c0_209 = arith.constant 0 : index
    %c33_210 = arith.constant 33 : index
    %230 = vector.load %arg10[%c0_209, %c33_210] : memref<8x290xf32, #tpu.memory_space<vmem>>, vector<8x256xf32>
    %c56_211 = arith.constant 56 : index
    %c0_212 = arith.constant 0 : index
    %231 = vector.load %arg12[%c56_211, %c0_212] : memref<72x256xf32, #tpu.memory_space<vmem>>, vector<8x256xf32>
    tpu.vector_store %arg12[%c56_211, %c0_212], %230 {strides = array<i32>} : memref<72x256xf32, #tpu.memory_space<vmem>>, vector<8x256xf32>,
    %c0_213 = arith.constant 0 : index
    %c34_214 = arith.constant 34 : index
    %232 = vector.load %arg10[%c0_213, %c34_214] : memref<8x290xf32, #tpu.memory_space<vmem>>, vector<8x256xf32>
    %cst_215 = arith.constant 0.000000e+00 : f32
    %233 = vector.broadcast %cst_215 : f32 to vector<8x256xf32>
    %234 = arith.select %28, %232, %233 : vector<8x256xi1>, vector<8x256xf32>
    %c64_216 = arith.constant 64 : index
    %c0_217 = arith.constant 0 : index
    %235 = vector.load %arg12[%c64_216, %c0_217] : memref<72x256xf32, #tpu.memory_space<vmem>>, vector<8x256xf32>
    tpu.vector_store %arg12[%c64_216, %c0_217], %234 {strides = array<i32>} : memref<72x256xf32, #tpu.memory_space<vmem>>, vector<8x256xf32>,
    %c0_218 = arith.constant 0 : index
    %c0_219 = arith.constant 0 : index
    %236 = vector.load %arg4[%c0_218, %c0_219] : memref<8x72xf32, #tpu.memory_space<vmem>>, vector<8x72xf32>
    %c0_220 = arith.constant 0 : index
    %c0_221 = arith.constant 0 : index
    %237 = vector.load %arg12[%c0_220, %c0_221] : memref<72x256xf32, #tpu.memory_space<vmem>>, vector<72x256xf32>
    %cst_222 = arith.constant dense<0.000000e+00> : vector<8x256xf32>
    %238 = tpu.matmul %236, %237, %cst_222 {dimension_numbers = #tpu.dot_dimension_numbers<[1], [0], [0], [1], [0, 0, 1, 1], [], []>} : vector<8x72xf32>, vector<72x256xf32>, vector<8x256xf32> -> vector<8x256xf32>
    %c0_223 = arith.constant 0 : index
    %c0_224 = arith.constant 0 : index
    %239 = vector.load %arg5[%c0_223, %c0_224] : memref<8x1xf32, #tpu.memory_space<vmem>>, vector<8x1xf32>
    %240 = vector.broadcast %239 : vector<8x1xf32> to vector<8x256xf32>
    %241 = arith.addf %238, %240 : vector<8x256xf32>
    %242 = vector.shape_cast %241 : vector<8x256xf32> to vector<1x8x256xf32>
    %cst_225 = arith.constant dense<0xFF800000> : vector<1xf32>
    %243 = vector.multi_reduction <maximumf>, %242, %cst_225 [1, 2] : vector<1x8x256xf32> to vector<1xf32>
    %244 = vector.shape_cast %243 : vector<1xf32> to vector<1x1x1xf32>
    %245 = vector.extract %244[0, 0, 0] : f32 from vector<1x1x1xf32>
    %246 = vector.broadcast %245 : f32 to vector<1x1xf32>
    %247 = vector.shape_cast %241 : vector<8x256xf32> to vector<1x8x256xf32>
    %cst_226 = arith.constant dense<0x7F800000> : vector<1xf32>
    %248 = vector.multi_reduction <minimumf>, %247, %cst_226 [1, 2] : vector<1x8x256xf32> to vector<1xf32>
    %249 = vector.shape_cast %248 : vector<1xf32> to vector<1x1x1xf32>
    %250 = vector.extract %249[0, 0, 0] : f32 from vector<1x1x1xf32>
    %251 = vector.broadcast %250 : f32 to vector<1x1xf32>
    %cst_227 = arith.constant 0.000000e+00 : f32
    %252 = vector.broadcast %cst_227 : f32 to vector<8x256xf32>
    %253 = arith.maximumf %241, %252 : vector<8x256xf32>
    %254 = vector.extract_strided_slice %253 {offsets = [0, 0], sizes = [1, 256], strides = [1, 1]} : vector<8x256xf32> to vector<1x256xf32>
    %c1_228 = arith.constant 1 : index
    %c0_229 = arith.constant 0 : index
    %255 = vector.load %arg13[%c1_228, %c0_229] : memref<4x2048xf32, #tpu.memory_space<vmem>>, vector<1x256xf32>
    tpu.vector_store %arg13[%c1_228, %c0_229], %254 {strides = array<i32>} : memref<4x2048xf32, #tpu.memory_space<vmem>>, vector<1x256xf32>,
    %256 = vector.extract_strided_slice %253 {offsets = [1, 0], sizes = [1, 256], strides = [1, 1]} : vector<8x256xf32> to vector<1x256xf32>
    %c1_230 = arith.constant 1 : index
    %c256_231 = arith.constant 256 : index
    %257 = vector.load %arg13[%c1_230, %c256_231] : memref<4x2048xf32, #tpu.memory_space<vmem>>, vector<1x256xf32>
    tpu.vector_store %arg13[%c1_230, %c256_231], %256 {strides = array<i32>} : memref<4x2048xf32, #tpu.memory_space<vmem>>, vector<1x256xf32>,
    %258 = vector.extract_strided_slice %253 {offsets = [2, 0], sizes = [1, 256], strides = [1, 1]} : vector<8x256xf32> to vector<1x256xf32>
    %c1_232 = arith.constant 1 : index
    %c512_233 = arith.constant 512 : index
    %259 = vector.load %arg13[%c1_232, %c512_233] : memref<4x2048xf32, #tpu.memory_space<vmem>>, vector<1x256xf32>
    tpu.vector_store %arg13[%c1_232, %c512_233], %258 {strides = array<i32>} : memref<4x2048xf32, #tpu.memory_space<vmem>>, vector<1x256xf32>,
    %260 = vector.extract_strided_slice %253 {offsets = [3, 0], sizes = [1, 256], strides = [1, 1]} : vector<8x256xf32> to vector<1x256xf32>
    %c1_234 = arith.constant 1 : index
    %c768_235 = arith.constant 768 : index
    %261 = vector.load %arg13[%c1_234, %c768_235] : memref<4x2048xf32, #tpu.memory_space<vmem>>, vector<1x256xf32>
    tpu.vector_store %arg13[%c1_234, %c768_235], %260 {strides = array<i32>} : memref<4x2048xf32, #tpu.memory_space<vmem>>, vector<1x256xf32>,
    %262 = vector.extract_strided_slice %253 {offsets = [4, 0], sizes = [1, 256], strides = [1, 1]} : vector<8x256xf32> to vector<1x256xf32>
    %c1_236 = arith.constant 1 : index
    %c1024_237 = arith.constant 1024 : index
    %263 = vector.load %arg13[%c1_236, %c1024_237] : memref<4x2048xf32, #tpu.memory_space<vmem>>, vector<1x256xf32>
    tpu.vector_store %arg13[%c1_236, %c1024_237], %262 {strides = array<i32>} : memref<4x2048xf32, #tpu.memory_space<vmem>>, vector<1x256xf32>,
    %264 = vector.extract_strided_slice %253 {offsets = [5, 0], sizes = [1, 256], strides = [1, 1]} : vector<8x256xf32> to vector<1x256xf32>
    %c1_238 = arith.constant 1 : index
    %c1280_239 = arith.constant 1280 : index
    %265 = vector.load %arg13[%c1_238, %c1280_239] : memref<4x2048xf32, #tpu.memory_space<vmem>>, vector<1x256xf32>
    tpu.vector_store %arg13[%c1_238, %c1280_239], %264 {strides = array<i32>} : memref<4x2048xf32, #tpu.memory_space<vmem>>, vector<1x256xf32>,
    %266 = vector.extract_strided_slice %253 {offsets = [6, 0], sizes = [1, 256], strides = [1, 1]} : vector<8x256xf32> to vector<1x256xf32>
    %c1_240 = arith.constant 1 : index
    %c1536_241 = arith.constant 1536 : index
    %267 = vector.load %arg13[%c1_240, %c1536_241] : memref<4x2048xf32, #tpu.memory_space<vmem>>, vector<1x256xf32>
    tpu.vector_store %arg13[%c1_240, %c1536_241], %266 {strides = array<i32>} : memref<4x2048xf32, #tpu.memory_space<vmem>>, vector<1x256xf32>,
    %268 = vector.extract_strided_slice %253 {offsets = [7, 0], sizes = [1, 256], strides = [1, 1]} : vector<8x256xf32> to vector<1x256xf32>
    %c1_242 = arith.constant 1 : index
    %c1792_243 = arith.constant 1792 : index
    %269 = vector.load %arg13[%c1_242, %c1792_243] : memref<4x2048xf32, #tpu.memory_space<vmem>>, vector<1x256xf32>
    tpu.vector_store %arg13[%c1_242, %c1792_243], %268 {strides = array<i32>} : memref<4x2048xf32, #tpu.memory_space<vmem>>, vector<1x256xf32>,
    %270 = tpu.concatenate %197, %202, %246, %251 in 1 : vector<1x1xf32>, vector<1x1xf32>, vector<1x1xf32>, vector<1x1xf32> -> vector<1x4xf32>
    %c0_244 = arith.constant 0 : index
    %c2_245 = arith.constant 2 : index
    %c0_246 = arith.constant 0 : index
    %c0_247 = arith.constant 0 : index
    %271 = vector.load %arg1[%c0_244, %c2_245, %c0_246, %c0_247] : memref<1x4x4x256xf32, #tpu.memory_space<vmem>>, vector<1x1x4x256xf32>
    %272 = vector.shape_cast %271 : vector<1x1x4x256xf32> to vector<4x256xf32>
    %c0_248 = arith.constant 0 : index
    %c17_249 = arith.constant 17 : index
    %273 = vector.load %arg9[%c0_248, %c17_249] : memref<4x290xf32, #tpu.memory_space<vmem>>, vector<4x256xf32>
    tpu.vector_store %arg9[%c0_248, %c17_249], %272 {strides = array<i32>} : memref<4x290xf32, #tpu.memory_space<vmem>>, vector<4x256xf32>,
    %c0_250 = arith.constant 0 : index
    %c0_251 = arith.constant 0 : index
    %274 = vector.load %arg9[%c0_250, %c0_251] : memref<4x290xf32, #tpu.memory_space<vmem>>, vector<4x256xf32>
    %cst_252 = arith.constant 0.000000e+00 : f32
    %275 = vector.broadcast %cst_252 : f32 to vector<4x256xf32>
    %276 = arith.select %22, %274, %275 : vector<4x256xi1>, vector<4x256xf32>
    %c0_253 = arith.constant 0 : index
    %c0_254 = arith.constant 0 : index
    %277 = vector.load %arg11[%c0_253, %c0_254] : memref<36x256xf32, #tpu.memory_space<vmem>>, vector<4x256xf32>
    tpu.vector_store %arg11[%c0_253, %c0_254], %276 {strides = array<i32>} : memref<36x256xf32, #tpu.memory_space<vmem>>, vector<4x256xf32>,
    %c0_255 = arith.constant 0 : index
    %c1_256 = arith.constant 1 : index
    %278 = vector.load %arg9[%c0_255, %c1_256] : memref<4x290xf32, #tpu.memory_space<vmem>>, vector<4x256xf32>
    %c4_257 = arith.constant 4 : index
    %c0_258 = arith.constant 0 : index
    %279 = vector.load %arg11[%c4_257, %c0_258] : memref<36x256xf32, #tpu.memory_space<vmem>>, vector<4x256xf32>
    tpu.vector_store %arg11[%c4_257, %c0_258], %278 {strides = array<i32>} : memref<36x256xf32, #tpu.memory_space<vmem>>, vector<4x256xf32>,
    %c0_259 = arith.constant 0 : index
    %c2_260 = arith.constant 2 : index
    %280 = vector.load %arg9[%c0_259, %c2_260] : memref<4x290xf32, #tpu.memory_space<vmem>>, vector<4x256xf32>
    %cst_261 = arith.constant 0.000000e+00 : f32
    %281 = vector.broadcast %cst_261 : f32 to vector<4x256xf32>
    %282 = arith.select %24, %280, %281 : vector<4x256xi1>, vector<4x256xf32>
    %c8_262 = arith.constant 8 : index
    %c0_263 = arith.constant 0 : index
    %283 = vector.load %arg11[%c8_262, %c0_263] : memref<36x256xf32, #tpu.memory_space<vmem>>, vector<4x256xf32>
    tpu.vector_store %arg11[%c8_262, %c0_263], %282 {strides = array<i32>} : memref<36x256xf32, #tpu.memory_space<vmem>>, vector<4x256xf32>,
    %c0_264 = arith.constant 0 : index
    %c16_265 = arith.constant 16 : index
    %284 = vector.load %arg9[%c0_264, %c16_265] : memref<4x290xf32, #tpu.memory_space<vmem>>, vector<4x256xf32>
    %cst_266 = arith.constant 0.000000e+00 : f32
    %285 = vector.broadcast %cst_266 : f32 to vector<4x256xf32>
    %286 = arith.select %22, %284, %285 : vector<4x256xi1>, vector<4x256xf32>
    %c12_267 = arith.constant 12 : index
    %c0_268 = arith.constant 0 : index
    %287 = vector.load %arg11[%c12_267, %c0_268] : memref<36x256xf32, #tpu.memory_space<vmem>>, vector<4x256xf32>
    tpu.vector_store %arg11[%c12_267, %c0_268], %286 {strides = array<i32>} : memref<36x256xf32, #tpu.memory_space<vmem>>, vector<4x256xf32>,
    %c0_269 = arith.constant 0 : index
    %c17_270 = arith.constant 17 : index
    %288 = vector.load %arg9[%c0_269, %c17_270] : memref<4x290xf32, #tpu.memory_space<vmem>>, vector<4x256xf32>
    %c16_271 = arith.constant 16 : index
    %c0_272 = arith.constant 0 : index
    %289 = vector.load %arg11[%c16_271, %c0_272] : memref<36x256xf32, #tpu.memory_space<vmem>>, vector<4x256xf32>
    tpu.vector_store %arg11[%c16_271, %c0_272], %288 {strides = array<i32>} : memref<36x256xf32, #tpu.memory_space<vmem>>, vector<4x256xf32>,
    %c0_273 = arith.constant 0 : index
    %c18_274 = arith.constant 18 : index
    %290 = vector.load %arg9[%c0_273, %c18_274] : memref<4x290xf32, #tpu.memory_space<vmem>>, vector<4x256xf32>
    %cst_275 = arith.constant 0.000000e+00 : f32
    %291 = vector.broadcast %cst_275 : f32 to vector<4x256xf32>
    %292 = arith.select %24, %290, %291 : vector<4x256xi1>, vector<4x256xf32>
    %c20_276 = arith.constant 20 : index
    %c0_277 = arith.constant 0 : index
    %293 = vector.load %arg11[%c20_276, %c0_277] : memref<36x256xf32, #tpu.memory_space<vmem>>, vector<4x256xf32>
    tpu.vector_store %arg11[%c20_276, %c0_277], %292 {strides = array<i32>} : memref<36x256xf32, #tpu.memory_space<vmem>>, vector<4x256xf32>,
    %c0_278 = arith.constant 0 : index
    %c32_279 = arith.constant 32 : index
    %294 = vector.load %arg9[%c0_278, %c32_279] : memref<4x290xf32, #tpu.memory_space<vmem>>, vector<4x256xf32>
    %cst_280 = arith.constant 0.000000e+00 : f32
    %295 = vector.broadcast %cst_280 : f32 to vector<4x256xf32>
    %296 = arith.select %22, %294, %295 : vector<4x256xi1>, vector<4x256xf32>
    %c24_281 = arith.constant 24 : index
    %c0_282 = arith.constant 0 : index
    %297 = vector.load %arg11[%c24_281, %c0_282] : memref<36x256xf32, #tpu.memory_space<vmem>>, vector<4x256xf32>
    tpu.vector_store %arg11[%c24_281, %c0_282], %296 {strides = array<i32>} : memref<36x256xf32, #tpu.memory_space<vmem>>, vector<4x256xf32>,
    %c0_283 = arith.constant 0 : index
    %c33_284 = arith.constant 33 : index
    %298 = vector.load %arg9[%c0_283, %c33_284] : memref<4x290xf32, #tpu.memory_space<vmem>>, vector<4x256xf32>
    %c28_285 = arith.constant 28 : index
    %c0_286 = arith.constant 0 : index
    %299 = vector.load %arg11[%c28_285, %c0_286] : memref<36x256xf32, #tpu.memory_space<vmem>>, vector<4x256xf32>
    tpu.vector_store %arg11[%c28_285, %c0_286], %298 {strides = array<i32>} : memref<36x256xf32, #tpu.memory_space<vmem>>, vector<4x256xf32>,
    %c0_287 = arith.constant 0 : index
    %c34_288 = arith.constant 34 : index
    %300 = vector.load %arg9[%c0_287, %c34_288] : memref<4x290xf32, #tpu.memory_space<vmem>>, vector<4x256xf32>
    %cst_289 = arith.constant 0.000000e+00 : f32
    %301 = vector.broadcast %cst_289 : f32 to vector<4x256xf32>
    %302 = arith.select %24, %300, %301 : vector<4x256xi1>, vector<4x256xf32>
    %c32_290 = arith.constant 32 : index
    %c0_291 = arith.constant 0 : index
    %303 = vector.load %arg11[%c32_290, %c0_291] : memref<36x256xf32, #tpu.memory_space<vmem>>, vector<4x256xf32>
    tpu.vector_store %arg11[%c32_290, %c0_291], %302 {strides = array<i32>} : memref<36x256xf32, #tpu.memory_space<vmem>>, vector<4x256xf32>,
    %c0_292 = arith.constant 0 : index
    %c0_293 = arith.constant 0 : index
    %304 = vector.load %arg2[%c0_292, %c0_293] : memref<8x36xf32, #tpu.memory_space<vmem>>, vector<8x36xf32>
    %c0_294 = arith.constant 0 : index
    %c0_295 = arith.constant 0 : index
    %305 = vector.load %arg11[%c0_294, %c0_295] : memref<36x256xf32, #tpu.memory_space<vmem>>, vector<36x256xf32>
    %cst_296 = arith.constant dense<0.000000e+00> : vector<8x256xf32>
    %306 = tpu.matmul %304, %305, %cst_296 {dimension_numbers = #tpu.dot_dimension_numbers<[1], [0], [0], [1], [0, 0, 1, 1], [], []>} : vector<8x36xf32>, vector<36x256xf32>, vector<8x256xf32> -> vector<8x256xf32>
    %c0_297 = arith.constant 0 : index
    %c0_298 = arith.constant 0 : index
    %307 = vector.load %arg3[%c0_297, %c0_298] : memref<8x1xf32, #tpu.memory_space<vmem>>, vector<8x1xf32>
    %308 = vector.broadcast %307 : vector<8x1xf32> to vector<8x256xf32>
    %309 = arith.addf %306, %308 : vector<8x256xf32>
    %310 = vector.shape_cast %309 : vector<8x256xf32> to vector<1x8x256xf32>
    %cst_299 = arith.constant dense<0xFF800000> : vector<1xf32>
    %311 = vector.multi_reduction <maximumf>, %310, %cst_299 [1, 2] : vector<1x8x256xf32> to vector<1xf32>
    %312 = vector.shape_cast %311 : vector<1xf32> to vector<1x1x1xf32>
    %313 = vector.extract %312[0, 0, 0] : f32 from vector<1x1x1xf32>
    %314 = vector.broadcast %313 : f32 to vector<1x1xf32>
    %315 = vector.shape_cast %309 : vector<8x256xf32> to vector<1x8x256xf32>
    %cst_300 = arith.constant dense<0x7F800000> : vector<1xf32>
    %316 = vector.multi_reduction <minimumf>, %315, %cst_300 [1, 2] : vector<1x8x256xf32> to vector<1xf32>
    %317 = vector.shape_cast %316 : vector<1xf32> to vector<1x1x1xf32>
    %318 = vector.extract %317[0, 0, 0] : f32 from vector<1x1x1xf32>
    %319 = vector.broadcast %318 : f32 to vector<1x1xf32>
    %cst_301 = arith.constant 0.000000e+00 : f32
    %320 = vector.broadcast %cst_301 : f32 to vector<8x256xf32>
    %321 = arith.maximumf %309, %320 : vector<8x256xf32>
    %c0_302 = arith.constant 0 : index
    %c17_303 = arith.constant 17 : index
    %322 = vector.load %arg10[%c0_302, %c17_303] : memref<8x290xf32, #tpu.memory_space<vmem>>, vector<8x256xf32>
    tpu.vector_store %arg10[%c0_302, %c17_303], %321 {strides = array<i32>} : memref<8x290xf32, #tpu.memory_space<vmem>>, vector<8x256xf32>,
    %c0_304 = arith.constant 0 : index
    %c0_305 = arith.constant 0 : index
    %323 = vector.load %arg10[%c0_304, %c0_305] : memref<8x290xf32, #tpu.memory_space<vmem>>, vector<8x256xf32>
    %cst_306 = arith.constant 0.000000e+00 : f32
    %324 = vector.broadcast %cst_306 : f32 to vector<8x256xf32>
    %325 = arith.select %26, %323, %324 : vector<8x256xi1>, vector<8x256xf32>
    %c0_307 = arith.constant 0 : index
    %c0_308 = arith.constant 0 : index
    %326 = vector.load %arg12[%c0_307, %c0_308] : memref<72x256xf32, #tpu.memory_space<vmem>>, vector<8x256xf32>
    tpu.vector_store %arg12[%c0_307, %c0_308], %325 {strides = array<i32>} : memref<72x256xf32, #tpu.memory_space<vmem>>, vector<8x256xf32>,
    %c0_309 = arith.constant 0 : index
    %c1_310 = arith.constant 1 : index
    %327 = vector.load %arg10[%c0_309, %c1_310] : memref<8x290xf32, #tpu.memory_space<vmem>>, vector<8x256xf32>
    %c8_311 = arith.constant 8 : index
    %c0_312 = arith.constant 0 : index
    %328 = vector.load %arg12[%c8_311, %c0_312] : memref<72x256xf32, #tpu.memory_space<vmem>>, vector<8x256xf32>
    tpu.vector_store %arg12[%c8_311, %c0_312], %327 {strides = array<i32>} : memref<72x256xf32, #tpu.memory_space<vmem>>, vector<8x256xf32>,
    %c0_313 = arith.constant 0 : index
    %c2_314 = arith.constant 2 : index
    %329 = vector.load %arg10[%c0_313, %c2_314] : memref<8x290xf32, #tpu.memory_space<vmem>>, vector<8x256xf32>
    %cst_315 = arith.constant 0.000000e+00 : f32
    %330 = vector.broadcast %cst_315 : f32 to vector<8x256xf32>
    %331 = arith.select %28, %329, %330 : vector<8x256xi1>, vector<8x256xf32>
    %c16_316 = arith.constant 16 : index
    %c0_317 = arith.constant 0 : index
    %332 = vector.load %arg12[%c16_316, %c0_317] : memref<72x256xf32, #tpu.memory_space<vmem>>, vector<8x256xf32>
    tpu.vector_store %arg12[%c16_316, %c0_317], %331 {strides = array<i32>} : memref<72x256xf32, #tpu.memory_space<vmem>>, vector<8x256xf32>,
    %c0_318 = arith.constant 0 : index
    %c16_319 = arith.constant 16 : index
    %333 = vector.load %arg10[%c0_318, %c16_319] : memref<8x290xf32, #tpu.memory_space<vmem>>, vector<8x256xf32>
    %cst_320 = arith.constant 0.000000e+00 : f32
    %334 = vector.broadcast %cst_320 : f32 to vector<8x256xf32>
    %335 = arith.select %26, %333, %334 : vector<8x256xi1>, vector<8x256xf32>
    %c24_321 = arith.constant 24 : index
    %c0_322 = arith.constant 0 : index
    %336 = vector.load %arg12[%c24_321, %c0_322] : memref<72x256xf32, #tpu.memory_space<vmem>>, vector<8x256xf32>
    tpu.vector_store %arg12[%c24_321, %c0_322], %335 {strides = array<i32>} : memref<72x256xf32, #tpu.memory_space<vmem>>, vector<8x256xf32>,
    %c0_323 = arith.constant 0 : index
    %c17_324 = arith.constant 17 : index
    %337 = vector.load %arg10[%c0_323, %c17_324] : memref<8x290xf32, #tpu.memory_space<vmem>>, vector<8x256xf32>
    %c32_325 = arith.constant 32 : index
    %c0_326 = arith.constant 0 : index
    %338 = vector.load %arg12[%c32_325, %c0_326] : memref<72x256xf32, #tpu.memory_space<vmem>>, vector<8x256xf32>
    tpu.vector_store %arg12[%c32_325, %c0_326], %337 {strides = array<i32>} : memref<72x256xf32, #tpu.memory_space<vmem>>, vector<8x256xf32>,
    %c0_327 = arith.constant 0 : index
    %c18_328 = arith.constant 18 : index
    %339 = vector.load %arg10[%c0_327, %c18_328] : memref<8x290xf32, #tpu.memory_space<vmem>>, vector<8x256xf32>
    %cst_329 = arith.constant 0.000000e+00 : f32
    %340 = vector.broadcast %cst_329 : f32 to vector<8x256xf32>
    %341 = arith.select %28, %339, %340 : vector<8x256xi1>, vector<8x256xf32>
    %c40_330 = arith.constant 40 : index
    %c0_331 = arith.constant 0 : index
    %342 = vector.load %arg12[%c40_330, %c0_331] : memref<72x256xf32, #tpu.memory_space<vmem>>, vector<8x256xf32>
    tpu.vector_store %arg12[%c40_330, %c0_331], %341 {strides = array<i32>} : memref<72x256xf32, #tpu.memory_space<vmem>>, vector<8x256xf32>,
    %c0_332 = arith.constant 0 : index
    %c32_333 = arith.constant 32 : index
    %343 = vector.load %arg10[%c0_332, %c32_333] : memref<8x290xf32, #tpu.memory_space<vmem>>, vector<8x256xf32>
    %cst_334 = arith.constant 0.000000e+00 : f32
    %344 = vector.broadcast %cst_334 : f32 to vector<8x256xf32>
    %345 = arith.select %26, %343, %344 : vector<8x256xi1>, vector<8x256xf32>
    %c48_335 = arith.constant 48 : index
    %c0_336 = arith.constant 0 : index
    %346 = vector.load %arg12[%c48_335, %c0_336] : memref<72x256xf32, #tpu.memory_space<vmem>>, vector<8x256xf32>
    tpu.vector_store %arg12[%c48_335, %c0_336], %345 {strides = array<i32>} : memref<72x256xf32, #tpu.memory_space<vmem>>, vector<8x256xf32>,
    %c0_337 = arith.constant 0 : index
    %c33_338 = arith.constant 33 : index
    %347 = vector.load %arg10[%c0_337, %c33_338] : memref<8x290xf32, #tpu.memory_space<vmem>>, vector<8x256xf32>
    %c56_339 = arith.constant 56 : index
    %c0_340 = arith.constant 0 : index
    %348 = vector.load %arg12[%c56_339, %c0_340] : memref<72x256xf32, #tpu.memory_space<vmem>>, vector<8x256xf32>
    tpu.vector_store %arg12[%c56_339, %c0_340], %347 {strides = array<i32>} : memref<72x256xf32, #tpu.memory_space<vmem>>, vector<8x256xf32>,
    %c0_341 = arith.constant 0 : index
    %c34_342 = arith.constant 34 : index
    %349 = vector.load %arg10[%c0_341, %c34_342] : memref<8x290xf32, #tpu.memory_space<vmem>>, vector<8x256xf32>
    %cst_343 = arith.constant 0.000000e+00 : f32
    %350 = vector.broadcast %cst_343 : f32 to vector<8x256xf32>
    %351 = arith.select %28, %349, %350 : vector<8x256xi1>, vector<8x256xf32>
    %c64_344 = arith.constant 64 : index
    %c0_345 = arith.constant 0 : index
    %352 = vector.load %arg12[%c64_344, %c0_345] : memref<72x256xf32, #tpu.memory_space<vmem>>, vector<8x256xf32>
    tpu.vector_store %arg12[%c64_344, %c0_345], %351 {strides = array<i32>} : memref<72x256xf32, #tpu.memory_space<vmem>>, vector<8x256xf32>,
    %c0_346 = arith.constant 0 : index
    %c0_347 = arith.constant 0 : index
    %353 = vector.load %arg4[%c0_346, %c0_347] : memref<8x72xf32, #tpu.memory_space<vmem>>, vector<8x72xf32>
    %c0_348 = arith.constant 0 : index
    %c0_349 = arith.constant 0 : index
    %354 = vector.load %arg12[%c0_348, %c0_349] : memref<72x256xf32, #tpu.memory_space<vmem>>, vector<72x256xf32>
    %cst_350 = arith.constant dense<0.000000e+00> : vector<8x256xf32>
    %355 = tpu.matmul %353, %354, %cst_350 {dimension_numbers = #tpu.dot_dimension_numbers<[1], [0], [0], [1], [0, 0, 1, 1], [], []>} : vector<8x72xf32>, vector<72x256xf32>, vector<8x256xf32> -> vector<8x256xf32>
    %c0_351 = arith.constant 0 : index
    %c0_352 = arith.constant 0 : index
    %356 = vector.load %arg5[%c0_351, %c0_352] : memref<8x1xf32, #tpu.memory_space<vmem>>, vector<8x1xf32>
    %357 = vector.broadcast %356 : vector<8x1xf32> to vector<8x256xf32>
    %358 = arith.addf %355, %357 : vector<8x256xf32>
    %359 = vector.shape_cast %358 : vector<8x256xf32> to vector<1x8x256xf32>
    %cst_353 = arith.constant dense<0xFF800000> : vector<1xf32>
    %360 = vector.multi_reduction <maximumf>, %359, %cst_353 [1, 2] : vector<1x8x256xf32> to vector<1xf32>
    %361 = vector.shape_cast %360 : vector<1xf32> to vector<1x1x1xf32>
    %362 = vector.extract %361[0, 0, 0] : f32 from vector<1x1x1xf32>
    %363 = vector.broadcast %362 : f32 to vector<1x1xf32>
    %364 = vector.shape_cast %358 : vector<8x256xf32> to vector<1x8x256xf32>
    %cst_354 = arith.constant dense<0x7F800000> : vector<1xf32>
    %365 = vector.multi_reduction <minimumf>, %364, %cst_354 [1, 2] : vector<1x8x256xf32> to vector<1xf32>
    %366 = vector.shape_cast %365 : vector<1xf32> to vector<1x1x1xf32>
    %367 = vector.extract %366[0, 0, 0] : f32 from vector<1x1x1xf32>
    %368 = vector.broadcast %367 : f32 to vector<1x1xf32>
    %cst_355 = arith.constant 0.000000e+00 : f32
    %369 = vector.broadcast %cst_355 : f32 to vector<8x256xf32>
    %370 = arith.maximumf %358, %369 : vector<8x256xf32>
    %371 = vector.extract_strided_slice %370 {offsets = [0, 0], sizes = [1, 256], strides = [1, 1]} : vector<8x256xf32> to vector<1x256xf32>
    %c2_356 = arith.constant 2 : index
    %c0_357 = arith.constant 0 : index
    %372 = vector.load %arg13[%c2_356, %c0_357] : memref<4x2048xf32, #tpu.memory_space<vmem>>, vector<1x256xf32>
    tpu.vector_store %arg13[%c2_356, %c0_357], %371 {strides = array<i32>} : memref<4x2048xf32, #tpu.memory_space<vmem>>, vector<1x256xf32>,
    %373 = vector.extract_strided_slice %370 {offsets = [1, 0], sizes = [1, 256], strides = [1, 1]} : vector<8x256xf32> to vector<1x256xf32>
    %c2_358 = arith.constant 2 : index
    %c256_359 = arith.constant 256 : index
    %374 = vector.load %arg13[%c2_358, %c256_359] : memref<4x2048xf32, #tpu.memory_space<vmem>>, vector<1x256xf32>
    tpu.vector_store %arg13[%c2_358, %c256_359], %373 {strides = array<i32>} : memref<4x2048xf32, #tpu.memory_space<vmem>>, vector<1x256xf32>,
    %375 = vector.extract_strided_slice %370 {offsets = [2, 0], sizes = [1, 256], strides = [1, 1]} : vector<8x256xf32> to vector<1x256xf32>
    %c2_360 = arith.constant 2 : index
    %c512_361 = arith.constant 512 : index
    %376 = vector.load %arg13[%c2_360, %c512_361] : memref<4x2048xf32, #tpu.memory_space<vmem>>, vector<1x256xf32>
    tpu.vector_store %arg13[%c2_360, %c512_361], %375 {strides = array<i32>} : memref<4x2048xf32, #tpu.memory_space<vmem>>, vector<1x256xf32>,
    %377 = vector.extract_strided_slice %370 {offsets = [3, 0], sizes = [1, 256], strides = [1, 1]} : vector<8x256xf32> to vector<1x256xf32>
    %c2_362 = arith.constant 2 : index
    %c768_363 = arith.constant 768 : index
    %378 = vector.load %arg13[%c2_362, %c768_363] : memref<4x2048xf32, #tpu.memory_space<vmem>>, vector<1x256xf32>
    tpu.vector_store %arg13[%c2_362, %c768_363], %377 {strides = array<i32>} : memref<4x2048xf32, #tpu.memory_space<vmem>>, vector<1x256xf32>,
    %379 = vector.extract_strided_slice %370 {offsets = [4, 0], sizes = [1, 256], strides = [1, 1]} : vector<8x256xf32> to vector<1x256xf32>
    %c2_364 = arith.constant 2 : index
    %c1024_365 = arith.constant 1024 : index
    %380 = vector.load %arg13[%c2_364, %c1024_365] : memref<4x2048xf32, #tpu.memory_space<vmem>>, vector<1x256xf32>
    tpu.vector_store %arg13[%c2_364, %c1024_365], %379 {strides = array<i32>} : memref<4x2048xf32, #tpu.memory_space<vmem>>, vector<1x256xf32>,
    %381 = vector.extract_strided_slice %370 {offsets = [5, 0], sizes = [1, 256], strides = [1, 1]} : vector<8x256xf32> to vector<1x256xf32>
    %c2_366 = arith.constant 2 : index
    %c1280_367 = arith.constant 1280 : index
    %382 = vector.load %arg13[%c2_366, %c1280_367] : memref<4x2048xf32, #tpu.memory_space<vmem>>, vector<1x256xf32>
    tpu.vector_store %arg13[%c2_366, %c1280_367], %381 {strides = array<i32>} : memref<4x2048xf32, #tpu.memory_space<vmem>>, vector<1x256xf32>,
    %383 = vector.extract_strided_slice %370 {offsets = [6, 0], sizes = [1, 256], strides = [1, 1]} : vector<8x256xf32> to vector<1x256xf32>
    %c2_368 = arith.constant 2 : index
    %c1536_369 = arith.constant 1536 : index
    %384 = vector.load %arg13[%c2_368, %c1536_369] : memref<4x2048xf32, #tpu.memory_space<vmem>>, vector<1x256xf32>
    tpu.vector_store %arg13[%c2_368, %c1536_369], %383 {strides = array<i32>} : memref<4x2048xf32, #tpu.memory_space<vmem>>, vector<1x256xf32>,
    %385 = vector.extract_strided_slice %370 {offsets = [7, 0], sizes = [1, 256], strides = [1, 1]} : vector<8x256xf32> to vector<1x256xf32>
    %c2_370 = arith.constant 2 : index
    %c1792_371 = arith.constant 1792 : index
    %386 = vector.load %arg13[%c2_370, %c1792_371] : memref<4x2048xf32, #tpu.memory_space<vmem>>, vector<1x256xf32>
    tpu.vector_store %arg13[%c2_370, %c1792_371], %385 {strides = array<i32>} : memref<4x2048xf32, #tpu.memory_space<vmem>>, vector<1x256xf32>,
    %387 = tpu.concatenate %314, %319, %363, %368 in 1 : vector<1x1xf32>, vector<1x1xf32>, vector<1x1xf32>, vector<1x1xf32> -> vector<1x4xf32>
    %c0_372 = arith.constant 0 : index
    %c3 = arith.constant 3 : index
    %c0_373 = arith.constant 0 : index
    %c0_374 = arith.constant 0 : index
    %388 = vector.load %arg1[%c0_372, %c3, %c0_373, %c0_374] : memref<1x4x4x256xf32, #tpu.memory_space<vmem>>, vector<1x1x4x256xf32>
    %389 = vector.shape_cast %388 : vector<1x1x4x256xf32> to vector<4x256xf32>
    %c0_375 = arith.constant 0 : index
    %c17_376 = arith.constant 17 : index
    %390 = vector.load %arg9[%c0_375, %c17_376] : memref<4x290xf32, #tpu.memory_space<vmem>>, vector<4x256xf32>
    tpu.vector_store %arg9[%c0_375, %c17_376], %389 {strides = array<i32>} : memref<4x290xf32, #tpu.memory_space<vmem>>, vector<4x256xf32>,
    %c0_377 = arith.constant 0 : index
    %c0_378 = arith.constant 0 : index
    %391 = vector.load %arg9[%c0_377, %c0_378] : memref<4x290xf32, #tpu.memory_space<vmem>>, vector<4x256xf32>
    %cst_379 = arith.constant 0.000000e+00 : f32
    %392 = vector.broadcast %cst_379 : f32 to vector<4x256xf32>
    %393 = arith.select %22, %391, %392 : vector<4x256xi1>, vector<4x256xf32>
    %c0_380 = arith.constant 0 : index
    %c0_381 = arith.constant 0 : index
    %394 = vector.load %arg11[%c0_380, %c0_381] : memref<36x256xf32, #tpu.memory_space<vmem>>, vector<4x256xf32>
    tpu.vector_store %arg11[%c0_380, %c0_381], %393 {strides = array<i32>} : memref<36x256xf32, #tpu.memory_space<vmem>>, vector<4x256xf32>,
    %c0_382 = arith.constant 0 : index
    %c1_383 = arith.constant 1 : index
    %395 = vector.load %arg9[%c0_382, %c1_383] : memref<4x290xf32, #tpu.memory_space<vmem>>, vector<4x256xf32>
    %c4_384 = arith.constant 4 : index
    %c0_385 = arith.constant 0 : index
    %396 = vector.load %arg11[%c4_384, %c0_385] : memref<36x256xf32, #tpu.memory_space<vmem>>, vector<4x256xf32>
    tpu.vector_store %arg11[%c4_384, %c0_385], %395 {strides = array<i32>} : memref<36x256xf32, #tpu.memory_space<vmem>>, vector<4x256xf32>,
    %c0_386 = arith.constant 0 : index
    %c2_387 = arith.constant 2 : index
    %397 = vector.load %arg9[%c0_386, %c2_387] : memref<4x290xf32, #tpu.memory_space<vmem>>, vector<4x256xf32>
    %cst_388 = arith.constant 0.000000e+00 : f32
    %398 = vector.broadcast %cst_388 : f32 to vector<4x256xf32>
    %399 = arith.select %24, %397, %398 : vector<4x256xi1>, vector<4x256xf32>
    %c8_389 = arith.constant 8 : index
    %c0_390 = arith.constant 0 : index
    %400 = vector.load %arg11[%c8_389, %c0_390] : memref<36x256xf32, #tpu.memory_space<vmem>>, vector<4x256xf32>
    tpu.vector_store %arg11[%c8_389, %c0_390], %399 {strides = array<i32>} : memref<36x256xf32, #tpu.memory_space<vmem>>, vector<4x256xf32>,
    %c0_391 = arith.constant 0 : index
    %c16_392 = arith.constant 16 : index
    %401 = vector.load %arg9[%c0_391, %c16_392] : memref<4x290xf32, #tpu.memory_space<vmem>>, vector<4x256xf32>
    %cst_393 = arith.constant 0.000000e+00 : f32
    %402 = vector.broadcast %cst_393 : f32 to vector<4x256xf32>
    %403 = arith.select %22, %401, %402 : vector<4x256xi1>, vector<4x256xf32>
    %c12_394 = arith.constant 12 : index
    %c0_395 = arith.constant 0 : index
    %404 = vector.load %arg11[%c12_394, %c0_395] : memref<36x256xf32, #tpu.memory_space<vmem>>, vector<4x256xf32>
    tpu.vector_store %arg11[%c12_394, %c0_395], %403 {strides = array<i32>} : memref<36x256xf32, #tpu.memory_space<vmem>>, vector<4x256xf32>,
    %c0_396 = arith.constant 0 : index
    %c17_397 = arith.constant 17 : index
    %405 = vector.load %arg9[%c0_396, %c17_397] : memref<4x290xf32, #tpu.memory_space<vmem>>, vector<4x256xf32>
    %c16_398 = arith.constant 16 : index
    %c0_399 = arith.constant 0 : index
    %406 = vector.load %arg11[%c16_398, %c0_399] : memref<36x256xf32, #tpu.memory_space<vmem>>, vector<4x256xf32>
    tpu.vector_store %arg11[%c16_398, %c0_399], %405 {strides = array<i32>} : memref<36x256xf32, #tpu.memory_space<vmem>>, vector<4x256xf32>,
    %c0_400 = arith.constant 0 : index
    %c18_401 = arith.constant 18 : index
    %407 = vector.load %arg9[%c0_400, %c18_401] : memref<4x290xf32, #tpu.memory_space<vmem>>, vector<4x256xf32>
    %cst_402 = arith.constant 0.000000e+00 : f32
    %408 = vector.broadcast %cst_402 : f32 to vector<4x256xf32>
    %409 = arith.select %24, %407, %408 : vector<4x256xi1>, vector<4x256xf32>
    %c20_403 = arith.constant 20 : index
    %c0_404 = arith.constant 0 : index
    %410 = vector.load %arg11[%c20_403, %c0_404] : memref<36x256xf32, #tpu.memory_space<vmem>>, vector<4x256xf32>
    tpu.vector_store %arg11[%c20_403, %c0_404], %409 {strides = array<i32>} : memref<36x256xf32, #tpu.memory_space<vmem>>, vector<4x256xf32>,
    %c0_405 = arith.constant 0 : index
    %c32_406 = arith.constant 32 : index
    %411 = vector.load %arg9[%c0_405, %c32_406] : memref<4x290xf32, #tpu.memory_space<vmem>>, vector<4x256xf32>
    %cst_407 = arith.constant 0.000000e+00 : f32
    %412 = vector.broadcast %cst_407 : f32 to vector<4x256xf32>
    %413 = arith.select %22, %411, %412 : vector<4x256xi1>, vector<4x256xf32>
    %c24_408 = arith.constant 24 : index
    %c0_409 = arith.constant 0 : index
    %414 = vector.load %arg11[%c24_408, %c0_409] : memref<36x256xf32, #tpu.memory_space<vmem>>, vector<4x256xf32>
    tpu.vector_store %arg11[%c24_408, %c0_409], %413 {strides = array<i32>} : memref<36x256xf32, #tpu.memory_space<vmem>>, vector<4x256xf32>,
    %c0_410 = arith.constant 0 : index
    %c33_411 = arith.constant 33 : index
    %415 = vector.load %arg9[%c0_410, %c33_411] : memref<4x290xf32, #tpu.memory_space<vmem>>, vector<4x256xf32>
    %c28_412 = arith.constant 28 : index
    %c0_413 = arith.constant 0 : index
    %416 = vector.load %arg11[%c28_412, %c0_413] : memref<36x256xf32, #tpu.memory_space<vmem>>, vector<4x256xf32>
    tpu.vector_store %arg11[%c28_412, %c0_413], %415 {strides = array<i32>} : memref<36x256xf32, #tpu.memory_space<vmem>>, vector<4x256xf32>,
    %c0_414 = arith.constant 0 : index
    %c34_415 = arith.constant 34 : index
    %417 = vector.load %arg9[%c0_414, %c34_415] : memref<4x290xf32, #tpu.memory_space<vmem>>, vector<4x256xf32>
    %cst_416 = arith.constant 0.000000e+00 : f32
    %418 = vector.broadcast %cst_416 : f32 to vector<4x256xf32>
    %419 = arith.select %24, %417, %418 : vector<4x256xi1>, vector<4x256xf32>
    %c32_417 = arith.constant 32 : index
    %c0_418 = arith.constant 0 : index
    %420 = vector.load %arg11[%c32_417, %c0_418] : memref<36x256xf32, #tpu.memory_space<vmem>>, vector<4x256xf32>
    tpu.vector_store %arg11[%c32_417, %c0_418], %419 {strides = array<i32>} : memref<36x256xf32, #tpu.memory_space<vmem>>, vector<4x256xf32>,
    %c0_419 = arith.constant 0 : index
    %c0_420 = arith.constant 0 : index
    %421 = vector.load %arg2[%c0_419, %c0_420] : memref<8x36xf32, #tpu.memory_space<vmem>>, vector<8x36xf32>
    %c0_421 = arith.constant 0 : index
    %c0_422 = arith.constant 0 : index
    %422 = vector.load %arg11[%c0_421, %c0_422] : memref<36x256xf32, #tpu.memory_space<vmem>>, vector<36x256xf32>
    %cst_423 = arith.constant dense<0.000000e+00> : vector<8x256xf32>
    %423 = tpu.matmul %421, %422, %cst_423 {dimension_numbers = #tpu.dot_dimension_numbers<[1], [0], [0], [1], [0, 0, 1, 1], [], []>} : vector<8x36xf32>, vector<36x256xf32>, vector<8x256xf32> -> vector<8x256xf32>
    %c0_424 = arith.constant 0 : index
    %c0_425 = arith.constant 0 : index
    %424 = vector.load %arg3[%c0_424, %c0_425] : memref<8x1xf32, #tpu.memory_space<vmem>>, vector<8x1xf32>
    %425 = vector.broadcast %424 : vector<8x1xf32> to vector<8x256xf32>
    %426 = arith.addf %423, %425 : vector<8x256xf32>
    %427 = vector.shape_cast %426 : vector<8x256xf32> to vector<1x8x256xf32>
    %cst_426 = arith.constant dense<0xFF800000> : vector<1xf32>
    %428 = vector.multi_reduction <maximumf>, %427, %cst_426 [1, 2] : vector<1x8x256xf32> to vector<1xf32>
    %429 = vector.shape_cast %428 : vector<1xf32> to vector<1x1x1xf32>
    %430 = vector.extract %429[0, 0, 0] : f32 from vector<1x1x1xf32>
    %431 = vector.broadcast %430 : f32 to vector<1x1xf32>
    %432 = vector.shape_cast %426 : vector<8x256xf32> to vector<1x8x256xf32>
    %cst_427 = arith.constant dense<0x7F800000> : vector<1xf32>
    %433 = vector.multi_reduction <minimumf>, %432, %cst_427 [1, 2] : vector<1x8x256xf32> to vector<1xf32>
    %434 = vector.shape_cast %433 : vector<1xf32> to vector<1x1x1xf32>
    %435 = vector.extract %434[0, 0, 0] : f32 from vector<1x1x1xf32>
    %436 = vector.broadcast %435 : f32 to vector<1x1xf32>
    %cst_428 = arith.constant 0.000000e+00 : f32
    %437 = vector.broadcast %cst_428 : f32 to vector<8x256xf32>
    %438 = arith.maximumf %426, %437 : vector<8x256xf32>
    %c0_429 = arith.constant 0 : index
    %c17_430 = arith.constant 17 : index
    %439 = vector.load %arg10[%c0_429, %c17_430] : memref<8x290xf32, #tpu.memory_space<vmem>>, vector<8x256xf32>
    tpu.vector_store %arg10[%c0_429, %c17_430], %438 {strides = array<i32>} : memref<8x290xf32, #tpu.memory_space<vmem>>, vector<8x256xf32>,
    %c0_431 = arith.constant 0 : index
    %c0_432 = arith.constant 0 : index
    %440 = vector.load %arg10[%c0_431, %c0_432] : memref<8x290xf32, #tpu.memory_space<vmem>>, vector<8x256xf32>
    %cst_433 = arith.constant 0.000000e+00 : f32
    %441 = vector.broadcast %cst_433 : f32 to vector<8x256xf32>
    %442 = arith.select %26, %440, %441 : vector<8x256xi1>, vector<8x256xf32>
    %c0_434 = arith.constant 0 : index
    %c0_435 = arith.constant 0 : index
    %443 = vector.load %arg12[%c0_434, %c0_435] : memref<72x256xf32, #tpu.memory_space<vmem>>, vector<8x256xf32>
    tpu.vector_store %arg12[%c0_434, %c0_435], %442 {strides = array<i32>} : memref<72x256xf32, #tpu.memory_space<vmem>>, vector<8x256xf32>,
    %c0_436 = arith.constant 0 : index
    %c1_437 = arith.constant 1 : index
    %444 = vector.load %arg10[%c0_436, %c1_437] : memref<8x290xf32, #tpu.memory_space<vmem>>, vector<8x256xf32>
    %c8_438 = arith.constant 8 : index
    %c0_439 = arith.constant 0 : index
    %445 = vector.load %arg12[%c8_438, %c0_439] : memref<72x256xf32, #tpu.memory_space<vmem>>, vector<8x256xf32>
    tpu.vector_store %arg12[%c8_438, %c0_439], %444 {strides = array<i32>} : memref<72x256xf32, #tpu.memory_space<vmem>>, vector<8x256xf32>,
    %c0_440 = arith.constant 0 : index
    %c2_441 = arith.constant 2 : index
    %446 = vector.load %arg10[%c0_440, %c2_441] : memref<8x290xf32, #tpu.memory_space<vmem>>, vector<8x256xf32>
    %cst_442 = arith.constant 0.000000e+00 : f32
    %447 = vector.broadcast %cst_442 : f32 to vector<8x256xf32>
    %448 = arith.select %28, %446, %447 : vector<8x256xi1>, vector<8x256xf32>
    %c16_443 = arith.constant 16 : index
    %c0_444 = arith.constant 0 : index
    %449 = vector.load %arg12[%c16_443, %c0_444] : memref<72x256xf32, #tpu.memory_space<vmem>>, vector<8x256xf32>
    tpu.vector_store %arg12[%c16_443, %c0_444], %448 {strides = array<i32>} : memref<72x256xf32, #tpu.memory_space<vmem>>, vector<8x256xf32>,
    %c0_445 = arith.constant 0 : index
    %c16_446 = arith.constant 16 : index
    %450 = vector.load %arg10[%c0_445, %c16_446] : memref<8x290xf32, #tpu.memory_space<vmem>>, vector<8x256xf32>
    %cst_447 = arith.constant 0.000000e+00 : f32
    %451 = vector.broadcast %cst_447 : f32 to vector<8x256xf32>
    %452 = arith.select %26, %450, %451 : vector<8x256xi1>, vector<8x256xf32>
    %c24_448 = arith.constant 24 : index
    %c0_449 = arith.constant 0 : index
    %453 = vector.load %arg12[%c24_448, %c0_449] : memref<72x256xf32, #tpu.memory_space<vmem>>, vector<8x256xf32>
    tpu.vector_store %arg12[%c24_448, %c0_449], %452 {strides = array<i32>} : memref<72x256xf32, #tpu.memory_space<vmem>>, vector<8x256xf32>,
    %c0_450 = arith.constant 0 : index
    %c17_451 = arith.constant 17 : index
    %454 = vector.load %arg10[%c0_450, %c17_451] : memref<8x290xf32, #tpu.memory_space<vmem>>, vector<8x256xf32>
    %c32_452 = arith.constant 32 : index
    %c0_453 = arith.constant 0 : index
    %455 = vector.load %arg12[%c32_452, %c0_453] : memref<72x256xf32, #tpu.memory_space<vmem>>, vector<8x256xf32>
    tpu.vector_store %arg12[%c32_452, %c0_453], %454 {strides = array<i32>} : memref<72x256xf32, #tpu.memory_space<vmem>>, vector<8x256xf32>,
    %c0_454 = arith.constant 0 : index
    %c18_455 = arith.constant 18 : index
    %456 = vector.load %arg10[%c0_454, %c18_455] : memref<8x290xf32, #tpu.memory_space<vmem>>, vector<8x256xf32>
    %cst_456 = arith.constant 0.000000e+00 : f32
    %457 = vector.broadcast %cst_456 : f32 to vector<8x256xf32>
    %458 = arith.select %28, %456, %457 : vector<8x256xi1>, vector<8x256xf32>
    %c40_457 = arith.constant 40 : index
    %c0_458 = arith.constant 0 : index
    %459 = vector.load %arg12[%c40_457, %c0_458] : memref<72x256xf32, #tpu.memory_space<vmem>>, vector<8x256xf32>
    tpu.vector_store %arg12[%c40_457, %c0_458], %458 {strides = array<i32>} : memref<72x256xf32, #tpu.memory_space<vmem>>, vector<8x256xf32>,
    %c0_459 = arith.constant 0 : index
    %c32_460 = arith.constant 32 : index
    %460 = vector.load %arg10[%c0_459, %c32_460] : memref<8x290xf32, #tpu.memory_space<vmem>>, vector<8x256xf32>
    %cst_461 = arith.constant 0.000000e+00 : f32
    %461 = vector.broadcast %cst_461 : f32 to vector<8x256xf32>
    %462 = arith.select %26, %460, %461 : vector<8x256xi1>, vector<8x256xf32>
    %c48_462 = arith.constant 48 : index
    %c0_463 = arith.constant 0 : index
    %463 = vector.load %arg12[%c48_462, %c0_463] : memref<72x256xf32, #tpu.memory_space<vmem>>, vector<8x256xf32>
    tpu.vector_store %arg12[%c48_462, %c0_463], %462 {strides = array<i32>} : memref<72x256xf32, #tpu.memory_space<vmem>>, vector<8x256xf32>,
    %c0_464 = arith.constant 0 : index
    %c33_465 = arith.constant 33 : index
    %464 = vector.load %arg10[%c0_464, %c33_465] : memref<8x290xf32, #tpu.memory_space<vmem>>, vector<8x256xf32>
    %c56_466 = arith.constant 56 : index
    %c0_467 = arith.constant 0 : index
    %465 = vector.load %arg12[%c56_466, %c0_467] : memref<72x256xf32, #tpu.memory_space<vmem>>, vector<8x256xf32>
    tpu.vector_store %arg12[%c56_466, %c0_467], %464 {strides = array<i32>} : memref<72x256xf32, #tpu.memory_space<vmem>>, vector<8x256xf32>,
    %c0_468 = arith.constant 0 : index
    %c34_469 = arith.constant 34 : index
    %466 = vector.load %arg10[%c0_468, %c34_469] : memref<8x290xf32, #tpu.memory_space<vmem>>, vector<8x256xf32>
    %cst_470 = arith.constant 0.000000e+00 : f32
    %467 = vector.broadcast %cst_470 : f32 to vector<8x256xf32>
    %468 = arith.select %28, %466, %467 : vector<8x256xi1>, vector<8x256xf32>
    %c64_471 = arith.constant 64 : index
    %c0_472 = arith.constant 0 : index
    %469 = vector.load %arg12[%c64_471, %c0_472] : memref<72x256xf32, #tpu.memory_space<vmem>>, vector<8x256xf32>
    tpu.vector_store %arg12[%c64_471, %c0_472], %468 {strides = array<i32>} : memref<72x256xf32, #tpu.memory_space<vmem>>, vector<8x256xf32>,
    %c0_473 = arith.constant 0 : index
    %c0_474 = arith.constant 0 : index
    %470 = vector.load %arg4[%c0_473, %c0_474] : memref<8x72xf32, #tpu.memory_space<vmem>>, vector<8x72xf32>
    %c0_475 = arith.constant 0 : index
    %c0_476 = arith.constant 0 : index
    %471 = vector.load %arg12[%c0_475, %c0_476] : memref<72x256xf32, #tpu.memory_space<vmem>>, vector<72x256xf32>
    %cst_477 = arith.constant dense<0.000000e+00> : vector<8x256xf32>
    %472 = tpu.matmul %470, %471, %cst_477 {dimension_numbers = #tpu.dot_dimension_numbers<[1], [0], [0], [1], [0, 0, 1, 1], [], []>} : vector<8x72xf32>, vector<72x256xf32>, vector<8x256xf32> -> vector<8x256xf32>
    %c0_478 = arith.constant 0 : index
    %c0_479 = arith.constant 0 : index
    %473 = vector.load %arg5[%c0_478, %c0_479] : memref<8x1xf32, #tpu.memory_space<vmem>>, vector<8x1xf32>
    %474 = vector.broadcast %473 : vector<8x1xf32> to vector<8x256xf32>
    %475 = arith.addf %472, %474 : vector<8x256xf32>
    %476 = vector.shape_cast %475 : vector<8x256xf32> to vector<1x8x256xf32>
    %cst_480 = arith.constant dense<0xFF800000> : vector<1xf32>
    %477 = vector.multi_reduction <maximumf>, %476, %cst_480 [1, 2] : vector<1x8x256xf32> to vector<1xf32>
    %478 = vector.shape_cast %477 : vector<1xf32> to vector<1x1x1xf32>
    %479 = vector.extract %478[0, 0, 0] : f32 from vector<1x1x1xf32>
    %480 = vector.broadcast %479 : f32 to vector<1x1xf32>
    %481 = vector.shape_cast %475 : vector<8x256xf32> to vector<1x8x256xf32>
    %cst_481 = arith.constant dense<0x7F800000> : vector<1xf32>
    %482 = vector.multi_reduction <minimumf>, %481, %cst_481 [1, 2] : vector<1x8x256xf32> to vector<1xf32>
    %483 = vector.shape_cast %482 : vector<1xf32> to vector<1x1x1xf32>
    %484 = vector.extract %483[0, 0, 0] : f32 from vector<1x1x1xf32>
    %485 = vector.broadcast %484 : f32 to vector<1x1xf32>
    %cst_482 = arith.constant 0.000000e+00 : f32
    %486 = vector.broadcast %cst_482 : f32 to vector<8x256xf32>
    %487 = arith.maximumf %475, %486 : vector<8x256xf32>
    %488 = vector.extract_strided_slice %487 {offsets = [0, 0], sizes = [1, 256], strides = [1, 1]} : vector<8x256xf32> to vector<1x256xf32>
    %c3_483 = arith.constant 3 : index
    %c0_484 = arith.constant 0 : index
    %489 = vector.load %arg13[%c3_483, %c0_484] : memref<4x2048xf32, #tpu.memory_space<vmem>>, vector<1x256xf32>
    tpu.vector_store %arg13[%c3_483, %c0_484], %488 {strides = array<i32>} : memref<4x2048xf32, #tpu.memory_space<vmem>>, vector<1x256xf32>,
    %490 = vector.extract_strided_slice %487 {offsets = [1, 0], sizes = [1, 256], strides = [1, 1]} : vector<8x256xf32> to vector<1x256xf32>
    %c3_485 = arith.constant 3 : index
    %c256_486 = arith.constant 256 : index
    %491 = vector.load %arg13[%c3_485, %c256_486] : memref<4x2048xf32, #tpu.memory_space<vmem>>, vector<1x256xf32>
    tpu.vector_store %arg13[%c3_485, %c256_486], %490 {strides = array<i32>} : memref<4x2048xf32, #tpu.memory_space<vmem>>, vector<1x256xf32>,
    %492 = vector.extract_strided_slice %487 {offsets = [2, 0], sizes = [1, 256], strides = [1, 1]} : vector<8x256xf32> to vector<1x256xf32>
    %c3_487 = arith.constant 3 : index
    %c512_488 = arith.constant 512 : index
    %493 = vector.load %arg13[%c3_487, %c512_488] : memref<4x2048xf32, #tpu.memory_space<vmem>>, vector<1x256xf32>
    tpu.vector_store %arg13[%c3_487, %c512_488], %492 {strides = array<i32>} : memref<4x2048xf32, #tpu.memory_space<vmem>>, vector<1x256xf32>,
    %494 = vector.extract_strided_slice %487 {offsets = [3, 0], sizes = [1, 256], strides = [1, 1]} : vector<8x256xf32> to vector<1x256xf32>
    %c3_489 = arith.constant 3 : index
    %c768_490 = arith.constant 768 : index
    %495 = vector.load %arg13[%c3_489, %c768_490] : memref<4x2048xf32, #tpu.memory_space<vmem>>, vector<1x256xf32>
    tpu.vector_store %arg13[%c3_489, %c768_490], %494 {strides = array<i32>} : memref<4x2048xf32, #tpu.memory_space<vmem>>, vector<1x256xf32>,
    %496 = vector.extract_strided_slice %487 {offsets = [4, 0], sizes = [1, 256], strides = [1, 1]} : vector<8x256xf32> to vector<1x256xf32>
    %c3_491 = arith.constant 3 : index
    %c1024_492 = arith.constant 1024 : index
    %497 = vector.load %arg13[%c3_491, %c1024_492] : memref<4x2048xf32, #tpu.memory_space<vmem>>, vector<1x256xf32>
    tpu.vector_store %arg13[%c3_491, %c1024_492], %496 {strides = array<i32>} : memref<4x2048xf32, #tpu.memory_space<vmem>>, vector<1x256xf32>,
    %498 = vector.extract_strided_slice %487 {offsets = [5, 0], sizes = [1, 256], strides = [1, 1]} : vector<8x256xf32> to vector<1x256xf32>
    %c3_493 = arith.constant 3 : index
    %c1280_494 = arith.constant 1280 : index
    %499 = vector.load %arg13[%c3_493, %c1280_494] : memref<4x2048xf32, #tpu.memory_space<vmem>>, vector<1x256xf32>
    tpu.vector_store %arg13[%c3_493, %c1280_494], %498 {strides = array<i32>} : memref<4x2048xf32, #tpu.memory_space<vmem>>, vector<1x256xf32>,
    %500 = vector.extract_strided_slice %487 {offsets = [6, 0], sizes = [1, 256], strides = [1, 1]} : vector<8x256xf32> to vector<1x256xf32>
    %c3_495 = arith.constant 3 : index
    %c1536_496 = arith.constant 1536 : index
    %501 = vector.load %arg13[%c3_495, %c1536_496] : memref<4x2048xf32, #tpu.memory_space<vmem>>, vector<1x256xf32>
    tpu.vector_store %arg13[%c3_495, %c1536_496], %500 {strides = array<i32>} : memref<4x2048xf32, #tpu.memory_space<vmem>>, vector<1x256xf32>,
    %502 = vector.extract_strided_slice %487 {offsets = [7, 0], sizes = [1, 256], strides = [1, 1]} : vector<8x256xf32> to vector<1x256xf32>
    %c3_497 = arith.constant 3 : index
    %c1792_498 = arith.constant 1792 : index
    %503 = vector.load %arg13[%c3_497, %c1792_498] : memref<4x2048xf32, #tpu.memory_space<vmem>>, vector<1x256xf32>
    tpu.vector_store %arg13[%c3_497, %c1792_498], %502 {strides = array<i32>} : memref<4x2048xf32, #tpu.memory_space<vmem>>, vector<1x256xf32>,
    %504 = tpu.concatenate %431, %436, %480, %485 in 1 : vector<1x1xf32>, vector<1x1xf32>, vector<1x1xf32>, vector<1x1xf32> -> vector<1x4xf32>
    %c0_499 = arith.constant 0 : index
    %c0_500 = arith.constant 0 : index
    %505 = vector.load %arg13[%c0_499, %c0_500] : memref<4x2048xf32, #tpu.memory_space<vmem>>, vector<4x2048xf32>
    %c0_501 = arith.constant 0 : index
    %c0_502 = arith.constant 0 : index
    %506 = vector.load %arg6[%c0_501, %c0_502] : memref<2048x128xf32, #tpu.memory_space<vmem>>, vector<2048x128xf32>
    %cst_503 = arith.constant dense<0.000000e+00> : vector<4x128xf32>
    %507 = tpu.matmul %505, %506, %cst_503 {dimension_numbers = #tpu.dot_dimension_numbers<[1], [0], [0], [1], [0, 0, 1, 1], [], []>} : vector<4x2048xf32>, vector<2048x128xf32>, vector<4x128xf32> -> vector<4x128xf32>
    %c0_504 = arith.constant 0 : index
    %c0_505 = arith.constant 0 : index
    %508 = vector.load %arg7[%c0_504, %c0_505] : memref<1x128xf32, #tpu.memory_space<vmem>>, vector<1x128xf32>
    %509 = vector.broadcast %508 : vector<1x128xf32> to vector<4x128xf32>
    %510 = arith.addf %507, %509 : vector<4x128xf32>
    %511 = tpu.concatenate %153, %270, %387, %504 in 0 : vector<1x4xf32>, vector<1x4xf32>, vector<1x4xf32>, vector<1x4xf32> -> vector<4x4xf32>
    %cst_506 = arith.constant 0.000000e+00 : f32
    %512 = vector.broadcast %cst_506 : f32 to vector<4x10xf32>
    %cst_507 = arith.constant 0.000000e+00 : f32
    %513 = vector.broadcast %cst_507 : f32 to vector<4x114xf32>
    %514 = tpu.concatenate %512, %511, %513 in 1 : vector<4x10xf32>, vector<4x4xf32>, vector<4x114xf32> -> vector<4x128xf32>
    %515 = arith.addf %510, %514 : vector<4x128xf32>
    %c0_508 = arith.constant 0 : index
    %c0_509 = arith.constant 0 : index
    %c0_510 = arith.constant 0 : index
    %516 = vector.load %arg8[%c0_508, %c0_509, %c0_510] : memref<1x4x128xf32, #tpu.memory_space<vmem>>, vector<1x4x128xf32>
    %517 = vector.shape_cast %516 : vector<1x4x128xf32> to vector<4x128xf32>
    %518 = vector.shape_cast %515 : vector<4x128xf32> to vector<1x4x128xf32>
    tpu.vector_store %arg8[%c0_508, %c0_509, %c0_510], %518 {strides = array<i32>} : memref<1x4x128xf32, #tpu.memory_space<vmem>>, vector<1x4x128xf32>,
    return
  }
  func.func @transform_0(%arg0: i32) -> (i32, i32, i32, i32) {
    %c0_i32 = arith.constant 0 : i32
    %c0_i32_0 = arith.constant 0 : i32
    %c0_i32_1 = arith.constant 0 : i32
    %c0_i32_2 = arith.constant 0 : i32
    return %arg0, %c0_i32, %c0_i32_0, %c0_i32_1 : i32, i32, i32, i32
  }
  func.func @transform_1(%arg0: i32) -> (i32, i32) {
    %c0_i32 = arith.constant 0 : i32
    %c0_i32_0 = arith.constant 0 : i32
    %c0_i32_1 = arith.constant 0 : i32
    return %c0_i32, %c0_i32_0 : i32, i32
  }
  func.func @transform_2(%arg0: i32) -> (i32, i32) {
    %c0_i32 = arith.constant 0 : i32
    %c0_i32_0 = arith.constant 0 : i32
    %c0_i32_1 = arith.constant 0 : i32
    return %c0_i32, %c0_i32_0 : i32, i32
  }
  func.func @transform_3(%arg0: i32) -> (i32, i32) {
    %c0_i32 = arith.constant 0 : i32
    %c0_i32_0 = arith.constant 0 : i32
    %c0_i32_1 = arith.constant 0 : i32
    return %c0_i32, %c0_i32_0 : i32, i32
  }
  func.func @transform_4(%arg0: i32) -> (i32, i32) {
    %c0_i32 = arith.constant 0 : i32
    %c0_i32_0 = arith.constant 0 : i32
    %c0_i32_1 = arith.constant 0 : i32
    return %c0_i32, %c0_i32_0 : i32, i32
  }
  func.func @transform_5(%arg0: i32) -> (i32, i32) {
    %c0_i32 = arith.constant 0 : i32
    %c0_i32_0 = arith.constant 0 : i32
    %c0_i32_1 = arith.constant 0 : i32
    return %c0_i32, %c0_i32_0 : i32, i32
  }
  func.func @transform_6(%arg0: i32) -> (i32, i32) {
    %c0_i32 = arith.constant 0 : i32
    %c0_i32_0 = arith.constant 0 : i32
    %c0_i32_1 = arith.constant 0 : i32
    return %c0_i32, %c0_i32_0 : i32, i32
  }
  func.func @transform_7(%arg0: i32) -> (i32, i32, i32) {
    %c0_i32 = arith.constant 0 : i32
    %c0_i32_0 = arith.constant 0 : i32
    %c0_i32_1 = arith.constant 0 : i32
    return %arg0, %c0_i32, %c0_i32_0 : i32, i32, i32
  }
}

</mosaic_0001>

<bundles_post_ra>
// kernel: feature_extractor_forward.1
= control target key start
LH: loop header
LB: loop body
LE: loop exit
PB: predicated region body
PF: predicated region fallthrough
CT: control target
= control target key end

     0   :  { %s3867_s24 = smov 0   ;;  %s5702_s0 = inlined_call_operand.vmem [shape: f32[2,4,4,256], index: 0, kind: input, shape index: {}]   ;;  %s5703_s1 = inlined_call_operand.vmem [shape: f32[8,36], index: 1, kind: input, shape index: {}]   ;;  %s5704_s2 = inlined_call_operand.vmem [shape: f32[8,1], index: 2, kind: input, shape index: {}]   ;;  %s5705_s3 = inlined_call_operand.vmem [shape: f32[8,72], index: 3, kind: input, shape index: {}]   ;;  %s5706_s4 = inlined_call_operand.vmem [shape: f32[8,1], index: 4, kind: input, shape index: {}]   ;;  %s5707_s5 = inlined_call_operand.vmem [shape: f32[2048,128], index: 5, kind: input, shape index: {}]   ;;  %s5708_s6 = inlined_call_operand.vmem [shape: f32[1,128], index: 6, kind: input, shape index: {}]   ;;  %s5709_s7 = inlined_call_operand.vmem [shape: f32[2,4,128], index: 7, kind: output, shape index: {}]  }
   0x1 LB: > { %s3605_s25 = sadd.s32 4294967295, %s3813_s24   ;;  %p3609_p0 = scmp.ge.s32.totalorder %s3813_s24, 1  ;;  %s3813_s24 = sphi %s3867_s24, %s17_s24  }
   0x2   : > { %p237_p1 = scmp.lt.s32.totalorder %s3813_s24, 3 }
   0x4   : > { %p238_p2 = pnand %p3609_p0, %p237_p1 }
   0x5   : > { %p268_p3 = scmp.lt.s32.totalorder (!%p238_p2), %s3605_s25, 1  ;;  %s3816_s30 = smov (!%p238_p2), 17  }
   0x6   : > { %241 = sbr.rel (%p238_p2) target bundleno = 3697 (0xe71), region = 48  ;;  %s3817_s8 = smov (!%p238_p2), 112  }
   0x7   : > { %s3818_s9 = smov (!%p238_p2), 111   ;;  %s3819_s10 = smov (!%p238_p2), 110  }
   0x8   : > { %s3820_s11 = smov (!%p238_p2), 96   ;;  %s3821_s12 = smov (!%p238_p2), 95  }
   0x9   : > { %s3822_s13 = smov (!%p238_p2), 94   ;;  %s3823_s14 = smov (!%p238_p2), 126  }
   0xa   : > { %s3824_s15 = smov (!%p238_p2), 127  }
   0xb   : > { %vm5712_vm0 = vcmask 134144   ;;  %vm318_vm1 = vcmask 273544   ;;  %v3815_v0 = vmov 0.0   ;;  %s5800_s25 = smov (!%p268_p3, %s3605_s25), 1  ;;  %vm320_vm2 = vcmask 138240  }
   0xc   : > { %317 = vst.msk [vmem:[#allocation2] sm:$0xf] %vm5712_vm0, %v3815_v0  ;;  %s3642_s26 = sshll.u32 %s5800_s25, 5  ;;  %vm332_vm3 = vcmask 1043592   ;;  %vm333_vm4 = vcmask 1047556   ;;  %v277_v5 = vlaneseq  ;;  %vm5718_vm8 = vcmask 916480  }
   0xd   : > { %319 = vst.msk [vmem:[#allocation2 + $0x8] sm:$0xf] %vm318_vm1, %v3815_v0  ;;  %s3886_s29 = scalar_lea.vmem %s5702_s0, %s3642_s26  ;;  %vm3890_vm5 = vmor %vm333_vm4, %vm332_vm3  ;;  %vm467_vm9 = vcmask 900096   ;;  %vm444_vm10 = vcmask 908288   ;;  %vm498_vm13 = vcmask 785408   ;;  %vm524_vm14 = vcmask 777216  }
   0xe   : > { %321 = vst.msk [vmem:[#allocation3] sm:$0xff] %vm320_vm2, %v3815_v0  ;;  %v324_v1 = vld [vmem:[%s3886_s29] sm:$0xff]  ;;  %v3899_v7 = vand.u32 127, %v277_v5  ;;  %vm5717_vm15 = vcmask 1031168   ;;  %vm5719_vm1 = vcmask 769024   ;;  %vm5715_vm3 = vcmask 1039360  }
   0xf   : > { %326 = vrot.lane.b32.xlu0 %v324_v1, %s3816_s30  ;;  %vm5710_vm4 = vcmask 1043456  }
  0x10   : > { %v3902_v8 = vadd.s32 128, %v3899_v7  ;;  %v284_v12 = vand.u32 15, %v3899_v7 }
  0x12   : > { %v291_v11 = vand.u32 15, %v3902_v8  ;;  %vm3917_vm7 = vcmp.ge.s32.totalorder %v284_v12, 1  ;;  %vm3974_vm11 = vcmp.le.s32.totalorder %v284_v12, 14 }
  0x14   : > { %vm3911_vm6 = vcmp.ge.s32.totalorder %v291_v11, 1  ;;  %vm3987_vm12 = vcmp.le.s32.totalorder %v291_v11, 14 }
  0x81   : > { %v327_v2 = vpop.permute.xlu0 %326 }
  0x82   : > { %v328_v4 = vrot.slane %v327_v2, 4 }
  0x84   : > { %v329_v6 = vsel %vm320_vm2, %v328_v4, %v327_v2  ;;  %336 = vst.msk [vmem:[#allocation2 + $0x8] sm:$0xf] %vm5712_vm0, %v328_v4  ;;  %vm5713_vm0 = vcmask 1047688  }
  0x85   : > { %335 = vst.msk [vmem:[#allocation2] sm:$0xff] %vm3890_vm5, %v329_v6 }
  0x8b   : > { %v349_v9 = vld [vmem:[#allocation2 + $0x8] sm:$0xf] }
  0x8c   : > { %v3904_v10 = vld [vmem:[#allocation2] sm:$0xff]  ;;  %355 = vst [vmem:[#allocation1 + $0x11] ss:$2 sm:$0xff] %v349_v9  ;;  %v373_v18 = vld [vmem:[#allocation2 + $0x8] sm:$0xf] }
  0x8d   : > { %339 = vst [vmem:[#allocation1] ss:$2 sm:$0xff] %v3904_v10  ;;  %v398_v21 = vld [vmem:[#allocation2 + $0x8] sm:$0xf] }
  0x8e   : > { %v429_v25 = vld [vmem:[#allocation2 + $0x8] sm:$0xf] }
  0x8f   : > { %v452_v29 = vld [vmem:[#allocation2 + $0x8] sm:$0xf] }
  0x90   : > { %v483_v33 = vld [vmem:[#allocation2 + $0x8] sm:$0xf] }
  0x91   : > { %v508_v37 = vld [vmem:[#allocation2 + $0x8] sm:$0xf] }
  0x92   : > { %v532_v41 = vld [vmem:[#allocation2 + $0x8] sm:$0xf] }
  0x93   : > { %v3921_v15 = vld.sshfl [vmem:[#allocation1 + $0x10] sm:$0xff pattern:$0x75316420] }
  0x94   : > { %v340_v16 = vld.sshfl [vmem:[#allocation1] sm:$0xff pattern:$0x75316420]  ;;  %v341_v17 = vld.sshfl [vmem:[#allocation1 + $0x8] sm:$0xff pattern:$0x75316420] }
  0x95   : > { %353 = vst [vmem:[#allocation1 + $0x1] ss:$2 sm:$0xff] %v3904_v10  ;;  %v345_v19 = vsel %vm3911_vm6, %v341_v17, 0.0  ;;  %v344_v20 = vsel %vm3917_vm7, %v340_v16, 0.0 }
  0x96   : > { %378 = vst [vmem:[#allocation1 + $0x10] ss:$2 sm:$0xff] %v373_v18 }
  0x97   : > { %347 = vst [vmem:[#allocation4] sm:$0xf] %v345_v19 }
  0x98   : > { %346 = vst [vmem:[#allocation4 + $0x30] sm:$0xf] %v344_v20 }
  0x9c   : > { %v3928_v22 = vld.sshfl [vmem:[#allocation1] sm:$0xff pattern:$0x75316420]  ;;  %v3930_v23 = vld.sshfl [vmem:[#allocation1 + $0x8] sm:$0xff pattern:$0x75316420] }
  0x9d   : > { %376 = vst [vmem:[#allocation1] ss:$2 sm:$0xff] %v3904_v10  ;;  %v381_v24 = vld.sshfl [vmem:[#allocation1 + $0x10] sm:$0xff pattern:$0x75316420] }
  0x9e   : > { %403 = vst [vmem:[#allocation1 + $0x10] ss:$2 sm:$0xff] %v398_v21 }
  0xa4   : > { %v3933_v26 = vld.sshfl [vmem:[#allocation1] sm:$0xff pattern:$0x75316420]  ;;  %v380_v27 = vld.sshfl [vmem:[#allocation1 + $0x8] sm:$0xff pattern:$0x75316420] }
  0xa5   : > { %401 = vst [vmem:[#allocation1] ss:$2 sm:$0xff] %v3904_v10  ;;  %v406_v28 = vld.sshfl [vmem:[#allocation1 + $0x10] sm:$0xff pattern:$0x75316420] }
  0xa6   : > { %434 = vst [vmem:[#allocation1 + $0x10] ss:$2 sm:$0xff] %v429_v25  ;;  %411 = vrot.lane.b32.xlu0 %v406_v28, %s3817_s8 }
  0xac   : > { %v405_v30 = vld.sshfl [vmem:[#allocation1 + $0x8] sm:$0xff pattern:$0x75316420]  ;;  %v404_v31 = vld.sshfl [vmem:[#allocation1] sm:$0xff pattern:$0x75316420] }
  0xad   : > { %v437_v32 = vld.sshfl [vmem:[#allocation1 + $0x10] sm:$0xff pattern:$0x75316420]  ;;  %409 = vrot.lane.b32.xlu2 %v405_v30, %s3817_s8  ;;  %407 = vrot.lane.b32.xlu1 %v404_v31, %s3817_s8  ;;  %432 = vst [vmem:[#allocation1] ss:$2 sm:$0xff] %v3904_v10  ;;  %v4006_v30 = vld [vmem:[%s5704_s2] sm:$0xff] }
  0xae   : > { %457 = vst [vmem:[#allocation1 + $0x10] ss:$2 sm:$0xff] %v452_v29  ;;  %442 = vrot.lane.b32.xlu0 %v437_v32, %s3818_s9  ;;  %v3825_v31 = vmov 0  }
  0xaf   : > { %3743 = vset.pattern.permute.xlu1 %v3825_v31  ;;  %3759 = vset.pattern.permute.xlu0 %v3825_v31 }
  0xb0   : > { %3790 = vset.pattern.permute.xlu2 %v3825_v31 }
  0xb4   : > { %v436_v34 = vld.sshfl [vmem:[#allocation1 + $0x8] sm:$0xff pattern:$0x75316420]  ;;  %v435_v35 = vld.sshfl [vmem:[#allocation1] sm:$0xff pattern:$0x75316420] }
  0xb5   : > { %v460_v36 = vld.sshfl [vmem:[#allocation1 + $0x10] sm:$0xff pattern:$0x75316420]  ;;  %440 = vrot.lane.b32.xlu2 %v436_v34, %s3818_s9  ;;  %438 = vrot.lane.b32.xlu1 %v435_v35, %s3818_s9  ;;  %455 = vst [vmem:[#allocation1] ss:$2 sm:$0xff] %v3904_v10 }
  0xb6   : > { %488 = vst [vmem:[#allocation1 + $0x10] ss:$2 sm:$0xff] %v483_v33  ;;  %465 = vrot.lane.b32.xlu0 %v460_v36, %s3819_s10 }
  0xbc   : > { %v458_v38 = vld.sshfl [vmem:[#allocation1] sm:$0xff pattern:$0x75316420]  ;;  %v459_v39 = vld.sshfl [vmem:[#allocation1 + $0x8] sm:$0xff pattern:$0x75316420] }
  0xbd   : > { %v491_v40 = vld.sshfl [vmem:[#allocation1 + $0x10] sm:$0xff pattern:$0x75316420]  ;;  %461 = vrot.lane.b32.xlu2 %v458_v38, %s3819_s10  ;;  %486 = vst [vmem:[#allocation1] ss:$2 sm:$0xff] %v3904_v10 }
  0xbe   : > { %514 = vst [vmem:[#allocation1 + $0x11] ss:$2 sm:$0xff] %v508_v37  ;;  %496 = vrot.lane.b32.xlu0 %v491_v40, %s3820_s11 }
  0xc4   : > { %v489_v42 = vld.sshfl [vmem:[#allocation1] sm:$0xff pattern:$0x75316420]  ;;  %v490_v43 = vld.sshfl [vmem:[#allocation1 + $0x8] sm:$0xff pattern:$0x75316420] }
  0xc5   : > { %v517_v44 = vld.sshfl [vmem:[#allocation1 + $0x10] sm:$0xff pattern:$0x75316420]  ;;  %463 = vrot.lane.b32.xlu2 %v459_v39, %s3819_s10  ;;  %492 = vrot.lane.b32.xlu1 %v489_v42, %s3820_s11  ;;  %512 = vst [vmem:[#allocation1 + $0x1] ss:$2 sm:$0xff] %v3904_v10 }
  0xc6   : > { %537 = vst [vmem:[#allocation1 + $0x10] ss:$2 sm:$0xff] %v532_v41  ;;  %522 = vrot.lane.b32.xlu0 %v517_v44, %s3821_s12 }
  0xcc   : > { %v516_v45 = vld.sshfl [vmem:[#allocation1 + $0x8] sm:$0xff pattern:$0x75316420]  ;;  %v515_v46 = vld.sshfl [vmem:[#allocation1] sm:$0xff pattern:$0x75316420] }
  0xcd   : > { %v540_v47 = vld.sshfl [vmem:[#allocation1 + $0x10] sm:$0xff pattern:$0x75316420]  ;;  %494 = vrot.lane.b32.xlu2 %v490_v43, %s3820_s11  ;;  %535 = vst [vmem:[#allocation1] ss:$2 sm:$0xff] %v3904_v10 }
  0xce   : > { %545 = vrot.lane.b32.xlu1 %v540_v47, %s3822_s13 }
  0xd4   : > { %v538_v48 = vld.sshfl [vmem:[#allocation1] sm:$0xff pattern:$0x75316420]  ;;  %v539_v49 = vld.sshfl [vmem:[#allocation1 + $0x8] sm:$0xff pattern:$0x75316420] }
  0xd5   : > { %520 = vrot.lane.b32.xlu2 %v516_v45, %s3821_s12  ;;  %541 = vrot.lane.b32.xlu0 %v538_v48, %s3822_s13 }
  0xd6   : > { %518 = vrot.lane.b32.xlu1 %v515_v46, %s3821_s12 }
  0xdd   : > { %384 = vrot.lane.b32.xlu2 %v380_v27, %s3823_s14  ;;  %386 = vrot.lane.b32.xlu0 %v381_v24, %s3823_s14 }
  0xde   : > { %543 = vrot.lane.b32.xlu1 %v539_v49, %s3822_s13 }
  0xe5   : > { %361 = vrot.lane.b32.xlu2 %v3930_v23, %s3824_s15  ;;  %363 = vrot.lane.b32.xlu0 %v3921_v15, %s3824_s15 }
  0xe6   : > { %382 = vrot.lane.b32.xlu1 %v3933_v26, %s3823_s14 }
  0xee   : > { %359 = vrot.lane.b32.xlu1 %v3928_v22, %s3824_s15 }
  0xf6   : > { %570 = vperm.xlu1 %3743, %v4006_v30  }
 0x107   : > { %v410_v50 = vpop.permute.xlu2 %409 }
 0x10f   : > { %v441_v51 = vpop.permute.xlu2 %440 }
 0x117   : > { %v462_v52 = vpop.permute.xlu2 %461 }
 0x118   : > { %v412_v53 = vpop.permute.xlu0 %411 }
 0x119   : > { %v415_v54 = vsel %vm5718_vm8, %v410_v50, %v412_v53 }
 0x11a   : > { %v419_v55 = vsel %vm3911_vm6, %v415_v54, 0.0 }
 0x11b   : > { %v423_v56 = vrot.slane %v419_v55, 4 }
 0x11d   : > { %427 = vst [vmem:[#allocation4 + $0x10] sm:$0xf0] %v423_v56 }
 0x11f   : > { %v408_v58 = vpop.permute.xlu1 %407  ;;  %v464_v59 = vpop.permute.xlu2 %463 }
 0x120   : > { %v443_v60 = vpop.permute.xlu0 %442  ;;  %v414_v61 = vsel %vm5718_vm8, %v408_v58, %v410_v50  ;;  %v468_v62 = vsel %vm467_vm9, %v462_v52, %v464_v59 }
 0x121   : > { %v446_v63 = vsel %vm444_vm10, %v441_v51, %v443_v60  ;;  %v418_v1 = vsel %vm3917_vm7, %v414_v61, 0.0  ;;  %v472_v2 = vsel %vm3974_vm11, %v468_v62, 0.0 }
 0x122   : > { %450 = vst [vmem:[#allocation4 + $0x28] sm:$0xf] %v446_v63  ;;  %v422_v4 = vrot.slane %v418_v1, 4  ;;  %v476_v6 = vrot.slane %v472_v2, 4 }
 0x124   : > { %426 = vst [vmem:[#allocation4 + $0x18] sm:$0xf0] %v422_v4 }
 0x125   : > { %480 = vst [vmem:[#allocation4 + $0x48] sm:$0xf0] %v476_v6 }
 0x127   : > { %v439_v9 = vpop.permute.xlu1 %438  ;;  %v495_v18 = vpop.permute.xlu2 %494 }
 0x128   : > { %v466_v10 = vpop.permute.xlu0 %465  ;;  %v445_v12 = vsel %vm444_vm10, %v439_v9, %v441_v51 }
 0x129   : > { %v469_v15 = vsel %vm467_vm9, %v464_v59, %v466_v10  ;;  %449 = vst [vmem:[#allocation4 + $0x48] sm:$0xf] %v445_v12  ;;  %v4028_v59 = vld [vmem:[%s5703_s1] sm:$0xff] }
 0x12a   : > { %v473_v16 = vsel %vm3987_vm12, %v469_v15, 0.0 }
 0x12b   : > { %v477_v17 = vrot.slane %v473_v16, 4 }
 0x12d   : > { %481 = vst [vmem:[#allocation4 + $0x28] sm:$0xf0] %v477_v17 }
 0x12f   : > { %v521_v21 = vpop.permute.xlu2 %520 }
 0x130   : > { %v497_v19 = vpop.permute.xlu0 %496  ;;  %v561_v51 = vld [vmem:[#allocation4 + $0x48] sm:$0xff] }
 0x131   : > { %v500_v8 = vsel %vm498_vm13, %v495_v18, %v497_v19  ;;  %v4088_v19 = vld [vmem:[%s5706_s4] sm:$0xff] }
 0x132   : > { %v504_v11 = vsel %vm3911_vm6, %v500_v8, 0.0 }
 0x133   : > { %506 = vst [vmem:[#allocation4 + $0x20] sm:$0xf] %v504_v11 }
 0x134   : > { %v562_v52 = vld [vmem:[#allocation4 + $0x28] sm:$0xff] }
 0x137   : > { %v493_v20 = vpop.permute.xlu1 %492  ;;  %v385_v32 = vpop.permute.xlu2 %384 }
 0x138   : > { %v523_v22 = vpop.permute.xlu0 %522  ;;  %v499_v23 = vsel %vm498_vm13, %v493_v20, %v495_v18 }
 0x139   : > { %v526_v24 = vsel %vm524_vm14, %v521_v21, %v523_v22  ;;  %v503_v25 = vsel %vm3917_vm7, %v499_v23, 0.0 }
 0x13a   : > { %530 = vst [vmem:[#allocation4 + $0x20] sm:$0xf0] %v526_v24 }
 0x13b   : > { %505 = vst [vmem:[#allocation4 + $0x8] sm:$0xf] %v503_v25 }
 0x13f   : > { %v362_v41 = vpop.permute.xlu2 %361 }
 0x140   : > { %v546_v26 = vpop.permute.xlu1 %545 }
 0x141   : > { %v564_v50 = vld [vmem:[#allocation4 + $0x20] sm:$0xff] }
 0x147   : > { %v542_v27 = vpop.permute.xlu0 %541 }
 0x148   : > { %v519_v28 = vpop.permute.xlu1 %518 }
 0x149   : > { %v525_v29 = vsel %vm524_vm14, %v519_v28, %v521_v21 }
 0x14a   : > { %529 = vst [vmem:[#allocation4 + $0x8] sm:$0xf0] %v525_v29 }
 0x14f   : > { %v387_v33 = vpop.permute.xlu0 %386 }
 0x150   : > { %v544_v34 = vpop.permute.xlu1 %543  ;;  %v390_v35 = vsel %vm5717_vm15, %v385_v32, %v387_v33 }
 0x151   : > { %v548_v36 = vsel %vm5719_vm1, %v542_v27, %v544_v34  ;;  %v549_v37 = vsel %vm5719_vm1, %v544_v34, %v546_v26  ;;  %v394_v38 = vsel %vm3987_vm12, %v390_v35, 0.0  ;;  %v563_v49 = vld [vmem:[#allocation4 + $0x8] sm:$0xff] }
 0x152   : > { %v552_v39 = vsel %vm3974_vm11, %v548_v36, 0.0  ;;  %v553_v40 = vsel %vm3987_vm12, %v549_v37, 0.0  ;;  %396 = vst [vmem:[#allocation4 + $0x10] sm:$0xf] %v394_v38  ;;  %v3619_v37 = vld [vmem:[%s3886_s29 + $0x8] sm:$0xff] }
 0x153   : > { %554 = vst [vmem:[#allocation4 + $0x40] sm:$0xf] %v552_v39 }
 0x154   : > { %555 = vst [vmem:[#allocation4 + $0x38] sm:$0xf] %v553_v40 }
 0x157   : > { %v364_v42 = vpop.permute.xlu0 %363 }
 0x158   : > { %v383_v43 = vpop.permute.xlu1 %382  ;;  %v367_v44 = vsel %vm5715_vm3, %v362_v41, %v364_v42 }
 0x159   : > { %v389_v45 = vsel %vm5717_vm15, %v383_v43, %v385_v32  ;;  %371 = vst [vmem:[#allocation4] sm:$0xf0] %v367_v44  ;;  %v560_v55 = vld [vmem:[#allocation4 + $0x10] sm:$0xff] }
 0x15a   : > { %v393_v46 = vsel %vm3974_vm11, %v389_v45, 0.0  ;;  %v565_v47 = vld [vmem:[#allocation4 + $0x40] sm:$0xf] }
 0x15b   : > { %395 = vst [vmem:[#allocation4 + $0x18] sm:$0xf] %v393_v46  ;;  %3613 = vmatpush.msk.msra.mxu0 %vm5710_vm4, %v565_v47  ;;  %v566_v48 = vld [vmem:[#allocation4 + $0x38] sm:$0xf] }
 0x15c   : > { %3615 = vmatpush.msk.msra.mxu1 %vm5710_vm4, %v566_v48  ;;  %vm5711_vm4 = vcmask 293888  }
 0x15d   : > { %596 = vmatpush.msra.mxu0 %v563_v49 }
 0x15e   : > { %616 = vmatpush.msra.mxu1 %v564_v50 }
 0x15f   : > { %597 = vmatpush.msra.mxu0 %v561_v51 }
 0x160   : > { %617 = vmatpush.msra.mxu1 %v562_v52  ;;  %v360_v53 = vpop.permute.xlu1 %359  ;;  %v558_v56 = vld [vmem:[#allocation4] sm:$0xff] }
 0x161   : > { %v366_v54 = vsel %vm5715_vm3, %v360_v53, %v362_v41 }
 0x162   : > { %370 = vst [vmem:[#allocation4 + $0x30] sm:$0xf0] %v366_v54  ;;  %618 = vmatpush.msra.mxu1 %v560_v55  ;;  %v559_v58 = vld [vmem:[#allocation4 + $0x18] sm:$0xff] }
 0x163   : > { %598 = vmatpush.msra.mxu0 %v559_v58 }
 0x164   : > { %619 = vmatpush.msra.mxu1 %v558_v56 }
 0x165   : > { %3616 = vmatmul.msk.f32.vlgmr.msra.gmra.mxu1 %vm5711_vm4, %v4028_v59 }
 0x168   : > { %v571_v61 = vpop.permute.xlu1 %570 }
 0x169   : > { %v557_v60 = vld [vmem:[#allocation4 + $0x30] sm:$0xff] }
 0x16a   : > { %599 = vmatpush.msra.mxu0 %v557_v60 }
 0x16b   : > { %3614 = vmatmul.msk.f32.vlgmr.msra.gmra.mxu0 %vm5711_vm4, %v4028_v59  ;;  %vm322_vm4 = vcmask 277640  }
 0x16c   : > { %323 = vst.msk [vmem:[#allocation3 + $0x10] sm:$0xff] %vm322_vm4, %v3815_v0  ;;  %vm5714_vm4 = vcmask 588800  }
 0x1e2   : > { %v621_v62 = vpop.f32.mrf.mxu1 }
 0x1e3   : > { %v4034_v63 = vadd.f32 %v621_v62, %v571_v61 }
 0x1e5   : > { %v647_v1 = vmax.f32 %v4034_v63, 0.0 }
 0x1e7   : > { %652 = vrot.lane.b32.xlu0 %v647_v1, %s3816_s30  ;;  %v4133_v1 = vld [vmem:[%s5705_s3] sm:$0xff] }
 0x1e8   : > { %v601_v2 = vpop.f32.mrf.mxu0 }
 0x1e9   : > { %v4038_v4 = vadd.f32 %v601_v2, %v571_v61 }
 0x1eb   : > { %v646_v6 = vmax.f32 %v4038_v4, 0.0  ;;  %v635_v9 = vmin.f32 %v4038_v4, %v4034_v63  ;;  %v624_v10 = vmax.f32 %v4038_v4, %v4034_v63 }
 0x1ed   : > { %650 = vrot.lane.b32.xlu2 %v646_v6, %s3816_s30 }
 0x247   : > { %v651_v12 = vpop.permute.xlu2 %650 }
 0x248   : > { %659 = vst.msk [vmem:[#allocation3] sm:$0xff] %vm5713_vm0, %v651_v12  ;;  %vm5716_vm0 = vcmask 1040384  }
 0x24f   : > { %v4048_v15 = vld [vmem:[#allocation3] sm:$0xff] }
 0x250   : > { %808 = vrot.lane.b32.xlu1 %v4048_v15, %s3822_s13 }
 0x259   : > { %v653_v16 = vpop.permute.xlu0 %652 }
 0x25a   : > { %661 = vst.msk [vmem:[#allocation3 + $0x10] sm:$0xff] %vm320_vm2, %v653_v16  ;;  %v4061_v0 = vsel %vm320_vm2, %v651_v12, %v653_v16 }
 0x25b   : > { %v3744_v18 = vpack.i.bf16 %v4061_v0, %v4048_v15 }
 0x261   : > { %v804_v17 = vld [vmem:[#allocation3 + $0x10] sm:$0xff] }
 0x262   : > { %812 = vrot.lane.b32.xlu0 %v804_v17, %s3822_s13  ;;  %794 = vrot.lane.b32.xlu2 %v804_v17, %s3821_s12 }
 0x263   : > { %736 = vrot.lane.b32.xlu1 %v804_v17, %s3818_s9 }
 0x26a   : > { %774 = vrot.lane.b32.xlu2 %v804_v17, %s3820_s11  ;;  %770 = vrot.lane.b32.xlu0 %v4048_v15, %s3820_s11 }
 0x26b   : > { %716 = vrot.lane.b32.xlu1 %v804_v17, %s3817_s8 }
 0x272   : > { %754 = vrot.lane.b32.xlu2 %v804_v17, %s3819_s10  ;;  %750 = vrot.lane.b32.xlu0 %v4048_v15, %s3819_s10 }
 0x273   : > { %3745 = vrot.lane.b32.xlu1 %v3744_v18, %s3821_s12 }
 0x27a   : > { %712 = vrot.lane.b32.xlu2 %v4048_v15, %s3817_s8  ;;  %3750 = vrot.lane.b32.xlu0 %v3744_v18, %s3818_s9 }
 0x27b   : > { %772 = vrot.lane.b32.xlu1 %v4061_v0, %s3820_s11 }
 0x282   : > { %810 = vrot.lane.b32.xlu2 %v4061_v0, %s3822_s13  ;;  %714 = vrot.lane.b32.xlu0 %v4061_v0, %s3817_s8 }
 0x283   : > { %752 = vrot.lane.b32.xlu1 %v4061_v0, %s3819_s10 }
 0x28a   : > { %692 = vrot.lane.b32.xlu2 %v4048_v15, %s3823_s14  ;;  %694 = vrot.lane.b32.xlu0 %v4061_v0, %s3823_s14 }
 0x28b   : > { %696 = vrot.lane.b32.xlu1 %v804_v17, %s3823_s14 }
 0x292   : > { %678 = vrot.lane.b32.xlu0 %v804_v17, %s3824_s15  ;;  %3755 = vrot.lane.b32.xlu2 %v3744_v18, %s3824_s15 }
 0x293   : > { %844 = vperm.xlu1 %3743, %v4088_v19  }
 0x29a   : > { %984 = vrot.lane.b32.xlu2 %v3619_v37, %s3816_s30 }
 0x2bc   : > { %v795_v8 = vpop.permute.xlu2 %794 }
 0x2c2   : > { %v809_v21 = vpop.permute.xlu1 %808 }
 0x2c4   : > { %v775_v11 = vpop.permute.xlu2 %774 }
 0x2cc   : > { %v755_v20 = vpop.permute.xlu2 %754 }
 0x2d4   : > { %v813_v22 = vpop.permute.xlu0 %812  ;;  %v713_v23 = vpop.permute.xlu2 %712 }
 0x2d5   : > { %v737_v24 = vpop.permute.xlu1 %736 }
 0x2dc   : > { %v771_v25 = vpop.permute.xlu0 %770  ;;  %v811_v26 = vpop.permute.xlu2 %810 }
 0x2dd   : > { %v717_v27 = vpop.permute.xlu1 %716  ;;  %v814_v28 = vsel %vm5719_vm1, %v809_v21, %v811_v26  ;;  %v815_v29 = vsel %vm5719_vm1, %v811_v26, %v813_v22 }
 0x2de   : > { %3643 = vmatpush.msk.msra.mxu2 %vm3974_vm11, %v814_v28  ;;  %3649 = vmatpush.msk.msra.mxu3 %vm3987_vm12, %v815_v29 }
 0x2e4   : > { %v751_v31 = vpop.permute.xlu0 %750  ;;  %v693_v40 = vpop.permute.xlu2 %692 }
 0x2e5   : > { %v3746_v32 = vpop.permute.xlu1 %3745 }
 0x2e6   : > { %v3748_v33 = vunpack.i.h.bf16 %v3746_v32  ;;  %v3747_v34 = vunpack.i.l.bf16 %v3746_v32 }
 0x2e8   : > { %v796_v35 = vsel %vm524_vm14, %v3747_v34, %v3748_v33  ;;  %v797_v36 = vsel %vm524_vm14, %v3748_v33, %v795_v8 }
 0x2e9   : > { %859 = vmatpush.msra.mxu2 %v796_v35  ;;  %879 = vmatpush.msra.mxu3 %v797_v36 }
 0x2ec   : > { %v3751_v38 = vpop.permute.xlu0 %3750  ;;  %v3756_v49 = vpop.permute.xlu2 %3755 }
 0x2ed   : > { %v773_v39 = vpop.permute.xlu1 %772  ;;  %v3753_v43 = vunpack.i.h.bf16 %v3751_v38  ;;  %v3752_v44 = vunpack.i.l.bf16 %v3751_v38  ;;  %v3758_v54 = vunpack.i.h.bf16 %v3756_v49  ;;  %v3757_v55 = vunpack.i.l.bf16 %v3756_v49 }
 0x2ee   : > { %v776_v41 = vsel %vm498_vm13, %v771_v25, %v773_v39  ;;  %v777_v42 = vsel %vm498_vm13, %v773_v39, %v775_v11 }
 0x2ef   : > { %3644 = vmatpush.msk.msra.mxu2 %vm3917_vm7, %v776_v41  ;;  %3650 = vmatpush.msk.msra.mxu3 %vm3911_vm6, %v777_v42  ;;  %v738_v50 = vsel %vm444_vm10, %v3752_v44, %v3753_v43  ;;  %v739_v51 = vsel %vm444_vm10, %v3753_v43, %v737_v24  ;;  %v680_v62 = vsel %vm5715_vm3, %v3757_v55, %v3758_v54 }
 0x2f4   : > { %v715_v45 = vpop.permute.xlu0 %714  ;;  %v985_v25 = vpop.permute.xlu2 %984 }
 0x2f5   : > { %v753_v46 = vpop.permute.xlu1 %752  ;;  %v718_v52 = vsel %vm5718_vm8, %v713_v23, %v715_v45  ;;  %v719_v53 = vsel %vm5718_vm8, %v715_v45, %v717_v27  ;;  %v986_v26 = vrot.slane %v985_v25, 4 }
 0x2f6   : > { %v756_v47 = vsel %vm467_vm9, %v751_v31, %v753_v46  ;;  %v757_v48 = vsel %vm467_vm9, %v753_v46, %v755_v20 }
 0x2f7   : > { %3645 = vmatpush.msk.msra.mxu2 %vm3974_vm11, %v756_v47  ;;  %3651 = vmatpush.msk.msra.mxu3 %vm3987_vm12, %v757_v48 }
 0x2f9   : > { %862 = vmatpush.msra.mxu2 %v738_v50  ;;  %882 = vmatpush.msra.mxu3 %v739_v51 }
 0x2fb   : > { %3646 = vmatpush.msk.msra.mxu2 %vm3917_vm7, %v718_v52  ;;  %3652 = vmatpush.msk.msra.mxu3 %vm3911_vm6, %v719_v53 }
 0x2fc   : > { %v695_v56 = vpop.permute.xlu0 %694 }
 0x2fd   : > { %v697_v58 = vpop.permute.xlu1 %696  ;;  %v698_v60 = vsel %vm5717_vm15, %v693_v40, %v695_v56 }
 0x2fe   : > { %3647 = vmatpush.msk.msra.mxu2 %vm3974_vm11, %v698_v60  ;;  %v699_v61 = vsel %vm5717_vm15, %v695_v56, %v697_v58 }
 0x2ff   : > { %3653 = vmatpush.msk.msra.mxu3 %vm3987_vm12, %v699_v61 }
 0x300   : > { %865 = vmatpush.msra.mxu2 %v680_v62 }
 0x302   : > { %3648 = vmatpush.msk.msra.mxu2 %vm3917_vm7, %v4048_v15 }
 0x303   : > { %3617 = vmatmul.msk.f32.vlgmr.msra.gmra.mxu2 %vm5714_vm4, %v4133_v1 }
 0x304   : > { %v679_v2 = vpop.permute.xlu0 %678 }
 0x305   : > { %v681_v6 = vsel %vm5715_vm3, %v3758_v54, %v679_v2  ;;  %v845_v12 = vpop.permute.xlu1 %844  ;;  %vm5732_vm3 = vcmask 134144  }
 0x306   : > { %885 = vmatpush.msra.mxu3 %v681_v6  ;;  %991 = vst.msk [vmem:[#allocation2 + $0x8] sm:$0xf] %vm5732_vm3, %v986_v26  ;;  %vm5733_vm3 = vcmask 1043456  }
 0x308   : > { %3654 = vmatpush.msk.msra.mxu3 %vm3911_vm6, %v4061_v0 }
 0x309   : > { %3618 = vmatmul.msk.f32.vlgmr.msra.gmra.mxu3 %vm5714_vm4, %v4133_v1  ;;  %vm4157_vm4 = vcmp.lt.s32.totalorder %v277_v5, 256  ;;  %v987_v5 = vsel %vm320_vm2, %v986_v26, %v985_v25 }
 0x30a   : > { %990 = vst.msk [vmem:[#allocation2] sm:$0xff] %vm3890_vm5, %v987_v5 }
 0x30d   : > { %v1004_v37 = vld [vmem:[#allocation2 + $0x8] sm:$0xf] }
 0x30e   : > { %v1027_v40 = vld [vmem:[#allocation2 + $0x8] sm:$0xf] }
 0x30f   : > { %v1051_v44 = vld [vmem:[#allocation2 + $0x8] sm:$0xf] }
 0x310   : > { %v1081_v48 = vld [vmem:[#allocation2 + $0x8] sm:$0xf] }
 0x311   : > { %v4180_v33 = vld [vmem:[#allocation2] sm:$0xff]  ;;  %v1103_v52 = vld [vmem:[#allocation2 + $0x8] sm:$0xf] }
 0x312   : > { %v1133_v56 = vld [vmem:[#allocation2 + $0x8] sm:$0xf] }
 0x313   : > { %v1157_v62 = vld [vmem:[#allocation2 + $0x8] sm:$0xf] }
 0x386   : > { %v868_v16 = vpop.f32.mrf.mxu2 }
 0x387   : > { %v4146_v17 = vadd.f32 %v868_v16, %v845_v12  ;;  %v1180_v16 = vld [vmem:[#allocation2 + $0x8] sm:$0xf] }
 0x389   : > { %v913_v15 = vmax.f32 %v4146_v17, 0.0 }
 0x38b   : > { %926 = vst [vmem:[#allocation1] sm:$0xff] %v913_v15 }
 0x38c   : > { %v888_v18 = vpop.f32.mrf.mxu3 }
 0x38d   : > { %v4149_v8 = vadd.f32 %v888_v18, %v845_v12 }
 0x38f   : > { %v914_v11 = vmax.f32 %v4149_v8, 0.0  ;;  %v891_v20 = vmax.f32 %v4146_v17, %v4149_v8  ;;  %v902_v0 = vmin.f32 %v4146_v17, %v4149_v8 }
 0x391   : > { %927 = vst [vmem:[#allocation1 + $0x9] sm:$0xff] %v914_v11  ;;  %v917_v22 = vrot.slane %v914_v11, 7 }
 0x393   : > { %v919_v23 = vsel %vm5716_vm0, %v913_v15, %v917_v22  ;;  %vm5734_vm0 = vmmov %vm5733_vm3 }
 0x394   : > { %925 = vst.msk [vmem:[#allocation6] ss:$4 sm:$0x3] %vm4157_vm4, %v919_v23 }
 0x398   : > { %v929_v24 = vld [vmem:[#allocation1 + $0x1] ss:$9 sm:$0xff] }
 0x399   : > { %933 = vst [vmem:[#allocation1] sm:$0xff] %v913_v15 }
 0x39a   : > { %934 = vst [vmem:[#allocation1 + $0x9] sm:$0xff] %v914_v11 }
 0x39b   : > { %932 = vst.msk [vmem:[#allocation6 + $0x8] ss:$4 sm:$0x3] %vm4157_vm4, %v929_v24 }
 0x3a1   : > { %v936_v27 = vld [vmem:[#allocation1 + $0x2] ss:$9 sm:$0xff] }
 0x3a2   : > { %940 = vst [vmem:[#allocation1] sm:$0xff] %v913_v15 }
 0x3a3   : > { %941 = vst [vmem:[#allocation1 + $0x9] sm:$0xff] %v914_v11 }
 0x3a4   : > { %939 = vst.msk [vmem:[#allocation6 + $0x10] ss:$4 sm:$0x3] %vm4157_vm4, %v936_v27 }
 0x3aa   : > { %v943_v28 = vld [vmem:[#allocation1 + $0x3] ss:$9 sm:$0xff] }
 0x3ab   : > { %947 = vst [vmem:[#allocation1] sm:$0xff] %v913_v15 }
 0x3ac   : > { %948 = vst [vmem:[#allocation1 + $0x9] sm:$0xff] %v914_v11 }
 0x3ad   : > { %946 = vst.msk [vmem:[#allocation6 + $0x18] ss:$4 sm:$0x3] %vm4157_vm4, %v943_v28 }
 0x3b3   : > { %v950_v29 = vld [vmem:[#allocation1 + $0x4] ss:$9 sm:$0xff] }
 0x3b4   : > { %954 = vst [vmem:[#allocation1] sm:$0xff] %v913_v15 }
 0x3b5   : > { %955 = vst [vmem:[#allocation1 + $0x9] sm:$0xff] %v914_v11 }
 0x3b6   : > { %953 = vst.msk [vmem:[#allocation6 + $0x20] ss:$4 sm:$0x3] %vm4157_vm4, %v950_v29 }
 0x3bc   : > { %v957_v31 = vld [vmem:[#allocation1 + $0x5] ss:$9 sm:$0xff] }
 0x3bd   : > { %961 = vst [vmem:[#allocation1] sm:$0xff] %v913_v15 }
 0x3be   : > { %962 = vst [vmem:[#allocation1 + $0x9] sm:$0xff] %v914_v11 }
 0x3bf   : > { %960 = vst.msk [vmem:[#allocation6 + $0x28] ss:$4 sm:$0x3] %vm4157_vm4, %v957_v31 }
 0x3c5   : > { %v964_v32 = vld [vmem:[#allocation1 + $0x6] ss:$9 sm:$0xff] }
 0x3c6   : > { %967 = vst.msk [vmem:[#allocation6 + $0x30] ss:$4 sm:$0x3] %vm4157_vm4, %v964_v32 }
 0x3c7   : > { %968 = vst [vmem:[#allocation1] sm:$0xff] %v913_v15 }
 0x3c8   : > { %969 = vst [vmem:[#allocation1 + $0x9] sm:$0xff] %v914_v11 }
 0x3c9   : > { %994 = vst [vmem:[#allocation1] ss:$2 sm:$0xff] %v4180_v33 }
 0x3cf   : > { %v971_v34 = vld [vmem:[#allocation1 + $0x7] ss:$9 sm:$0xff] }
 0x3d0   : > { %v995_v35 = vld.sshfl [vmem:[#allocation1] sm:$0xff pattern:$0x75316420]  ;;  %v996_v36 = vld.sshfl [vmem:[#allocation1 + $0x8] sm:$0xff pattern:$0x75316420] }
 0x3d1   : > { %1008 = vst [vmem:[#allocation1 + $0x1] ss:$2 sm:$0xff] %v4180_v33  ;;  %v999_v38 = vsel %vm3917_vm7, %v995_v35, 0.0  ;;  %v1000_v39 = vsel %vm3911_vm6, %v996_v36, 0.0 }
 0x3d2   : > { %1010 = vst [vmem:[#allocation1 + $0x11] ss:$2 sm:$0xff] %v1004_v37 }
 0x3d3   : > { %974 = vst.msk [vmem:[#allocation6 + $0x38] ss:$4 sm:$0x3] %vm4157_vm4, %v971_v34 }
 0x3d4   : > { %1001 = vst [vmem:[#allocation4 + $0x30] sm:$0xf] %v999_v38 }
 0x3d5   : > { %1002 = vst [vmem:[#allocation4] sm:$0xf] %v1000_v39 }
 0x3d8   : > { %v4190_v41 = vld.sshfl [vmem:[#allocation1] sm:$0xff pattern:$0x75316420]  ;;  %v4192_v42 = vld.sshfl [vmem:[#allocation1 + $0x8] sm:$0xff pattern:$0x75316420] }
 0x3d9   : > { %v4194_v43 = vld.sshfl [vmem:[#allocation1 + $0x10] sm:$0xff pattern:$0x75316420]  ;;  %1030 = vst [vmem:[#allocation1] ss:$2 sm:$0xff] %v4180_v33 }
 0x3da   : > { %1032 = vst [vmem:[#allocation1 + $0x10] ss:$2 sm:$0xff] %v1027_v40 }
 0x3e0   : > { %v1033_v45 = vld.sshfl [vmem:[#allocation1] sm:$0xff pattern:$0x75316420]  ;;  %v1034_v46 = vld.sshfl [vmem:[#allocation1 + $0x8] sm:$0xff pattern:$0x75316420] }
 0x3e1   : > { %v1035_v47 = vld.sshfl [vmem:[#allocation1 + $0x10] sm:$0xff pattern:$0x75316420]  ;;  %1054 = vst [vmem:[#allocation1] ss:$2 sm:$0xff] %v4180_v33 }
 0x3e2   : > { %1056 = vst [vmem:[#allocation1 + $0x10] ss:$2 sm:$0xff] %v1051_v44 }
 0x3e8   : > { %v1058_v49 = vld.sshfl [vmem:[#allocation1 + $0x8] sm:$0xff pattern:$0x75316420]  ;;  %v1057_v50 = vld.sshfl [vmem:[#allocation1] sm:$0xff pattern:$0x75316420] }
 0x3e9   : > { %v1059_v51 = vld.sshfl [vmem:[#allocation1 + $0x10] sm:$0xff pattern:$0x75316420]  ;;  %1062 = vrot.lane.b32.xlu1 %v1058_v49, %s3817_s8  ;;  %1060 = vrot.lane.b32.xlu0 %v1057_v50, %s3817_s8  ;;  %1084 = vst [vmem:[#allocation1] ss:$2 sm:$0xff] %v4180_v33 }
 0x3ea   : > { %1086 = vst [vmem:[#allocation1 + $0x10] ss:$2 sm:$0xff] %v1081_v48  ;;  %1064 = vrot.lane.b32.xlu2 %v1059_v51, %s3817_s8 }
 0x3f0   : > { %v1088_v53 = vld.sshfl [vmem:[#allocation1 + $0x8] sm:$0xff pattern:$0x75316420]  ;;  %v1087_v54 = vld.sshfl [vmem:[#allocation1] sm:$0xff pattern:$0x75316420] }
 0x3f1   : > { %v1089_v55 = vld.sshfl [vmem:[#allocation1 + $0x10] sm:$0xff pattern:$0x75316420]  ;;  %1092 = vrot.lane.b32.xlu1 %v1088_v53, %s3818_s9  ;;  %1090 = vrot.lane.b32.xlu0 %v1087_v54, %s3818_s9  ;;  %1106 = vst [vmem:[#allocation1] ss:$2 sm:$0xff] %v4180_v33 }
 0x3f2   : > { %1108 = vst [vmem:[#allocation1 + $0x10] ss:$2 sm:$0xff] %v1103_v52  ;;  %1094 = vrot.lane.b32.xlu2 %v1089_v55, %s3818_s9 }
 0x3f8   : > { %v1110_v58 = vld.sshfl [vmem:[#allocation1 + $0x8] sm:$0xff pattern:$0x75316420]  ;;  %v1109_v60 = vld.sshfl [vmem:[#allocation1] sm:$0xff pattern:$0x75316420] }
 0x3f9   : > { %v1111_v61 = vld.sshfl [vmem:[#allocation1 + $0x10] sm:$0xff pattern:$0x75316420]  ;;  %1114 = vrot.lane.b32.xlu1 %v1110_v58, %s3819_s10  ;;  %1112 = vrot.lane.b32.xlu0 %v1109_v60, %s3819_s10  ;;  %1136 = vst [vmem:[#allocation1] ss:$2 sm:$0xff] %v4180_v33 }
 0x3fa   : > { %1138 = vst [vmem:[#allocation1 + $0x10] ss:$2 sm:$0xff] %v1133_v56  ;;  %1116 = vrot.lane.b32.xlu2 %v1111_v61, %s3819_s10 }
 0x400   : > { %v1140_v2 = vld.sshfl [vmem:[#allocation1 + $0x8] sm:$0xff pattern:$0x75316420]  ;;  %v1139_v6 = vld.sshfl [vmem:[#allocation1] sm:$0xff pattern:$0x75316420] }
 0x401   : > { %v1141_v12 = vld.sshfl [vmem:[#allocation1 + $0x10] sm:$0xff pattern:$0x75316420]  ;;  %1144 = vrot.lane.b32.xlu1 %v1140_v2, %s3820_s11  ;;  %1142 = vrot.lane.b32.xlu0 %v1139_v6, %s3820_s11  ;;  %1161 = vst [vmem:[#allocation1 + $0x1] ss:$2 sm:$0xff] %v4180_v33 }
 0x402   : > { %1163 = vst [vmem:[#allocation1 + $0x11] ss:$2 sm:$0xff] %v1157_v62  ;;  %1146 = vrot.lane.b32.xlu2 %v1141_v12, %s3820_s11 }
 0x408   : > { %v1165_v15 = vld.sshfl [vmem:[#allocation1 + $0x8] sm:$0xff pattern:$0x75316420]  ;;  %v1164_v18 = vld.sshfl [vmem:[#allocation1] sm:$0xff pattern:$0x75316420] }
 0x409   : > { %v1166_v11 = vld.sshfl [vmem:[#allocation1 + $0x10] sm:$0xff pattern:$0x75316420]  ;;  %1169 = vrot.lane.b32.xlu1 %v1165_v15, %s3821_s12  ;;  %1167 = vrot.lane.b32.xlu0 %v1164_v18, %s3821_s12  ;;  %1183 = vst [vmem:[#allocation1] ss:$2 sm:$0xff] %v4180_v33 }
 0x40a   : > { %1185 = vst [vmem:[#allocation1 + $0x10] ss:$2 sm:$0xff] %v1180_v16  ;;  %1171 = vrot.lane.b32.xlu2 %v1166_v11, %s3821_s12 }
 0x410   : > { %v1187_v22 = vld.sshfl [vmem:[#allocation1 + $0x8] sm:$0xff pattern:$0x75316420]  ;;  %v1186_v23 = vld.sshfl [vmem:[#allocation1] sm:$0xff pattern:$0x75316420] }
 0x411   : > { %v1188_v24 = vld.sshfl [vmem:[#allocation1 + $0x10] sm:$0xff pattern:$0x75316420]  ;;  %1191 = vrot.lane.b32.xlu1 %v1187_v22, %s3822_s13  ;;  %1189 = vrot.lane.b32.xlu0 %v1186_v23, %s3822_s13 }
 0x412   : > { %1193 = vrot.lane.b32.xlu2 %v1188_v24, %s3822_s13 }
 0x419   : > { %1038 = vrot.lane.b32.xlu1 %v1034_v46, %s3823_s14  ;;  %1036 = vrot.lane.b32.xlu0 %v1033_v45, %s3823_s14 }
 0x41a   : > { %1040 = vrot.lane.b32.xlu2 %v1035_v47, %s3823_s14 }
 0x421   : > { %1016 = vrot.lane.b32.xlu1 %v4192_v42, %s3824_s15  ;;  %1014 = vrot.lane.b32.xlu0 %v4190_v41, %s3824_s15 }
 0x422   : > { %1018 = vrot.lane.b32.xlu2 %v4194_v43, %s3824_s15 }
 0x429   : > { %1217 = vperm.xlu0 %3759, %v4006_v30  }
 0x444   : > { %v1065_v25 = vpop.permute.xlu2 %1064 }
 0x44c   : > { %v1095_v26 = vpop.permute.xlu2 %1094 }
 0x454   : > { %v1117_v35 = vpop.permute.xlu2 %1116 }
 0x45b   : > { %v1063_v5 = vpop.permute.xlu1 %1062  ;;  %v1061_v27 = vpop.permute.xlu0 %1060 }
 0x45c   : > { %v1067_v28 = vsel %vm5718_vm8, %v1063_v5, %v1065_v25  ;;  %v1066_v29 = vsel %vm5718_vm8, %v1061_v27, %v1063_v5  ;;  %v1147_v39 = vpop.permute.xlu2 %1146 }
 0x45d   : > { %v1071_v31 = vsel %vm3911_vm6, %v1067_v28, 0.0  ;;  %v1070_v32 = vsel %vm3917_vm7, %v1066_v29, 0.0 }
 0x45e   : > { %v1075_v33 = vrot.slane %v1071_v31, 4  ;;  %v1074_v34 = vrot.slane %v1070_v32, 4 }
 0x460   : > { %1079 = vst [vmem:[#allocation4 + $0x10] sm:$0xf0] %v1075_v33 }
 0x461   : > { %1078 = vst [vmem:[#allocation4 + $0x18] sm:$0xf0] %v1074_v34 }
 0x463   : > { %v1093_v30 = vpop.permute.xlu1 %1092  ;;  %v1091_v36 = vpop.permute.xlu0 %1090 }
 0x464   : > { %v1097_v37 = vsel %vm444_vm10, %v1093_v30, %v1095_v26  ;;  %v1096_v38 = vsel %vm444_vm10, %v1091_v36, %v1093_v30  ;;  %v1172_v50 = vpop.permute.xlu2 %1171 }
 0x465   : > { %1101 = vst [vmem:[#allocation4 + $0x28] sm:$0xf] %v1097_v37 }
 0x466   : > { %1100 = vst [vmem:[#allocation4 + $0x48] sm:$0xf] %v1096_v38 }
 0x46b   : > { %v1115_v40 = vpop.permute.xlu1 %1114  ;;  %v1113_v41 = vpop.permute.xlu0 %1112 }
 0x46c   : > { %v1119_v42 = vsel %vm467_vm9, %v1115_v40, %v1117_v35  ;;  %v1118_v43 = vsel %vm467_vm9, %v1113_v41, %v1115_v40  ;;  %v1194_v61 = vpop.permute.xlu2 %1193 }
 0x46d   : > { %v1123_v44 = vsel %vm3987_vm12, %v1119_v42, 0.0  ;;  %v1122_v45 = vsel %vm3974_vm11, %v1118_v43, 0.0 }
 0x46e   : > { %v1127_v46 = vrot.slane %v1123_v44, 4  ;;  %v1126_v47 = vrot.slane %v1122_v45, 4 }
 0x470   : > { %1131 = vst [vmem:[#allocation4 + $0x28] sm:$0xf0] %v1127_v46 }
 0x471   : > { %1130 = vst [vmem:[#allocation4 + $0x48] sm:$0xf0] %v1126_v47 }
 0x473   : > { %v1145_v48 = vpop.permute.xlu1 %1144  ;;  %v1143_v49 = vpop.permute.xlu0 %1142 }
 0x474   : > { %v1149_v51 = vsel %vm498_vm13, %v1145_v48, %v1147_v39  ;;  %v1148_v52 = vsel %vm498_vm13, %v1143_v49, %v1145_v48  ;;  %v1041_v18 = vpop.permute.xlu2 %1040 }
 0x475   : > { %v1153_v53 = vsel %vm3911_vm6, %v1149_v51, 0.0  ;;  %v1152_v54 = vsel %vm3917_vm7, %v1148_v52, 0.0 }
 0x476   : > { %1155 = vst [vmem:[#allocation4 + $0x20] sm:$0xf] %v1153_v53 }
 0x477   : > { %1154 = vst [vmem:[#allocation4 + $0x8] sm:$0xf] %v1152_v54  ;;  %v1209_v31 = vld [vmem:[#allocation4 + $0x28] sm:$0xff] }
 0x478   : > { %v1208_v33 = vld [vmem:[#allocation4 + $0x48] sm:$0xff] }
 0x47b   : > { %v1170_v55 = vpop.permute.xlu1 %1169  ;;  %v1168_v56 = vpop.permute.xlu0 %1167 }
 0x47c   : > { %v1174_v58 = vsel %vm524_vm14, %v1170_v55, %v1172_v50  ;;  %v1173_v60 = vsel %vm524_vm14, %v1168_v56, %v1170_v55  ;;  %v1019_v32 = vpop.permute.xlu2 %1018 }
 0x47d   : > { %1178 = vst [vmem:[#allocation4 + $0x20] sm:$0xf0] %v1174_v58 }
 0x47e   : > { %1177 = vst [vmem:[#allocation4 + $0x8] sm:$0xf0] %v1173_v60 }
 0x483   : > { %v1192_v62 = vpop.permute.xlu1 %1191  ;;  %v1190_v2 = vpop.permute.xlu0 %1189 }
 0x484   : > { %v1196_v6 = vsel %vm5719_vm1, %v1192_v62, %v1194_v61  ;;  %v1195_v12 = vsel %vm5719_vm1, %v1190_v2, %v1192_v62  ;;  %v1211_v28 = vld [vmem:[#allocation4 + $0x20] sm:$0xff] }
 0x485   : > { %v1200_v16 = vsel %vm3987_vm12, %v1196_v6, 0.0  ;;  %v1199_v15 = vsel %vm3974_vm11, %v1195_v12, 0.0  ;;  %v1210_v29 = vld [vmem:[#allocation4 + $0x8] sm:$0xff] }
 0x486   : > { %1202 = vst [vmem:[#allocation4 + $0x38] sm:$0xf] %v1200_v16 }
 0x487   : > { %1201 = vst [vmem:[#allocation4 + $0x40] sm:$0xf] %v1199_v15 }
 0x48b   : > { %v1039_v11 = vpop.permute.xlu1 %1038  ;;  %v1037_v22 = vpop.permute.xlu0 %1036 }
 0x48c   : > { %v1043_v23 = vsel %vm5717_vm15, %v1039_v11, %v1041_v18  ;;  %v1042_v24 = vsel %vm5717_vm15, %v1037_v22, %v1039_v11  ;;  %vm5735_vm15 = vcmask 1039360  }
 0x48d   : > { %v1047_v25 = vsel %vm3987_vm12, %v1043_v23, 0.0  ;;  %v1046_v26 = vsel %vm3974_vm11, %v1042_v24, 0.0  ;;  %v1213_v5 = vld [vmem:[#allocation4 + $0x38] sm:$0xf]  ;;  %vm5736_vm8 = vmmov %vm5735_vm15  ;;  %v3626_v23 = vld [vmem:[%s3886_s29 + $0x10] sm:$0xff] }
 0x48e   : > { %1049 = vst [vmem:[#allocation4 + $0x10] sm:$0xf] %v1047_v25  ;;  %v1212_v27 = vld [vmem:[#allocation4 + $0x40] sm:$0xf]  ;;  %3622 = vmatpush.msk.msrb.mxu1 %vm5733_vm3, %v1213_v5 }
 0x48f   : > { %1048 = vst [vmem:[#allocation4 + $0x18] sm:$0xf] %v1046_v26  ;;  %3620 = vmatpush.msk.msrb.mxu0 %vm5734_vm0, %v1212_v27  ;;  %vm5737_vm0 = vcmask 293888  }
 0x490   : > { %1261 = vmatpush.msrb.mxu1 %v1211_v28  ;;  %vm5738_vm3 = vmmov %vm5737_vm0 }
 0x491   : > { %1241 = vmatpush.msrb.mxu0 %v1210_v29 }
 0x492   : > { %1262 = vmatpush.msrb.mxu1 %v1209_v31 }
 0x493   : > { %1242 = vmatpush.msrb.mxu0 %v1208_v33  ;;  %v1017_v34 = vpop.permute.xlu1 %1016  ;;  %v1015_v35 = vpop.permute.xlu0 %1014 }
 0x494   : > { %v1021_v30 = vsel %vm5735_vm15, %v1017_v34, %v1019_v32  ;;  %v1020_v36 = vsel %vm5736_vm8, %v1015_v35, %v1017_v34  ;;  %vm5739_vm8 = vcmask 1047688   ;;  %vm5740_vm15 = vcmask 916480  }
 0x495   : > { %1025 = vst [vmem:[#allocation4] sm:$0xf0] %v1021_v30  ;;  %v1207_v37 = vld [vmem:[#allocation4 + $0x10] sm:$0xff] }
 0x496   : > { %1024 = vst [vmem:[#allocation4 + $0x30] sm:$0xf0] %v1020_v36  ;;  %v1206_v38 = vld [vmem:[#allocation4 + $0x18] sm:$0xff]  ;;  %1263 = vmatpush.msrb.mxu1 %v1207_v37 }
 0x497   : > { %1243 = vmatpush.msrb.mxu0 %v1206_v38 }
 0x49b   : > { %v1218_v41 = vpop.permute.xlu0 %1217 }
 0x49c   : > { %v1205_v39 = vld [vmem:[#allocation4] sm:$0xff] }
 0x49d   : > { %v1204_v40 = vld [vmem:[#allocation4 + $0x30] sm:$0xff]  ;;  %1264 = vmatpush.msrb.mxu1 %v1205_v39 }
 0x49e   : > { %1244 = vmatpush.msrb.mxu0 %v1204_v40  ;;  %3623 = vmatmul.msk.f32.vlgmr.msrb.gmra.mxu1 %vm5737_vm0, %v4028_v59  ;;  %vm5741_vm0 = vmmov %vm5740_vm15 }
 0x49f   : > { %3621 = vmatmul.msk.f32.vlgmr.msrb.gmra.mxu0 %vm5738_vm3, %v4028_v59  ;;  %vm5742_vm3 = vcmask 1031168  }
 0x51b   : > { %v1266_v42 = vpop.f32.mrf.mxu1 }
 0x51c   : > { %v1246_v43 = vpop.f32.mrf.mxu0  ;;  %v4273_v44 = vadd.f32 %v1266_v42, %v1218_v41 }
 0x51d   : > { %v4275_v45 = vadd.f32 %v1246_v43, %v1218_v41 }
 0x51e   : > { %v1292_v46 = vmax.f32 %v4273_v44, 0.0 }
 0x51f   : > { %v1291_v47 = vmax.f32 %v4275_v45, 0.0  ;;  %v1280_v48 = vmin.f32 %v4275_v45, %v4273_v44  ;;  %v1269_v49 = vmax.f32 %v4275_v45, %v4273_v44 }
 0x520   : > { %1297 = vrot.lane.b32.xlu2 %v1292_v46, %s3816_s30 }
 0x521   : > { %1295 = vrot.lane.b32.xlu1 %v1291_v47, %s3816_s30 }
 0x57a   : > { %v1298_v59 = vpop.permute.xlu2 %1297 }
 0x57b   : > { %1305 = vst.msk [vmem:[#allocation3 + $0x10] sm:$0xff] %vm320_vm2, %v1298_v59 }
 0x582   : > { %v1448_v50 = vld [vmem:[#allocation3 + $0x10] sm:$0xff] }
 0x583   : > { %1456 = vrot.lane.b32.xlu0 %v1448_v50, %s3822_s13  ;;  %1438 = vrot.lane.b32.xlu2 %v1448_v50, %s3821_s12 }
 0x58b   : > { %1418 = vrot.lane.b32.xlu2 %v1448_v50, %s3820_s11 }
 0x593   : > { %v1296_v51 = vpop.permute.xlu1 %1295  ;;  %1398 = vrot.lane.b32.xlu2 %v1448_v50, %s3819_s10 }
 0x594   : > { %1303 = vst.msk [vmem:[#allocation3] sm:$0xff] %vm5739_vm8, %v1296_v51  ;;  %v4300_v53 = vsel %vm320_vm2, %v1296_v51, %v1298_v59  ;;  %vm5743_vm8 = vcmask 1039360  }
 0x59b   : > { %v4291_v52 = vld [vmem:[#allocation3] sm:$0xff] }
 0x59c   : > { %1452 = vrot.lane.b32.xlu1 %v4291_v52, %s3822_s13  ;;  %1414 = vrot.lane.b32.xlu0 %v4291_v52, %s3820_s11  ;;  %v3765_v54 = vpack.i.bf16 %v4300_v53, %v4291_v52 }
 0x59d   : > { %1356 = vrot.lane.b32.xlu2 %v4291_v52, %s3817_s8 }
 0x5a4   : > { %1380 = vrot.lane.b32.xlu1 %v1448_v50, %s3818_s9  ;;  %1394 = vrot.lane.b32.xlu0 %v4291_v52, %s3819_s10 }
 0x5a5   : > { %1454 = vrot.lane.b32.xlu2 %v4300_v53, %s3822_s13 }
 0x5ac   : > { %1360 = vrot.lane.b32.xlu1 %v1448_v50, %s3817_s8  ;;  %3766 = vrot.lane.b32.xlu0 %v3765_v54, %s3818_s9 }
 0x5ad   : > { %1336 = vrot.lane.b32.xlu2 %v4291_v52, %s3823_s14 }
 0x5b4   : > { %3761 = vrot.lane.b32.xlu1 %v3765_v54, %s3821_s12  ;;  %1358 = vrot.lane.b32.xlu0 %v4300_v53, %s3817_s8 }
 0x5b5   : > { %3771 = vrot.lane.b32.xlu2 %v3765_v54, %s3824_s15 }
 0x5bc   : > { %1416 = vrot.lane.b32.xlu1 %v4300_v53, %s3820_s11  ;;  %1338 = vrot.lane.b32.xlu0 %v4300_v53, %s3823_s14 }
 0x5bd   : > { %1620 = vrot.lane.b32.xlu2 %v3626_v23, %s3816_s30 }
 0x5c4   : > { %1396 = vrot.lane.b32.xlu1 %v4300_v53, %s3819_s10  ;;  %1322 = vrot.lane.b32.xlu0 %v1448_v50, %s3824_s15 }
 0x5cc   : > { %1340 = vrot.lane.b32.xlu1 %v1448_v50, %s3823_s14 }
 0x5d4   : > { %1488 = vperm.xlu1 %3743, %v4088_v19  }
 0x5dd   : > { %v1439_v55 = vpop.permute.xlu2 %1438 }
 0x5e5   : > { %v1419_v56 = vpop.permute.xlu2 %1418 }
 0x5ed   : > { %v1399_v58 = vpop.permute.xlu2 %1398 }
 0x5f5   : > { %v1457_v61 = vpop.permute.xlu0 %1456 }
 0x5f7   : > { %v1357_v60 = vpop.permute.xlu2 %1356 }
 0x5ff   : > { %v1455_v62 = vpop.permute.xlu2 %1454 }
 0x600   : > { %v1459_v2 = vsel %vm5719_vm1, %v1455_v62, %v1457_v61 }
 0x601   : > { %3661 = vmatpush.msk.msrb.mxu3 %vm3987_vm12, %v1459_v2 }
 0x607   : > { %v1337_v28 = vpop.permute.xlu2 %1336 }
 0x60e   : > { %v1453_v6 = vpop.permute.xlu1 %1452  ;;  %v1415_v12 = vpop.permute.xlu0 %1414 }
 0x60f   : > { %v1458_v16 = vsel %vm5719_vm1, %v1453_v6, %v1455_v62  ;;  %v3772_v38 = vpop.permute.xlu2 %3771  ;;  %vm5744_vm1 = vmmov %vm5742_vm3 }
 0x610   : > { %3655 = vmatpush.msk.msrb.mxu2 %vm3974_vm11, %v1458_v16  ;;  %v3774_v41 = vunpack.i.h.bf16 %v3772_v38  ;;  %v3773_v42 = vunpack.i.l.bf16 %v3772_v38 }
 0x612   : > { %v1324_v51 = vsel %vm5743_vm8, %v3773_v42, %v3774_v41 }
 0x616   : > { %v1381_v19 = vpop.permute.xlu1 %1380  ;;  %v1395_v15 = vpop.permute.xlu0 %1394 }
 0x61e   : > { %v1361_v18 = vpop.permute.xlu1 %1360  ;;  %v3767_v11 = vpop.permute.xlu0 %3766 }
 0x61f   : > { %v3769_v34 = vunpack.i.h.bf16 %v3767_v11  ;;  %v3768_v35 = vunpack.i.l.bf16 %v3767_v11 }
 0x621   : > { %v1382_v39 = vsel %vm444_vm10, %v3768_v35, %v3769_v34  ;;  %v1383_v40 = vsel %vm444_vm10, %v3769_v34, %v1381_v19  ;;  %v1621_v19 = vpop.permute.xlu2 %1620 }
 0x626   : > { %v3762_v22 = vpop.permute.xlu1 %3761  ;;  %v1359_v27 = vpop.permute.xlu0 %1358 }
 0x627   : > { %v3764_v24 = vunpack.i.h.bf16 %v3762_v22  ;;  %v3763_v25 = vunpack.i.l.bf16 %v3762_v22  ;;  %v1362_v43 = vsel %vm5740_vm15, %v1357_v60, %v1359_v27  ;;  %v1363_v46 = vsel %vm5741_vm0, %v1359_v27, %v1361_v18  ;;  %vm5745_vm15 = vmmov %vm5743_vm8 }
 0x628   : > { %vm5746_vm0 = vcmask 588800   ;;  %vm5749_vm8 = vcmask 134144  }
 0x629   : > { %v1440_v26 = vsel %vm524_vm14, %v3763_v25, %v3764_v24  ;;  %v1441_v5 = vsel %vm524_vm14, %v3764_v24, %v1439_v55 }
 0x62a   : > { %1502 = vmatpush.msrb.mxu2 %v1440_v26  ;;  %1522 = vmatpush.msrb.mxu3 %v1441_v5 }
 0x62e   : > { %v1417_v29 = vpop.permute.xlu1 %1416  ;;  %v1339_v33 = vpop.permute.xlu0 %1338 }
 0x62f   : > { %v1420_v31 = vsel %vm498_vm13, %v1415_v12, %v1417_v29  ;;  %v1421_v32 = vsel %vm498_vm13, %v1417_v29, %v1419_v56  ;;  %v1342_v47 = vsel %vm5742_vm3, %v1337_v28, %v1339_v33  ;;  %vm5748_vm3 = vcmask 1040384  }
 0x630   : > { %3656 = vmatpush.msk.msrb.mxu2 %vm3917_vm7, %v1420_v31  ;;  %3662 = vmatpush.msk.msrb.mxu3 %vm3911_vm6, %v1421_v32 }
 0x636   : > { %v1397_v30 = vpop.permute.xlu1 %1396  ;;  %v1323_v59 = vpop.permute.xlu0 %1322 }
 0x637   : > { %v1400_v36 = vsel %vm467_vm9, %v1395_v15, %v1397_v30  ;;  %v1401_v37 = vsel %vm467_vm9, %v1397_v30, %v1399_v58  ;;  %v1325_v55 = vsel %vm5745_vm15, %v3774_v41, %v1323_v59  ;;  %v1622_v15 = vrot.slane %v1621_v19, 4 }
 0x638   : > { %3657 = vmatpush.msk.msrb.mxu2 %vm3974_vm11, %v1400_v36  ;;  %3663 = vmatpush.msk.msrb.mxu3 %vm3987_vm12, %v1401_v37  ;;  %vm5750_vm15 = vcmask 916480  }
 0x639   : > { %v1623_v18 = vsel %vm320_vm2, %v1622_v15, %v1621_v19  ;;  %1627 = vst.msk [vmem:[#allocation2 + $0x8] sm:$0xf] %vm5749_vm8, %v1622_v15  ;;  %vm5754_vm8 = vcmask 1031168  }
 0x63a   : > { %1505 = vmatpush.msrb.mxu2 %v1382_v39  ;;  %1525 = vmatpush.msrb.mxu3 %v1383_v40  ;;  %1626 = vst.msk [vmem:[#allocation2] sm:$0xff] %vm3890_vm5, %v1623_v18 }
 0x63c   : > { %3658 = vmatpush.msk.msrb.mxu2 %vm3917_vm7, %v1362_v43  ;;  %3664 = vmatpush.msk.msrb.mxu3 %vm3911_vm6, %v1363_v46 }
 0x63e   : > { %v1341_v50 = vpop.permute.xlu1 %1340  ;;  %3659 = vmatpush.msk.msrb.mxu2 %vm3974_vm11, %v1342_v47 }
 0x63f   : > { %v1343_v54 = vsel %vm5744_vm1, %v1339_v33, %v1341_v50  ;;  %vm5747_vm1 = vmmov %vm5746_vm0 }
 0x640   : > { %1508 = vmatpush.msrb.mxu2 %v1324_v51  ;;  %3665 = vmatpush.msk.msrb.mxu3 %vm3987_vm12, %v1343_v54  ;;  %v1640_v27 = vld [vmem:[#allocation2 + $0x8] sm:$0xf] }
 0x641   : > { %v4403_v26 = vld [vmem:[#allocation2] sm:$0xff]  ;;  %v1663_v34 = vld [vmem:[#allocation2 + $0x8] sm:$0xf] }
 0x642   : > { %3660 = vmatpush.msk.msrb.mxu2 %vm3917_vm7, %v4291_v52  ;;  %1528 = vmatpush.msrb.mxu3 %v1325_v55  ;;  %v1687_v36 = vld [vmem:[#allocation2 + $0x8] sm:$0xf] }
 0x643   : > { %3624 = vmatmul.msk.f32.vlgmr.msrb.gmra.mxu2 %vm5746_vm0, %v4133_v1  ;;  %v1717_v40 = vld [vmem:[#allocation2 + $0x8] sm:$0xf]  ;;  %vm5751_vm0 = vmmov %vm5750_vm15 }
 0x644   : > { %3666 = vmatpush.msk.msrb.mxu3 %vm3911_vm6, %v4300_v53  ;;  %v1739_v46 = vld [vmem:[#allocation2 + $0x8] sm:$0xf] }
 0x645   : > { %3625 = vmatmul.msk.f32.vlgmr.msrb.gmra.mxu3 %vm5747_vm1, %v4133_v1  ;;  %v1769_v51 = vld [vmem:[#allocation2 + $0x8] sm:$0xf]  ;;  %vm5752_vm1 = vcmask 769024  }
 0x646   : > { %v1489_v56 = vpop.permute.xlu1 %1488 }
 0x6c6   : > { %v1511_v58 = vpop.f32.mrf.mxu2 }
 0x6c7   : > { %v4374_v60 = vadd.f32 %v1511_v58, %v1489_v56  ;;  %v1793_v58 = vld [vmem:[#allocation2 + $0x8] sm:$0xf] }
 0x6c8   : > { %v1531_v61 = vpop.f32.mrf.mxu3 }
 0x6c9   : > { %v1556_v62 = vmax.f32 %v4374_v60, 0.0  ;;  %v4377_v2 = vadd.f32 %v1531_v61, %v1489_v56 }
 0x6cb   : > { %1565 = vst [vmem:[#allocation1] sm:$0xff] %v1556_v62  ;;  %v1557_v52 = vmax.f32 %v4377_v2, 0.0  ;;  %v1545_v6 = vmin.f32 %v4374_v60, %v4377_v2  ;;  %v1534_v53 = vmax.f32 %v4374_v60, %v4377_v2 }
 0x6cd   : > { %1566 = vst [vmem:[#allocation1 + $0x9] sm:$0xff] %v1557_v52  ;;  %v1560_v1 = vrot.slane %v1557_v52, 7 }
 0x6cf   : > { %v1561_v12 = vsel %vm5748_vm3, %v1556_v62, %v1560_v1  ;;  %v1816_v1 = vld [vmem:[#allocation2 + $0x8] sm:$0xf]  ;;  %vm5753_vm3 = vmmov %vm5752_vm1 }
 0x6d0   : > { %1564 = vst.msk [vmem:[#allocation6 + $0x1] ss:$4 sm:$0x3] %vm4157_vm4, %v1561_v12 }
 0x6d4   : > { %v1568_v16 = vld [vmem:[#allocation1 + $0x1] ss:$9 sm:$0xff] }
 0x6d5   : > { %1572 = vst [vmem:[#allocation1] sm:$0xff] %v1556_v62 }
 0x6d6   : > { %1573 = vst [vmem:[#allocation1 + $0x9] sm:$0xff] %v1557_v52 }
 0x6d7   : > { %1571 = vst.msk [vmem:[#allocation6 + $0x9] ss:$4 sm:$0x3] %vm4157_vm4, %v1568_v16 }
 0x6dd   : > { %v1575_v11 = vld [vmem:[#allocation1 + $0x2] ss:$9 sm:$0xff] }
 0x6de   : > { %1579 = vst [vmem:[#allocation1] sm:$0xff] %v1556_v62 }
 0x6df   : > { %1580 = vst [vmem:[#allocation1 + $0x9] sm:$0xff] %v1557_v52 }
 0x6e0   : > { %1578 = vst.msk [vmem:[#allocation6 + $0x11] ss:$4 sm:$0x3] %vm4157_vm4, %v1575_v11 }
 0x6e6   : > { %v1582_v22 = vld [vmem:[#allocation1 + $0x3] ss:$9 sm:$0xff] }
 0x6e7   : > { %1586 = vst [vmem:[#allocation1] sm:$0xff] %v1556_v62 }
 0x6e8   : > { %1587 = vst [vmem:[#allocation1 + $0x9] sm:$0xff] %v1557_v52 }
 0x6e9   : > { %1585 = vst.msk [vmem:[#allocation6 + $0x19] ss:$4 sm:$0x3] %vm4157_vm4, %v1582_v22  ;;  %v4453_v22 = vld [vmem:[%s5704_s2] sm:$0xff] }
 0x6ef   : > { %v1589_v23 = vld [vmem:[#allocation1 + $0x4] ss:$9 sm:$0xff] }
 0x6f0   : > { %1593 = vst [vmem:[#allocation1] sm:$0xff] %v1556_v62 }
 0x6f1   : > { %1594 = vst [vmem:[#allocation1 + $0x9] sm:$0xff] %v1557_v52 }
 0x6f2   : > { %1592 = vst.msk [vmem:[#allocation6 + $0x21] ss:$4 sm:$0x3] %vm4157_vm4, %v1589_v23 }
 0x6f8   : > { %v1596_v24 = vld [vmem:[#allocation1 + $0x5] ss:$9 sm:$0xff] }
 0x6f9   : > { %1600 = vst [vmem:[#allocation1] sm:$0xff] %v1556_v62 }
 0x6fa   : > { %1601 = vst [vmem:[#allocation1 + $0x9] sm:$0xff] %v1557_v52 }
 0x6fb   : > { %1599 = vst.msk [vmem:[#allocation6 + $0x29] ss:$4 sm:$0x3] %vm4157_vm4, %v1596_v24 }
 0x701   : > { %v1603_v25 = vld [vmem:[#allocation1 + $0x6] ss:$9 sm:$0xff] }
 0x702   : > { %1606 = vst.msk [vmem:[#allocation6 + $0x31] ss:$4 sm:$0x3] %vm4157_vm4, %v1603_v25 }
 0x703   : > { %1607 = vst [vmem:[#allocation1] sm:$0xff] %v1556_v62 }
 0x704   : > { %1608 = vst [vmem:[#allocation1 + $0x9] sm:$0xff] %v1557_v52 }
 0x705   : > { %1630 = vst [vmem:[#allocation1] ss:$2 sm:$0xff] %v4403_v26 }
 0x70b   : > { %v1610_v5 = vld [vmem:[#allocation1 + $0x7] ss:$9 sm:$0xff] }
 0x70c   : > { %1646 = vst [vmem:[#allocation1 + $0x11] ss:$2 sm:$0xff] %v1640_v27  ;;  %v1632_v28 = vld.sshfl [vmem:[#allocation1 + $0x8] sm:$0xff pattern:$0x75316420] }
 0x70d   : > { %1613 = vst.msk [vmem:[#allocation6 + $0x39] ss:$4 sm:$0x3] %vm4157_vm4, %v1610_v5  ;;  %v1631_v29 = vld.sshfl [vmem:[#allocation1] sm:$0xff pattern:$0x75316420] }
 0x70e   : > { %1644 = vst [vmem:[#allocation1 + $0x1] ss:$2 sm:$0xff] %v4403_v26  ;;  %v1636_v31 = vsel %vm3911_vm6, %v1632_v28, 0.0  ;;  %v1635_v32 = vsel %vm3917_vm7, %v1631_v29, 0.0 }
 0x70f   : > { %1638 = vst [vmem:[#allocation4] sm:$0xf] %v1636_v31 }
 0x710   : > { %1637 = vst [vmem:[#allocation4 + $0x30] sm:$0xf] %v1635_v32 }
 0x713   : > { %v4413_v33 = vld.sshfl [vmem:[#allocation1 + $0x10] sm:$0xff pattern:$0x75316420] }
 0x714   : > { %1668 = vst [vmem:[#allocation1 + $0x10] ss:$2 sm:$0xff] %v1663_v34 }
 0x715   : > { %v4415_v35 = vld.sshfl [vmem:[#allocation1] sm:$0xff pattern:$0x75316420]  ;;  %v1648_v30 = vld.sshfl [vmem:[#allocation1 + $0x8] sm:$0xff pattern:$0x75316420] }
 0x716   : > { %1666 = vst [vmem:[#allocation1] ss:$2 sm:$0xff] %v4403_v26 }
 0x71b   : > { %v1671_v37 = vld.sshfl [vmem:[#allocation1 + $0x10] sm:$0xff pattern:$0x75316420] }
 0x71c   : > { %1692 = vst [vmem:[#allocation1 + $0x10] ss:$2 sm:$0xff] %v1687_v36 }
 0x71d   : > { %v1669_v38 = vld.sshfl [vmem:[#allocation1] sm:$0xff pattern:$0x75316420]  ;;  %v1670_v39 = vld.sshfl [vmem:[#allocation1 + $0x8] sm:$0xff pattern:$0x75316420] }
 0x71e   : > { %1690 = vst [vmem:[#allocation1] ss:$2 sm:$0xff] %v4403_v26 }
 0x723   : > { %v1695_v41 = vld.sshfl [vmem:[#allocation1 + $0x10] sm:$0xff pattern:$0x75316420] }
 0x724   : > { %1700 = vrot.lane.b32.xlu2 %v1695_v41, %s3817_s8  ;;  %1722 = vst [vmem:[#allocation1 + $0x10] ss:$2 sm:$0xff] %v1717_v40 }
 0x725   : > { %v1694_v42 = vld.sshfl [vmem:[#allocation1 + $0x8] sm:$0xff pattern:$0x75316420]  ;;  %v1693_v43 = vld.sshfl [vmem:[#allocation1] sm:$0xff pattern:$0x75316420] }
 0x726   : > { %1698 = vrot.lane.b32.xlu1 %v1694_v42, %s3817_s8  ;;  %1696 = vrot.lane.b32.xlu0 %v1693_v43, %s3817_s8  ;;  %1720 = vst [vmem:[#allocation1] ss:$2 sm:$0xff] %v4403_v26 }
 0x72b   : > { %v1725_v47 = vld.sshfl [vmem:[#allocation1 + $0x10] sm:$0xff pattern:$0x75316420] }
 0x72c   : > { %1730 = vrot.lane.b32.xlu2 %v1725_v47, %s3818_s9  ;;  %1744 = vst [vmem:[#allocation1 + $0x10] ss:$2 sm:$0xff] %v1739_v46 }
 0x72d   : > { %v1724_v59 = vld.sshfl [vmem:[#allocation1 + $0x8] sm:$0xff pattern:$0x75316420]  ;;  %v1723_v50 = vld.sshfl [vmem:[#allocation1] sm:$0xff pattern:$0x75316420] }
 0x72e   : > { %1728 = vrot.lane.b32.xlu1 %v1724_v59, %s3818_s9  ;;  %1726 = vrot.lane.b32.xlu0 %v1723_v50, %s3818_s9  ;;  %1742 = vst [vmem:[#allocation1] ss:$2 sm:$0xff] %v4403_v26 }
 0x733   : > { %v1747_v54 = vld.sshfl [vmem:[#allocation1 + $0x10] sm:$0xff pattern:$0x75316420] }
 0x734   : > { %1752 = vrot.lane.b32.xlu2 %v1747_v54, %s3819_s10  ;;  %1774 = vst [vmem:[#allocation1 + $0x10] ss:$2 sm:$0xff] %v1769_v51 }
 0x735   : > { %v1746_v55 = vld.sshfl [vmem:[#allocation1 + $0x8] sm:$0xff pattern:$0x75316420]  ;;  %v1745_v56 = vld.sshfl [vmem:[#allocation1] sm:$0xff pattern:$0x75316420] }
 0x736   : > { %1750 = vrot.lane.b32.xlu1 %v1746_v55, %s3819_s10  ;;  %1748 = vrot.lane.b32.xlu0 %v1745_v56, %s3819_s10  ;;  %1772 = vst [vmem:[#allocation1] ss:$2 sm:$0xff] %v4403_v26 }
 0x73b   : > { %v1777_v61 = vld.sshfl [vmem:[#allocation1 + $0x10] sm:$0xff pattern:$0x75316420] }
 0x73c   : > { %1782 = vrot.lane.b32.xlu2 %v1777_v61, %s3820_s11  ;;  %1799 = vst [vmem:[#allocation1 + $0x11] ss:$2 sm:$0xff] %v1793_v58 }
 0x73d   : > { %v1776_v62 = vld.sshfl [vmem:[#allocation1 + $0x8] sm:$0xff pattern:$0x75316420]  ;;  %v1775_v52 = vld.sshfl [vmem:[#allocation1] sm:$0xff pattern:$0x75316420] }
 0x73e   : > { %1780 = vrot.lane.b32.xlu1 %v1776_v62, %s3820_s11  ;;  %1778 = vrot.lane.b32.xlu0 %v1775_v52, %s3820_s11  ;;  %1797 = vst [vmem:[#allocation1 + $0x1] ss:$2 sm:$0xff] %v4403_v26 }
 0x743   : > { %v1802_v12 = vld.sshfl [vmem:[#allocation1 + $0x10] sm:$0xff pattern:$0x75316420] }
 0x744   : > { %1807 = vrot.lane.b32.xlu2 %v1802_v12, %s3821_s12  ;;  %1821 = vst [vmem:[#allocation1 + $0x10] ss:$2 sm:$0xff] %v1816_v1 }
 0x745   : > { %v1801_v16 = vld.sshfl [vmem:[#allocation1 + $0x8] sm:$0xff pattern:$0x75316420]  ;;  %v1800_v19 = vld.sshfl [vmem:[#allocation1] sm:$0xff pattern:$0x75316420] }
 0x746   : > { %1805 = vrot.lane.b32.xlu1 %v1801_v16, %s3821_s12  ;;  %1803 = vrot.lane.b32.xlu0 %v1800_v19, %s3821_s12  ;;  %1819 = vst [vmem:[#allocation1] ss:$2 sm:$0xff] %v4403_v26 }
 0x74b   : > { %v1824_v15 = vld.sshfl [vmem:[#allocation1 + $0x10] sm:$0xff pattern:$0x75316420] }
 0x74c   : > { %1829 = vrot.lane.b32.xlu2 %v1824_v15, %s3822_s13 }
 0x74d   : > { %v1823_v18 = vld.sshfl [vmem:[#allocation1 + $0x8] sm:$0xff pattern:$0x75316420]  ;;  %v1822_v11 = vld.sshfl [vmem:[#allocation1] sm:$0xff pattern:$0x75316420] }
 0x74e   : > { %1827 = vrot.lane.b32.xlu1 %v1823_v18, %s3822_s13  ;;  %1825 = vrot.lane.b32.xlu0 %v1822_v11, %s3822_s13 }
 0x754   : > { %1676 = vrot.lane.b32.xlu2 %v1671_v37, %s3823_s14 }
 0x756   : > { %1674 = vrot.lane.b32.xlu1 %v1670_v39, %s3823_s14  ;;  %1672 = vrot.lane.b32.xlu0 %v1669_v38, %s3823_s14 }
 0x75c   : > { %1654 = vrot.lane.b32.xlu2 %v4413_v33, %s3824_s15 }
 0x75e   : > { %1652 = vrot.lane.b32.xlu1 %v1648_v30, %s3824_s15  ;;  %1650 = vrot.lane.b32.xlu0 %v4415_v35, %s3824_s15 }
 0x766   : > { %1853 = vperm.xlu0 %3759, %v4453_v22  }
 0x77e   : > { %v1701_v23 = vpop.permute.xlu2 %1700 }
 0x786   : > { %v1731_v24 = vpop.permute.xlu2 %1730 }
 0x78e   : > { %v1753_v33 = vpop.permute.xlu2 %1752 }
 0x796   : > { %v1783_v37 = vpop.permute.xlu2 %1782 }
 0x798   : > { %v1699_v25 = vpop.permute.xlu1 %1698  ;;  %v1697_v26 = vpop.permute.xlu0 %1696 }
 0x799   : > { %v1703_v5 = vsel %vm5750_vm15, %v1699_v25, %v1701_v23  ;;  %v1702_v27 = vsel %vm5751_vm0, %v1697_v26, %v1699_v25  ;;  %vm5755_vm15 = vmmov %vm5754_vm8  ;;  %vm5756_vm0 = vcmask 1043456  }
 0x79a   : > { %v1707_v28 = vsel %vm3911_vm6, %v1703_v5, 0.0  ;;  %v1706_v29 = vsel %vm3917_vm7, %v1702_v27, 0.0 }
 0x79b   : > { %v1711_v31 = vrot.slane %v1707_v28, 4  ;;  %v1710_v32 = vrot.slane %v1706_v29, 4 }
 0x79d   : > { %1715 = vst [vmem:[#allocation4 + $0x10] sm:$0xf0] %v1711_v31 }
 0x79e   : > { %1714 = vst [vmem:[#allocation4 + $0x18] sm:$0xf0] %v1710_v32  ;;  %v1808_v51 = vpop.permute.xlu2 %1807 }
 0x7a0   : > { %v1729_v34 = vpop.permute.xlu1 %1728  ;;  %v1727_v35 = vpop.permute.xlu0 %1726 }
 0x7a1   : > { %v1733_v30 = vsel %vm444_vm10, %v1729_v34, %v1731_v24  ;;  %v1732_v36 = vsel %vm444_vm10, %v1727_v35, %v1729_v34 }
 0x7a2   : > { %1737 = vst [vmem:[#allocation4 + $0x28] sm:$0xf] %v1733_v30 }
 0x7a3   : > { %1736 = vst [vmem:[#allocation4 + $0x48] sm:$0xf] %v1732_v36 }
 0x7a6   : > { %v1830_v12 = vpop.permute.xlu2 %1829 }
 0x7a8   : > { %v1751_v38 = vpop.permute.xlu1 %1750  ;;  %v1749_v39 = vpop.permute.xlu0 %1748 }
 0x7a9   : > { %v1755_v40 = vsel %vm467_vm9, %v1751_v38, %v1753_v33  ;;  %v1754_v41 = vsel %vm467_vm9, %v1749_v39, %v1751_v38 }
 0x7aa   : > { %v1759_v42 = vsel %vm3987_vm12, %v1755_v40, 0.0  ;;  %v1758_v43 = vsel %vm3974_vm11, %v1754_v41, 0.0 }
 0x7ab   : > { %v1763_v46 = vrot.slane %v1759_v42, 4  ;;  %v1762_v47 = vrot.slane %v1758_v43, 4  ;;  %v4497_v43 = vld [vmem:[%s5703_s1] sm:$0xff] }
 0x7ad   : > { %1767 = vst [vmem:[#allocation4 + $0x28] sm:$0xf0] %v1763_v46 }
 0x7ae   : > { %1766 = vst [vmem:[#allocation4 + $0x48] sm:$0xf0] %v1762_v47  ;;  %v1677_v24 = vpop.permute.xlu2 %1676 }
 0x7b0   : > { %v1781_v59 = vpop.permute.xlu1 %1780  ;;  %v1779_v50 = vpop.permute.xlu0 %1778 }
 0x7b1   : > { %v1785_v54 = vsel %vm498_vm13, %v1781_v59, %v1783_v37  ;;  %v1784_v55 = vsel %vm498_vm13, %v1779_v50, %v1781_v59 }
 0x7b2   : > { %v1789_v56 = vsel %vm3911_vm6, %v1785_v54, 0.0  ;;  %v1788_v58 = vsel %vm3917_vm7, %v1784_v55, 0.0 }
 0x7b3   : > { %1791 = vst [vmem:[#allocation4 + $0x20] sm:$0xf] %v1789_v56 }
 0x7b4   : > { %1790 = vst [vmem:[#allocation4 + $0x8] sm:$0xf] %v1788_v58  ;;  %v1845_v35 = vld [vmem:[#allocation4 + $0x28] sm:$0xff] }
 0x7b5   : > { %v1844_v36 = vld [vmem:[#allocation4 + $0x48] sm:$0xff] }
 0x7b6   : > { %v1655_v30 = vpop.permute.xlu2 %1654 }
 0x7b8   : > { %v1806_v61 = vpop.permute.xlu1 %1805  ;;  %v1804_v62 = vpop.permute.xlu0 %1803 }
 0x7b9   : > { %v1810_v52 = vsel %vm524_vm14, %v1806_v61, %v1808_v51  ;;  %v1809_v1 = vsel %vm524_vm14, %v1804_v62, %v1806_v61 }
 0x7ba   : > { %1814 = vst [vmem:[#allocation4 + $0x20] sm:$0xf0] %v1810_v52 }
 0x7bb   : > { %1813 = vst [vmem:[#allocation4 + $0x8] sm:$0xf0] %v1809_v1 }
 0x7c0   : > { %v1828_v16 = vpop.permute.xlu1 %1827  ;;  %v1826_v19 = vpop.permute.xlu0 %1825 }
 0x7c1   : > { %v1832_v15 = vsel %vm5752_vm1, %v1828_v16, %v1830_v12  ;;  %v1831_v18 = vsel %vm5753_vm3, %v1826_v19, %v1828_v16  ;;  %vm5757_vm1 = vmmov %vm5756_vm0  ;;  %v1847_v33 = vld [vmem:[#allocation4 + $0x20] sm:$0xff]  ;;  %vm5758_vm3 = vcmask 1039360  }
 0x7c2   : > { %v1836_v11 = vsel %vm3987_vm12, %v1832_v15, 0.0  ;;  %v1835_v23 = vsel %vm3974_vm11, %v1831_v18, 0.0  ;;  %v1846_v34 = vld [vmem:[#allocation4 + $0x8] sm:$0xff]  ;;  %v4558_v18 = vld [vmem:[%s5706_s4] sm:$0xff] }
 0x7c3   : > { %1838 = vst [vmem:[#allocation4 + $0x38] sm:$0xf] %v1836_v11 }
 0x7c4   : > { %1837 = vst [vmem:[#allocation4 + $0x40] sm:$0xf] %v1835_v23 }
 0x7c8   : > { %v1675_v25 = vpop.permute.xlu1 %1674  ;;  %v1673_v26 = vpop.permute.xlu0 %1672 }
 0x7c9   : > { %v1679_v5 = vsel %vm5754_vm8, %v1675_v25, %v1677_v24  ;;  %v1678_v27 = vsel %vm5755_vm15, %v1673_v26, %v1675_v25  ;;  %vm5759_vm8 = vmmov %vm5758_vm3  ;;  %vm5760_vm15 = vcmask 293888  }
 0x7ca   : > { %v1683_v28 = vsel %vm3987_vm12, %v1679_v5, 0.0  ;;  %v1682_v29 = vsel %vm3974_vm11, %v1678_v27, 0.0  ;;  %v1849_v31 = vld [vmem:[#allocation4 + $0x38] sm:$0xf] }
 0x7cb   : > { %1685 = vst [vmem:[#allocation4 + $0x10] sm:$0xf] %v1683_v28  ;;  %v1848_v32 = vld [vmem:[#allocation4 + $0x40] sm:$0xf]  ;;  %3629 = vmatpush.msk.msra.mxu1 %vm5756_vm0, %v1849_v31  ;;  %vm5761_vm0 = vmmov %vm5760_vm15 }
 0x7cc   : > { %1684 = vst [vmem:[#allocation4 + $0x18] sm:$0xf] %v1682_v29  ;;  %3627 = vmatpush.msk.msra.mxu0 %vm5757_vm1, %v1848_v32  ;;  %vm5762_vm1 = vcmask 1047688  }
 0x7cd   : > { %1897 = vmatpush.msra.mxu1 %v1847_v33 }
 0x7ce   : > { %1877 = vmatpush.msra.mxu0 %v1846_v34 }
 0x7cf   : > { %1898 = vmatpush.msra.mxu1 %v1845_v35 }
 0x7d0   : > { %1878 = vmatpush.msra.mxu0 %v1844_v36  ;;  %v1653_v37 = vpop.permute.xlu1 %1652  ;;  %v1651_v38 = vpop.permute.xlu0 %1650  ;;  %v3633_v36 = vld [vmem:[%s3886_s29 + $0x18] sm:$0xff] }
 0x7d1   : > { %v1657_v39 = vsel %vm5758_vm3, %v1653_v37, %v1655_v30  ;;  %v1656_v40 = vsel %vm5759_vm8, %v1651_v38, %v1653_v37  ;;  %vm5763_vm3 = vcmask 769024  }
 0x7d2   : > { %1661 = vst [vmem:[#allocation4] sm:$0xf0] %v1657_v39  ;;  %v1843_v41 = vld [vmem:[#allocation4 + $0x10] sm:$0xff]  ;;  %vm5764_vm8 = vmmov %vm5763_vm3 }
 0x7d3   : > { %1660 = vst [vmem:[#allocation4 + $0x30] sm:$0xf0] %v1656_v40  ;;  %v1842_v42 = vld [vmem:[#allocation4 + $0x18] sm:$0xff]  ;;  %1899 = vmatpush.msra.mxu1 %v1843_v41 }
 0x7d4   : > { %1879 = vmatpush.msra.mxu0 %v1842_v42 }
 0x7d8   : > { %v1854_v59 = vpop.permute.xlu0 %1853 }
 0x7d9   : > { %v1841_v46 = vld [vmem:[#allocation4] sm:$0xff] }
 0x7da   : > { %v1840_v47 = vld [vmem:[#allocation4 + $0x30] sm:$0xff]  ;;  %1900 = vmatpush.msra.mxu1 %v1841_v46 }
 0x7db   : > { %1880 = vmatpush.msra.mxu0 %v1840_v47  ;;  %3630 = vmatmul.msk.f32.vlgmr.msra.gmra.mxu1 %vm5760_vm15, %v4497_v43  ;;  %vm5765_vm15 = vcmask 916480  }
 0x7dc   : > { %3628 = vmatmul.msk.f32.vlgmr.msra.gmra.mxu0 %vm5761_vm0, %v4497_v43  ;;  %vm5766_vm0 = vmmov %vm5765_vm15 }
 0x858   : > { %v1902_v50 = vpop.f32.mrf.mxu1 }
 0x859   : > { %v1882_v51 = vpop.f32.mrf.mxu0  ;;  %v4503_v54 = vadd.f32 %v1902_v50, %v1854_v59 }
 0x85a   : > { %v4505_v55 = vadd.f32 %v1882_v51, %v1854_v59 }
 0x85b   : > { %v1928_v56 = vmax.f32 %v4503_v54, 0.0 }
 0x85c   : > { %v1927_v58 = vmax.f32 %v4505_v55, 0.0  ;;  %v1905_v61 = vmax.f32 %v4505_v55, %v4503_v54  ;;  %v1916_v62 = vmin.f32 %v4505_v55, %v4503_v54 }
 0x85d   : > { %1933 = vrot.lane.b32.xlu2 %v1928_v56, %s3816_s30 }
 0x85e   : > { %1931 = vrot.lane.b32.xlu1 %v1927_v58, %s3816_s30 }
 0x8b7   : > { %v1934_v52 = vpop.permute.xlu2 %1933 }
 0x8b8   : > { %1941 = vst.msk [vmem:[#allocation3 + $0x10] sm:$0xff] %vm320_vm2, %v1934_v52 }
 0x8bf   : > { %v2084_v1 = vld [vmem:[#allocation3 + $0x10] sm:$0xff] }
 0x8c0   : > { %2092 = vrot.lane.b32.xlu2 %v2084_v1, %s3822_s13  ;;  %2074 = vrot.lane.b32.xlu1 %v2084_v1, %s3821_s12 }
 0x8c8   : > { %2054 = vrot.lane.b32.xlu1 %v2084_v1, %s3820_s11 }
 0x8d0   : > { %v1932_v12 = vpop.permute.xlu1 %1931  ;;  %2034 = vrot.lane.b32.xlu1 %v2084_v1, %s3819_s10 }
 0x8d1   : > { %1939 = vst.msk [vmem:[#allocation3] sm:$0xff] %vm5762_vm1, %v1932_v12  ;;  %v4530_v19 = vsel %vm320_vm2, %v1932_v12, %v1934_v52  ;;  %vm5767_vm1 = vcmask 1031168  }
 0x8d8   : > { %v4521_v16 = vld [vmem:[#allocation3] sm:$0xff] }
 0x8d9   : > { %2088 = vrot.lane.b32.xlu0 %v4521_v16, %s3822_s13  ;;  %2050 = vrot.lane.b32.xlu2 %v4521_v16, %s3820_s11  ;;  %v3780_v15 = vpack.i.bf16 %v4530_v19, %v4521_v16 }
 0x8da   : > { %1992 = vrot.lane.b32.xlu1 %v4521_v16, %s3817_s8 }
 0x8e1   : > { %2016 = vrot.lane.b32.xlu0 %v2084_v1, %s3818_s9  ;;  %2030 = vrot.lane.b32.xlu2 %v4521_v16, %s3819_s10 }
 0x8e2   : > { %2090 = vrot.lane.b32.xlu1 %v4530_v19, %s3822_s13 }
 0x8e9   : > { %1996 = vrot.lane.b32.xlu0 %v2084_v1, %s3817_s8  ;;  %3781 = vrot.lane.b32.xlu2 %v3780_v15, %s3818_s9 }
 0x8ea   : > { %1972 = vrot.lane.b32.xlu1 %v4521_v16, %s3823_s14 }
 0x8f1   : > { %3776 = vrot.lane.b32.xlu0 %v3780_v15, %s3821_s12  ;;  %1994 = vrot.lane.b32.xlu2 %v4530_v19, %s3817_s8 }
 0x8f2   : > { %3786 = vrot.lane.b32.xlu1 %v3780_v15, %s3824_s15 }
 0x8f9   : > { %2052 = vrot.lane.b32.xlu0 %v4530_v19, %s3820_s11  ;;  %1974 = vrot.lane.b32.xlu2 %v4530_v19, %s3823_s14 }
 0x8fa   : > { %2256 = vrot.lane.b32.xlu1 %v3633_v36, %s3816_s30 }
 0x901   : > { %2032 = vrot.lane.b32.xlu0 %v4530_v19, %s3819_s10  ;;  %1958 = vrot.lane.b32.xlu2 %v2084_v1, %s3824_s15 }
 0x909   : > { %1976 = vrot.lane.b32.xlu0 %v2084_v1, %s3823_s14 }
 0x911   : > { %2124 = vperm.xlu0 %3759, %v4558_v18  }
 0x91a   : > { %v2093_v25 = vpop.permute.xlu2 %2092 }
 0x932   : > { %v2075_v11 = vpop.permute.xlu1 %2074 }
 0x933   : > { %v2051_v26 = vpop.permute.xlu2 %2050 }
 0x93a   : > { %v2055_v23 = vpop.permute.xlu1 %2054 }
 0x93b   : > { %v2031_v31 = vpop.permute.xlu2 %2030 }
 0x942   : > { %v2035_v24 = vpop.permute.xlu1 %2034 }
 0x943   : > { %v3782_v35 = vpop.permute.xlu2 %3781 }
 0x944   : > { %v3784_v50 = vunpack.i.h.bf16 %v3782_v35  ;;  %v3783_v51 = vunpack.i.l.bf16 %v3782_v35 }
 0x946   : > { %v2018_v15 = vsel %vm444_vm10, %v3783_v51, %v3784_v50 }
 0x94b   : > { %v2089_v5 = vpop.permute.xlu0 %2088  ;;  %v1995_v41 = vpop.permute.xlu2 %1994 }
 0x94c   : > { %v1993_v27 = vpop.permute.xlu1 %1992 }
 0x953   : > { %v2017_v28 = vpop.permute.xlu0 %2016  ;;  %v1975_v56 = vpop.permute.xlu2 %1974 }
 0x954   : > { %v2091_v29 = vpop.permute.xlu1 %2090 }
 0x955   : > { %v2094_v32 = vsel %vm5763_vm3, %v2089_v5, %v2091_v29  ;;  %v2095_v33 = vsel %vm5764_vm8, %v2091_v29, %v2093_v25  ;;  %vm5768_vm3 = vmmov %vm5767_vm1  ;;  %vm5769_vm8 = vcmask 1039360  }
 0x956   : > { %3667 = vmatpush.msk.msrb.mxu0 %vm3974_vm11, %v2094_v32  ;;  %3673 = vmatpush.msk.msrb.mxu1 %vm3987_vm12, %v2095_v33  ;;  %v4601_v32 = vld [vmem:[%s5705_s3] sm:$0xff] }
 0x95b   : > { %v1997_v34 = vpop.permute.xlu0 %1996 }
 0x95c   : > { %v1973_v42 = vpop.permute.xlu1 %1972  ;;  %v1999_v25 = vsel %vm5766_vm0, %v1995_v41, %v1997_v34  ;;  %vm5771_vm0 = vcmask 588800  }
 0x963   : > { %v3777_v30 = vpop.permute.xlu0 %3776 }
 0x964   : > { %v3779_v37 = vunpack.i.h.bf16 %v3777_v30  ;;  %v3778_v38 = vunpack.i.l.bf16 %v3777_v30  ;;  %v3787_v12 = vpop.permute.xlu1 %3786 }
 0x965   : > { %v3788_v5 = vunpack.i.l.bf16 %v3787_v12 }
 0x966   : > { %v2076_v39 = vsel %vm524_vm14, %v3778_v38, %v3779_v37  ;;  %v2077_v40 = vsel %vm524_vm14, %v3779_v37, %v2075_v11  ;;  %v2019_v11 = vsel %vm444_vm10, %v3784_v50, %v2017_v28 }
 0x967   : > { %2138 = vmatpush.msrb.mxu0 %v2076_v39  ;;  %2158 = vmatpush.msrb.mxu1 %v2077_v40 }
 0x96b   : > { %v2053_v46 = vpop.permute.xlu0 %2052 }
 0x96c   : > { %v2056_v47 = vsel %vm498_vm13, %v2051_v26, %v2053_v46  ;;  %v2057_v59 = vsel %vm498_vm13, %v2053_v46, %v2055_v23  ;;  %v1998_v23 = vsel %vm5765_vm15, %v1993_v27, %v1995_v41  ;;  %v3789_v26 = vunpack.i.h.bf16 %v3787_v12  ;;  %vm5770_vm15 = vmmov %vm5769_vm8  ;;  %v2257_v34 = vpop.permute.xlu1 %2256 }
 0x96d   : > { %3668 = vmatpush.msk.msrb.mxu0 %vm3917_vm7, %v2056_v47  ;;  %3674 = vmatpush.msk.msrb.mxu1 %vm3911_vm6, %v2057_v59  ;;  %v2258_v35 = vrot.slane %v2257_v34, 4 }
 0x96e   : > { %v1960_v27 = vsel %vm5769_vm8, %v3788_v5, %v3789_v26  ;;  %vm5775_vm8 = vcmask 916480  }
 0x96f   : > { %v2259_v30 = vsel %vm320_vm2, %v2258_v35, %v2257_v34 }
 0x970   : > { %2262 = vst.msk [vmem:[#allocation2] sm:$0xff] %vm3890_vm5, %v2259_v30  ;;  %vm5774_vm5 = vcmask 1040384  }
 0x973   : > { %v2033_v58 = vpop.permute.xlu0 %2032 }
 0x974   : > { %v2036_v52 = vsel %vm467_vm9, %v2031_v31, %v2033_v58  ;;  %v2037_v1 = vsel %vm467_vm9, %v2033_v58, %v2035_v24  ;;  %v1978_v24 = vsel %vm5767_vm1, %v1973_v42, %v1975_v56  ;;  %v1959_v31 = vpop.permute.xlu2 %1958  ;;  %vm5772_vm1 = vmmov %vm5771_vm0 }
 0x975   : > { %3669 = vmatpush.msk.msrb.mxu0 %vm3974_vm11, %v2036_v52  ;;  %3675 = vmatpush.msk.msrb.mxu1 %vm3987_vm12, %v2037_v1  ;;  %v1961_v33 = vsel %vm5770_vm15, %v3789_v26, %v1959_v31  ;;  %vm5776_vm15 = vmmov %vm5775_vm8 }
 0x977   : > { %2141 = vmatpush.msrb.mxu0 %v2018_v15  ;;  %2161 = vmatpush.msrb.mxu1 %v2019_v11  ;;  %v4641_v52 = vld [vmem:[#allocation2] sm:$0xff] }
 0x979   : > { %3670 = vmatpush.msk.msrb.mxu0 %vm3917_vm7, %v1998_v23  ;;  %3676 = vmatpush.msk.msrb.mxu1 %vm3911_vm6, %v1999_v25 }
 0x97b   : > { %v1977_v29 = vpop.permute.xlu0 %1976  ;;  %3671 = vmatpush.msk.msrb.mxu0 %vm3974_vm11, %v1978_v24 }
 0x97c   : > { %v1979_v28 = vsel %vm5768_vm3, %v1975_v56, %v1977_v29  ;;  %vm5773_vm3 = vcmask 134144  }
 0x97d   : > { %2144 = vmatpush.msrb.mxu0 %v1960_v27  ;;  %3677 = vmatpush.msk.msrb.mxu1 %vm3987_vm12, %v1979_v28  ;;  %2263 = vst.msk [vmem:[#allocation2 + $0x8] sm:$0xf] %vm5773_vm3, %v2258_v35  ;;  %vm5779_vm3 = vcmask 1031168  }
 0x97f   : > { %3672 = vmatpush.msk.msrb.mxu0 %vm3917_vm7, %v4521_v16  ;;  %2164 = vmatpush.msrb.mxu1 %v1961_v33 }
 0x980   : > { %3631 = vmatmul.msk.f32.vlgmr.msrb.gmra.mxu0 %vm5771_vm0, %v4601_v32  ;;  %vm5777_vm0 = vcmask 769024  }
 0x981   : > { %3678 = vmatpush.msk.msrb.mxu1 %vm3911_vm6, %v4530_v19 }
 0x982   : > { %3632 = vmatmul.msk.f32.vlgmr.msrb.gmra.mxu1 %vm5772_vm1, %v4601_v32  ;;  %vm5778_vm1 = vmmov %vm5777_vm0 }
 0x983   : > { %v2125_v16 = vpop.permute.xlu0 %2124 }
 0x984   : > { %v2276_v1 = vld [vmem:[#allocation2 + $0x8] sm:$0xf] }
 0x985   : > { %v2299_v26 = vld [vmem:[#allocation2 + $0x8] sm:$0xf] }
 0x986   : > { %v2323_v28 = vld [vmem:[#allocation2 + $0x8] sm:$0xf] }
 0x987   : > { %v2353_v34 = vld [vmem:[#allocation2 + $0x8] sm:$0xf] }
 0x9fd   : > { %v2147_v36 = vpop.f32.mrf.mxu0 }
 0x9fe   : > { %v4618_v37 = vadd.f32 %v2147_v36, %v2125_v16  ;;  %v2375_v36 = vld [vmem:[#allocation2 + $0x8] sm:$0xf] }
 0x9ff   : > { %v2167_v38 = vpop.f32.mrf.mxu1 }
 0xa00   : > { %v2192_v39 = vmax.f32 %v4618_v37, 0.0  ;;  %v4621_v19 = vadd.f32 %v2167_v38, %v2125_v16 }
 0xa02   : > { %2201 = vst [vmem:[#allocation1] sm:$0xff] %v2192_v39  ;;  %v2193_v40 = vmax.f32 %v4621_v19, 0.0  ;;  %v2181_v41 = vmin.f32 %v4618_v37, %v4621_v19  ;;  %v2170_v42 = vmax.f32 %v4618_v37, %v4621_v19 }
 0xa04   : > { %2202 = vst [vmem:[#allocation1 + $0x9] sm:$0xff] %v2193_v40  ;;  %v2196_v3 = vrot.slane %v2193_v40, 7 }
 0xa06   : > { %v2197_v46 = vsel %vm5774_vm5, %v2192_v39, %v2196_v3  ;;  %v2405_v3 = vld [vmem:[#allocation2 + $0x8] sm:$0xf]  ;;  %vm5780_vm5 = vmmov %vm5779_vm3 }
 0xa07   : > { %2200 = vst.msk [vmem:[#allocation6 + $0x2] ss:$4 sm:$0x3] %vm4157_vm4, %v2197_v46 }
 0xa0b   : > { %v2204_v47 = vld [vmem:[#allocation1 + $0x1] ss:$9 sm:$0xff] }
 0xa0c   : > { %2208 = vst [vmem:[#allocation1] sm:$0xff] %v2192_v39 }
 0xa0d   : > { %2209 = vst [vmem:[#allocation1 + $0x9] sm:$0xff] %v2193_v40 }
 0xa0e   : > { %2207 = vst.msk [vmem:[#allocation6 + $0xa] ss:$4 sm:$0x3] %vm4157_vm4, %v2204_v47 }
 0xa14   : > { %v2211_v59 = vld [vmem:[#allocation1 + $0x2] ss:$9 sm:$0xff] }
 0xa15   : > { %2215 = vst [vmem:[#allocation1] sm:$0xff] %v2192_v39 }
 0xa16   : > { %2216 = vst [vmem:[#allocation1 + $0x9] sm:$0xff] %v2193_v40 }
 0xa17   : > { %2214 = vst.msk [vmem:[#allocation6 + $0x12] ss:$4 sm:$0x3] %vm4157_vm4, %v2211_v59 }
 0xa1d   : > { %v2218_v50 = vld [vmem:[#allocation1 + $0x3] ss:$9 sm:$0xff] }
 0xa1e   : > { %2222 = vst [vmem:[#allocation1] sm:$0xff] %v2192_v39 }
 0xa1f   : > { %2223 = vst [vmem:[#allocation1 + $0x9] sm:$0xff] %v2193_v40 }
 0xa20   : > { %2221 = vst.msk [vmem:[#allocation6 + $0x1a] ss:$4 sm:$0x3] %vm4157_vm4, %v2218_v50  ;;  %v2429_v50 = vld [vmem:[#allocation2 + $0x8] sm:$0xf] }
 0xa26   : > { %v2225_v51 = vld [vmem:[#allocation1 + $0x4] ss:$9 sm:$0xff] }
 0xa27   : > { %2229 = vst [vmem:[#allocation1] sm:$0xff] %v2192_v39 }
 0xa28   : > { %2230 = vst [vmem:[#allocation1 + $0x9] sm:$0xff] %v2193_v40 }
 0xa29   : > { %2228 = vst.msk [vmem:[#allocation6 + $0x22] ss:$4 sm:$0x3] %vm4157_vm4, %v2225_v51 }
 0xa2f   : > { %v2232_v56 = vld [vmem:[#allocation1 + $0x5] ss:$9 sm:$0xff] }
 0xa30   : > { %2236 = vst [vmem:[#allocation1] sm:$0xff] %v2192_v39 }
 0xa31   : > { %2237 = vst [vmem:[#allocation1 + $0x9] sm:$0xff] %v2193_v40 }
 0xa32   : > { %2235 = vst.msk [vmem:[#allocation6 + $0x2a] ss:$4 sm:$0x3] %vm4157_vm4, %v2232_v56 }
 0xa38   : > { %v2239_v58 = vld [vmem:[#allocation1 + $0x6] ss:$9 sm:$0xff] }
 0xa39   : > { %2243 = vst [vmem:[#allocation1] sm:$0xff] %v2192_v39 }
 0xa3a   : > { %2244 = vst [vmem:[#allocation1 + $0x9] sm:$0xff] %v2193_v40 }
 0xa3b   : > { %2242 = vst.msk [vmem:[#allocation6 + $0x32] ss:$4 sm:$0x3] %vm4157_vm4, %v2239_v58 }
 0xa3c   : > { %2266 = vst [vmem:[#allocation1] ss:$2 sm:$0xff] %v4641_v52 }
 0xa41   : > { %v2246_v12 = vld [vmem:[#allocation1 + $0x7] ss:$9 sm:$0xff] }
 0xa42   : > { %2282 = vst [vmem:[#allocation1 + $0x11] ss:$2 sm:$0xff] %v2276_v1  ;;  %v2452_v1 = vld [vmem:[#allocation2 + $0x8] sm:$0xf] }
 0xa43   : > { %2249 = vst.msk [vmem:[#allocation6 + $0x3a] ss:$4 sm:$0x3] %vm4157_vm4, %v2246_v12  ;;  %v2267_v15 = vld.sshfl [vmem:[#allocation1] sm:$0xff pattern:$0x75316420] }
 0xa44   : > { %v2268_v11 = vld.sshfl [vmem:[#allocation1 + $0x8] sm:$0xff pattern:$0x75316420]  ;;  %v2271_v23 = vsel %vm3917_vm7, %v2267_v15, 0.0 }
 0xa45   : > { %2280 = vst [vmem:[#allocation1 + $0x1] ss:$2 sm:$0xff] %v4641_v52  ;;  %v2272_v25 = vsel %vm3911_vm6, %v2268_v11, 0.0 }
 0xa46   : > { %2273 = vst [vmem:[#allocation4 + $0x30] sm:$0xf] %v2271_v23 }
 0xa47   : > { %2274 = vst [vmem:[#allocation4] sm:$0xf] %v2272_v25 }
 0xa49   : > { %v4653_v5 = vld.sshfl [vmem:[#allocation1 + $0x10] sm:$0xff pattern:$0x75316420] }
 0xa4a   : > { %2304 = vst [vmem:[#allocation1 + $0x10] ss:$2 sm:$0xff] %v2299_v26 }
 0xa4c   : > { %v4655_v24 = vld.sshfl [vmem:[#allocation1] sm:$0xff pattern:$0x75316420]  ;;  %v2284_v29 = vld.sshfl [vmem:[#allocation1 + $0x8] sm:$0xff pattern:$0x75316420] }
 0xa4d   : > { %2302 = vst [vmem:[#allocation1] ss:$2 sm:$0xff] %v4641_v52 }
 0xa51   : > { %v2307_v27 = vld.sshfl [vmem:[#allocation1 + $0x10] sm:$0xff pattern:$0x75316420] }
 0xa52   : > { %2328 = vst [vmem:[#allocation1 + $0x10] ss:$2 sm:$0xff] %v2323_v28 }
 0xa54   : > { %v2305_v31 = vld.sshfl [vmem:[#allocation1] sm:$0xff pattern:$0x75316420]  ;;  %v2306_v33 = vld.sshfl [vmem:[#allocation1 + $0x8] sm:$0xff pattern:$0x75316420] }
 0xa55   : > { %2326 = vst [vmem:[#allocation1] ss:$2 sm:$0xff] %v4641_v52 }
 0xa59   : > { %v2331_v35 = vld.sshfl [vmem:[#allocation1 + $0x10] sm:$0xff pattern:$0x75316420] }
 0xa5a   : > { %2336 = vrot.lane.b32.xlu1 %v2331_v35, %s3817_s8  ;;  %2358 = vst [vmem:[#allocation1 + $0x10] ss:$2 sm:$0xff] %v2353_v34 }
 0xa5c   : > { %v2330_v30 = vld.sshfl [vmem:[#allocation1 + $0x8] sm:$0xff pattern:$0x75316420]  ;;  %v2329_v16 = vld.sshfl [vmem:[#allocation1] sm:$0xff pattern:$0x75316420] }
 0xa5d   : > { %2334 = vrot.lane.b32.xlu0 %v2330_v30, %s3817_s8  ;;  %2332 = vrot.lane.b32.xlu2 %v2329_v16, %s3817_s8  ;;  %2356 = vst [vmem:[#allocation1] ss:$2 sm:$0xff] %v4641_v52 }
 0xa61   : > { %v2361_v38 = vld.sshfl [vmem:[#allocation1 + $0x10] sm:$0xff pattern:$0x75316420] }
 0xa62   : > { %2366 = vrot.lane.b32.xlu1 %v2361_v38, %s3818_s9  ;;  %2380 = vst [vmem:[#allocation1 + $0x10] ss:$2 sm:$0xff] %v2375_v36 }
 0xa64   : > { %v2360_v39 = vld.sshfl [vmem:[#allocation1 + $0x8] sm:$0xff pattern:$0x75316420]  ;;  %v2359_v40 = vld.sshfl [vmem:[#allocation1] sm:$0xff pattern:$0x75316420] }
 0xa65   : > { %2364 = vrot.lane.b32.xlu0 %v2360_v39, %s3818_s9  ;;  %2362 = vrot.lane.b32.xlu2 %v2359_v40, %s3818_s9  ;;  %2378 = vst [vmem:[#allocation1] ss:$2 sm:$0xff] %v4641_v52 }
 0xa69   : > { %v2383_v46 = vld.sshfl [vmem:[#allocation1 + $0x10] sm:$0xff pattern:$0x75316420] }
 0xa6a   : > { %2388 = vrot.lane.b32.xlu1 %v2383_v46, %s3819_s10  ;;  %2410 = vst [vmem:[#allocation1 + $0x10] ss:$2 sm:$0xff] %v2405_v3 }
 0xa6c   : > { %v2382_v47 = vld.sshfl [vmem:[#allocation1 + $0x8] sm:$0xff pattern:$0x75316420]  ;;  %v2381_v59 = vld.sshfl [vmem:[#allocation1] sm:$0xff pattern:$0x75316420] }
 0xa6d   : > { %2386 = vrot.lane.b32.xlu0 %v2382_v47, %s3819_s10  ;;  %2384 = vrot.lane.b32.xlu2 %v2381_v59, %s3819_s10  ;;  %2408 = vst [vmem:[#allocation1] ss:$2 sm:$0xff] %v4641_v52 }
 0xa71   : > { %v2413_v51 = vld.sshfl [vmem:[#allocation1 + $0x10] sm:$0xff pattern:$0x75316420] }
 0xa72   : > { %2418 = vrot.lane.b32.xlu1 %v2413_v51, %s3820_s11  ;;  %2435 = vst [vmem:[#allocation1 + $0x11] ss:$2 sm:$0xff] %v2429_v50 }
 0xa74   : > { %v2412_v56 = vld.sshfl [vmem:[#allocation1 + $0x8] sm:$0xff pattern:$0x75316420]  ;;  %v2411_v58 = vld.sshfl [vmem:[#allocation1] sm:$0xff pattern:$0x75316420] }
 0xa75   : > { %2416 = vrot.lane.b32.xlu0 %v2412_v56, %s3820_s11  ;;  %2414 = vrot.lane.b32.xlu2 %v2411_v58, %s3820_s11  ;;  %2433 = vst [vmem:[#allocation1 + $0x1] ss:$2 sm:$0xff] %v4641_v52 }
 0xa79   : > { %v2438_v12 = vld.sshfl [vmem:[#allocation1 + $0x10] sm:$0xff pattern:$0x75316420] }
 0xa7a   : > { %2443 = vrot.lane.b32.xlu1 %v2438_v12, %s3821_s12  ;;  %2457 = vst [vmem:[#allocation1 + $0x10] ss:$2 sm:$0xff] %v2452_v1 }
 0xa7c   : > { %v2437_v15 = vld.sshfl [vmem:[#allocation1 + $0x8] sm:$0xff pattern:$0x75316420]  ;;  %v2436_v11 = vld.sshfl [vmem:[#allocation1] sm:$0xff pattern:$0x75316420] }
 0xa7d   : > { %2441 = vrot.lane.b32.xlu0 %v2437_v15, %s3821_s12  ;;  %2439 = vrot.lane.b32.xlu2 %v2436_v11, %s3821_s12  ;;  %2455 = vst [vmem:[#allocation1] ss:$2 sm:$0xff] %v4641_v52 }
 0xa81   : > { %v2460_v23 = vld.sshfl [vmem:[#allocation1 + $0x10] sm:$0xff pattern:$0x75316420] }
 0xa82   : > { %2465 = vrot.lane.b32.xlu1 %v2460_v23, %s3822_s13 }
 0xa84   : > { %v2459_v25 = vld.sshfl [vmem:[#allocation1 + $0x8] sm:$0xff pattern:$0x75316420]  ;;  %v2458_v26 = vld.sshfl [vmem:[#allocation1] sm:$0xff pattern:$0x75316420] }
 0xa85   : > { %2463 = vrot.lane.b32.xlu0 %v2459_v25, %s3822_s13  ;;  %2461 = vrot.lane.b32.xlu2 %v2458_v26, %s3822_s13 }
 0xa8a   : > { %2312 = vrot.lane.b32.xlu1 %v2307_v27, %s3823_s14 }
 0xa8d   : > { %2310 = vrot.lane.b32.xlu0 %v2306_v33, %s3823_s14  ;;  %2308 = vrot.lane.b32.xlu2 %v2305_v31, %s3823_s14 }
 0xa92   : > { %2290 = vrot.lane.b32.xlu1 %v4653_v5, %s3824_s15 }
 0xa95   : > { %2288 = vrot.lane.b32.xlu0 %v2284_v29, %s3824_s15  ;;  %2286 = vrot.lane.b32.xlu2 %v4655_v24, %s3824_s15 }
 0xa9d   : > { %2489 = vperm.xlu2 %3790, %v4453_v22  }
 0xab7   : > { %v2333_v52 = vpop.permute.xlu2 %2332 }
 0xabf   : > { %v2363_v28 = vpop.permute.xlu2 %2362 }
 0xac7   : > { %v2385_v16 = vpop.permute.xlu2 %2384 }
 0xacc   : > { %v2337_v34 = vpop.permute.xlu1 %2336 }
 0xacf   : > { %v2335_v35 = vpop.permute.xlu0 %2334  ;;  %v2415_v40 = vpop.permute.xlu2 %2414 }
 0xad0   : > { %v2338_v27 = vsel %vm5775_vm8, %v2333_v52, %v2335_v35  ;;  %v2339_v33 = vsel %vm5776_vm15, %v2335_v35, %v2337_v34  ;;  %vm5781_vm8 = vcmask 1043456  }
 0xad1   : > { %v2342_v31 = vsel %vm3917_vm7, %v2338_v27, 0.0  ;;  %v2343_v5 = vsel %vm3911_vm6, %v2339_v33, 0.0  ;;  %vm5782_vm15 = vmmov %vm5781_vm8 }
 0xad2   : > { %v2346_v29 = vrot.slane %v2342_v31, 4  ;;  %v2347_v30 = vrot.slane %v2343_v5, 4 }
 0xad4   : > { %2350 = vst [vmem:[#allocation4 + $0x18] sm:$0xf0] %v2346_v29  ;;  %v2367_v24 = vpop.permute.xlu1 %2366 }
 0xad5   : > { %2351 = vst [vmem:[#allocation4 + $0x10] sm:$0xf0] %v2347_v30 }
 0xad7   : > { %v2365_v22 = vpop.permute.xlu0 %2364  ;;  %v2440_v11 = vpop.permute.xlu2 %2439 }
 0xad8   : > { %v2368_v36 = vsel %vm444_vm10, %v2363_v28, %v2365_v22  ;;  %v2369_v38 = vsel %vm444_vm10, %v2365_v22, %v2367_v24 }
 0xad9   : > { %2372 = vst [vmem:[#allocation4 + $0x48] sm:$0xf] %v2368_v36 }
 0xada   : > { %2373 = vst [vmem:[#allocation4 + $0x28] sm:$0xf] %v2369_v38 }
 0xadc   : > { %v2389_v39 = vpop.permute.xlu1 %2388 }
 0xadf   : > { %v2387_v3 = vpop.permute.xlu0 %2386  ;;  %v2462_v35 = vpop.permute.xlu2 %2461 }
 0xae0   : > { %v2390_v46 = vsel %vm467_vm9, %v2385_v16, %v2387_v3  ;;  %v2391_v47 = vsel %vm467_vm9, %v2387_v3, %v2389_v39 }
 0xae1   : > { %v2394_v59 = vsel %vm3974_vm11, %v2390_v46, 0.0  ;;  %v2395_v50 = vsel %vm3987_vm12, %v2391_v47, 0.0 }
 0xae2   : > { %v2398_v51 = vrot.slane %v2394_v59, 4  ;;  %v2399_v56 = vrot.slane %v2395_v50, 4 }
 0xae4   : > { %2402 = vst [vmem:[#allocation4 + $0x48] sm:$0xf0] %v2398_v51  ;;  %v2419_v58 = vpop.permute.xlu1 %2418 }
 0xae5   : > { %2403 = vst [vmem:[#allocation4 + $0x28] sm:$0xf0] %v2399_v56 }
 0xae7   : > { %v2417_v1 = vpop.permute.xlu0 %2416  ;;  %v2309_v16 = vpop.permute.xlu2 %2308 }
 0xae8   : > { %v2420_v12 = vsel %vm498_vm13, %v2415_v40, %v2417_v1  ;;  %v2421_v15 = vsel %vm498_vm13, %v2417_v1, %v2419_v58 }
 0xae9   : > { %v2424_v23 = vsel %vm3917_vm7, %v2420_v12, 0.0  ;;  %v2425_v25 = vsel %vm3911_vm6, %v2421_v15, 0.0 }
 0xaea   : > { %2426 = vst [vmem:[#allocation4 + $0x8] sm:$0xf] %v2424_v23 }
 0xaeb   : > { %2427 = vst [vmem:[#allocation4 + $0x20] sm:$0xf] %v2425_v25  ;;  %v2480_v51 = vld [vmem:[#allocation4 + $0x48] sm:$0xff] }
 0xaec   : > { %v2444_v26 = vpop.permute.xlu1 %2443  ;;  %v2481_v56 = vld [vmem:[#allocation4 + $0x28] sm:$0xff] }
 0xaef   : > { %v2442_v52 = vpop.permute.xlu0 %2441  ;;  %v2287_v58 = vpop.permute.xlu2 %2286 }
 0xaf0   : > { %v2445_v28 = vsel %vm524_vm14, %v2440_v11, %v2442_v52  ;;  %v2446_v34 = vsel %vm524_vm14, %v2442_v52, %v2444_v26 }
 0xaf1   : > { %2449 = vst [vmem:[#allocation4 + $0x8] sm:$0xf0] %v2445_v28 }
 0xaf2   : > { %2450 = vst [vmem:[#allocation4 + $0x20] sm:$0xf0] %v2446_v34 }
 0xaf4   : > { %v2466_v27 = vpop.permute.xlu1 %2465 }
 0xaf7   : > { %v2464_v33 = vpop.permute.xlu0 %2463  ;;  %v2490_v52 = vpop.permute.xlu2 %2489 }
 0xaf8   : > { %v2467_v31 = vsel %vm5777_vm0, %v2462_v35, %v2464_v33  ;;  %v2468_v5 = vsel %vm5778_vm1, %v2464_v33, %v2466_v27  ;;  %v2482_v47 = vld [vmem:[#allocation4 + $0x8] sm:$0xff]  ;;  %vm5783_vm0 = vcmask 1039360  }
 0xaf9   : > { %v2471_v29 = vsel %vm3974_vm11, %v2467_v31, 0.0  ;;  %v2472_v30 = vsel %vm3987_vm12, %v2468_v5, 0.0  ;;  %v2483_v59 = vld [vmem:[#allocation4 + $0x20] sm:$0xff]  ;;  %vm5784_vm1 = vmmov %vm5783_vm0 }
 0xafa   : > { %2473 = vst [vmem:[#allocation4 + $0x40] sm:$0xf] %v2471_v29 }
 0xafb   : > { %2474 = vst [vmem:[#allocation4 + $0x38] sm:$0xf] %v2472_v30 }
 0xafc   : > { %v2313_v24 = vpop.permute.xlu1 %2312 }
 0xaff   : > { %v2311_v22 = vpop.permute.xlu0 %2310 }
 0xb00   : > { %v2314_v36 = vsel %vm5779_vm3, %v2309_v16, %v2311_v22  ;;  %v2315_v38 = vsel %vm5780_vm5, %v2311_v22, %v2313_v24  ;;  %vm5785_vm3 = vcmask 293888  }
 0xb01   : > { %v2318_v39 = vsel %vm3974_vm11, %v2314_v36, 0.0  ;;  %v2319_v40 = vsel %vm3987_vm12, %v2315_v38, 0.0  ;;  %v2484_v3 = vld [vmem:[#allocation4 + $0x40] sm:$0xf]  ;;  %vm5786_vm5 = vmmov %vm5785_vm3 }
 0xb02   : > { %2320 = vst [vmem:[#allocation4 + $0x18] sm:$0xf] %v2318_v39  ;;  %3634 = vmatpush.msk.msra.mxu0 %vm5781_vm8, %v2484_v3  ;;  %v2485_v46 = vld [vmem:[#allocation4 + $0x38] sm:$0xf]  ;;  %vm5787_vm8 = vcmask 1047688  }
 0xb03   : > { %2321 = vst [vmem:[#allocation4 + $0x10] sm:$0xf] %v2319_v40  ;;  %3636 = vmatpush.msk.msra.mxu1 %vm5782_vm15, %v2485_v46 }
 0xb04   : > { %2513 = vmatpush.msra.mxu0 %v2482_v47  ;;  %v2291_v50 = vpop.permute.xlu1 %2290 }
 0xb05   : > { %2533 = vmatpush.msra.mxu1 %v2483_v59 }
 0xb06   : > { %2514 = vmatpush.msra.mxu0 %v2480_v51 }
 0xb07   : > { %2534 = vmatpush.msra.mxu1 %v2481_v56  ;;  %v2289_v1 = vpop.permute.xlu0 %2288 }
 0xb08   : > { %v2292_v12 = vsel %vm5783_vm0, %v2287_v58, %v2289_v1  ;;  %v2293_v15 = vsel %vm5784_vm1, %v2289_v1, %v2291_v50 }
 0xb09   : > { %2296 = vst [vmem:[#allocation4 + $0x30] sm:$0xf0] %v2292_v12  ;;  %v2478_v11 = vld [vmem:[#allocation4 + $0x18] sm:$0xff] }
 0xb0a   : > { %2297 = vst [vmem:[#allocation4] sm:$0xf0] %v2293_v15  ;;  %2515 = vmatpush.msra.mxu0 %v2478_v11  ;;  %v2479_v23 = vld [vmem:[#allocation4 + $0x10] sm:$0xff] }
 0xb0b   : > { %2535 = vmatpush.msra.mxu1 %v2479_v23 }
 0xb10   : > { %v2476_v25 = vld [vmem:[#allocation4 + $0x30] sm:$0xff] }
 0xb11   : > { %2516 = vmatpush.msra.mxu0 %v2476_v25  ;;  %v2477_v26 = vld [vmem:[#allocation4] sm:$0xff] }
 0xb12   : > { %2536 = vmatpush.msra.mxu1 %v2477_v26  ;;  %3635 = vmatmul.msk.f32.vlgmr.msra.gmra.mxu0 %vm5785_vm3, %v4497_v43  ;;  %vm979_vm3 = vcmask 23552  }
 0xb13   : > { %3637 = vmatmul.msk.f32.vlgmr.msra.gmra.mxu1 %vm5786_vm5, %v4497_v43  ;;  %vm3538_vm5 = vcmask 1041408  }
 0xb8f   : > { %v2518_v28 = vpop.f32.mrf.mxu0 }
 0xb90   : > { %v2538_v34 = vpop.f32.mrf.mxu1  ;;  %v2519_v35 = vadd.f32 %v2518_v28, %v2490_v52 }
 0xb91   : > { %v2539_v27 = vadd.f32 %v2538_v34, %v2490_v52 }
 0xb92   : > { %v2563_v33 = vmax.f32 %v2519_v35, 0.0 }
 0xb93   : > { %v2564_v31 = vmax.f32 %v2539_v27, 0.0  ;;  %v2552_v5 = vmin.f32 %v2519_v35, %v2539_v27  ;;  %v2541_v29 = vmax.f32 %v2519_v35, %v2539_v27 }
 0xb94   : > { %2567 = vrot.lane.b32.xlu0 %v2563_v33, %s3816_s30 }
 0xb95   : > { %2569 = vrot.lane.b32.xlu1 %v2564_v31, %s3816_s30 }
 0xc06   : > { %v2568_v30 = vpop.permute.xlu0 %2567 }
 0xc07   : > { %v2570_v24 = vpop.permute.xlu1 %2569  ;;  %2575 = vst.msk [vmem:[#allocation3] sm:$0xff] %vm5787_vm8, %v2568_v30  ;;  %vm3540_vm8 = vcmask 1042432  }
 0xc08   : > { %2577 = vst.msk [vmem:[#allocation3 + $0x10] sm:$0xff] %vm320_vm2, %v2570_v24  ;;  %v4738_v43 = vsel %vm320_vm2, %v2568_v30, %v2570_v24  ;;  %vm5788_vm2 = vcmask 769024  }
 0xc09   : > { %vm5789_vm15 = vmmov %vm5788_vm2 }
 0xc0e   : > { %v4740_v16 = vld [vmem:[#allocation3] sm:$0xff] }
 0xc0f   : > { %v2720_v22 = vld [vmem:[#allocation3 + $0x10] sm:$0xff]  ;;  %2724 = vrot.lane.b32.xlu2 %v4740_v16, %s3822_s13  ;;  %v3791_v36 = vpack.i.bf16 %v4738_v43, %v4740_v16 }
 0xc10   : > { %2728 = vrot.lane.b32.xlu1 %v2720_v22, %s3822_s13  ;;  %2710 = vrot.lane.b32.xlu0 %v2720_v22, %s3821_s12 }
 0xc17   : > { %2652 = vrot.lane.b32.xlu2 %v2720_v22, %s3818_s9 }
 0xc18   : > { %2690 = vrot.lane.b32.xlu0 %v2720_v22, %s3820_s11  ;;  %2686 = vrot.lane.b32.xlu1 %v4740_v16, %s3820_s11 }
 0xc1f   : > { %2632 = vrot.lane.b32.xlu2 %v2720_v22, %s3817_s8 }
 0xc20   : > { %2670 = vrot.lane.b32.xlu0 %v2720_v22, %s3819_s10  ;;  %2666 = vrot.lane.b32.xlu1 %v4740_v16, %s3819_s10 }
 0xc27   : > { %3792 = vrot.lane.b32.xlu2 %v3791_v36, %s3821_s12 }
 0xc28   : > { %2628 = vrot.lane.b32.xlu0 %v4740_v16, %s3817_s8  ;;  %3797 = vrot.lane.b32.xlu1 %v3791_v36, %s3818_s9 }
 0xc2f   : > { %2688 = vrot.lane.b32.xlu2 %v4738_v43, %s3820_s11 }
 0xc30   : > { %2726 = vrot.lane.b32.xlu0 %v4738_v43, %s3822_s13  ;;  %2630 = vrot.lane.b32.xlu1 %v4738_v43, %s3817_s8  ;;  %s3612_s13 = sshll.u32 %s5800_s25, 2 }
 0xc37   : > { %2668 = vrot.lane.b32.xlu2 %v4738_v43, %s3819_s10  ;;  %s3826_s10 = smov 10  }
 0xc38   : > { %2608 = vrot.lane.b32.xlu0 %v4740_v16, %s3823_s14  ;;  %2610 = vrot.lane.b32.xlu1 %v4738_v43, %s3823_s14 }
 0xc3f   : > { %2612 = vrot.lane.b32.xlu2 %v2720_v22, %s3823_s14 }
 0xc40   : > { %2594 = vrot.lane.b32.xlu1 %v2720_v22, %s3824_s15  ;;  %3802 = vrot.lane.b32.xlu0 %v3791_v36, %s3824_s15 }
 0xc47   : > { %2760 = vperm.xlu2 %3790, %v4558_v18  }
 0xc69   : > { %v2725_v38 = vpop.permute.xlu2 %2724 }
 0xc6a   : > { %636 = vmin.xlane.f32.xlu1 %v635_v9  ;;  %625 = vmax.xlane.f32.xlu0 %v624_v10 }
 0xc70   : > { %892 = vmax.xlane.f32.xlu2 %v891_v20 }
 0xc71   : > { %v2653_v63 = vpop.permute.xlu2 %2652 }
 0xc72   : > { %1281 = vmin.xlane.f32.xlu1 %v1280_v48  ;;  %1270 = vmax.xlane.f32.xlu0 %v1269_v49 }
 0xc78   : > { %903 = vmin.xlane.f32.xlu2 %v902_v0 }
 0xc79   : > { %v2633_v10 = vpop.permute.xlu2 %2632 }
 0xc7a   : > { %1906 = vmax.xlane.f32.xlu1 %v1905_v61  ;;  %1546 = vmin.xlane.f32.xlu0 %v1545_v6 }
 0xc80   : > { %1535 = vmax.xlane.f32.xlu2 %v1534_v53 }
 0xc81   : > { %v3793_v20 = vpop.permute.xlu2 %3792 }
 0xc82   : > { %v2729_v4 = vpop.permute.xlu1 %2728  ;;  %v2711_v9 = vpop.permute.xlu0 %2710  ;;  %2182 = vmin.xlane.f32.xlu1 %v2181_v41  ;;  %2171 = vmax.xlane.f32.xlu0 %v2170_v42  ;;  %v3795_v60 = vunpack.i.h.bf16 %v3793_v20  ;;  %v3794_v2 = vunpack.i.l.bf16 %v3793_v20 }
 0xc84   : > { %v2712_v55 = vsel %vm524_vm14, %v3794_v2, %v3795_v60 }
 0xc88   : > { %1917 = vmin.xlane.f32.xlu2 %v1916_v62  ;;  %v2713_v62 = vsel %vm524_vm14, %v3795_v60, %v2711_v9 }
 0xc89   : > { %v2689_v45 = vpop.permute.xlu2 %2688 }
 0xc8a   : > { %v2687_v17 = vpop.permute.xlu1 %2686  ;;  %v2691_v8 = vpop.permute.xlu0 %2690  ;;  %2553 = vmin.xlane.f32.xlu0 %v2552_v5 }
 0xc8b   : > { %v2692_v37 = vsel %vm498_vm13, %v2687_v17, %v2689_v45  ;;  %v2693_v19 = vsel %vm498_vm13, %v2689_v45, %v2691_v8  ;;  %vm5790_vm13 = vcmask 916480  }
 0xc8c   : > { %vm5791_vm14 = vmmov %vm5790_vm13 }
 0xc90   : > { %2542 = vmax.xlane.f32.xlu2 %v2541_v29 }
 0xc91   : > { %v2669_v54 = vpop.permute.xlu2 %2668 }
 0xc92   : > { %v2667_v0 = vpop.permute.xlu1 %2666  ;;  %v2671_v44 = vpop.permute.xlu0 %2670 }
 0xc93   : > { %v2672_v39 = vsel %vm467_vm9, %v2667_v0, %v2669_v54  ;;  %v2673_v40 = vsel %vm467_vm9, %v2669_v54, %v2671_v44  ;;  %vm5792_vm9 = vcmask 1031168  }
 0xc94   : > { %vm5793_vm0 = vmmov %vm5792_vm9 }
 0xc99   : > { %v2613_v56 = vpop.permute.xlu2 %2612 }
 0xc9a   : > { %v3798_v48 = vpop.permute.xlu1 %3797  ;;  %v2629_v49 = vpop.permute.xlu0 %2628 }
 0xc9b   : > { %v3800_v41 = vunpack.i.h.bf16 %v3798_v48  ;;  %v3799_v42 = vunpack.i.l.bf16 %v3798_v48 }
 0xc9d   : > { %v2654_v47 = vsel %vm444_vm10, %v3799_v42, %v3800_v41  ;;  %v2655_v59 = vsel %vm444_vm10, %v3800_v41, %v2653_v63  ;;  %vm5794_vm10 = vmmov %vm5784_vm1 }
 0xca1   : > { %v4858_v57 = vpop.permute.xlu2 %2760 }
 0xca2   : > { %v2631_v6 = vpop.permute.xlu1 %2630  ;;  %v2727_v53 = vpop.permute.xlu0 %2726 }
 0xca3   : > { %v2730_v61 = vsel %vm5788_vm2, %v2725_v38, %v2727_v53  ;;  %v2731_v18 = vsel %vm5789_vm15, %v2727_v53, %v2729_v4  ;;  %v2634_v50 = vsel %vm5790_vm13, %v2629_v49, %v2631_v6  ;;  %v2635_v51 = vsel %vm5791_vm14, %v2631_v6, %v2633_v10 }
 0xca4   : > { %3679 = vmatpush.msk.msra.mxu2 %vm3974_vm11, %v2730_v61  ;;  %3685 = vmatpush.msk.msra.mxu3 %vm3987_vm12, %v2731_v18  ;;  %vm3546_vm15 = vcmask 80896   ;;  %vm3548_vm13 = vcmask 113664  }
 0xca6   : > { %2774 = vmatpush.msra.mxu2 %v2712_v55  ;;  %2794 = vmatpush.msra.mxu3 %v2713_v62 }
 0xca8   : > { %3680 = vmatpush.msk.msra.mxu2 %vm3917_vm7, %v2692_v37  ;;  %3686 = vmatpush.msk.msra.mxu3 %vm3911_vm6, %v2693_v19 }
 0xcaa   : > { %v2611_v3 = vpop.permute.xlu1 %2610  ;;  %3681 = vmatpush.msk.msra.mxu2 %vm3974_vm11, %v2672_v39  ;;  %3687 = vmatpush.msk.msra.mxu3 %vm3987_vm12, %v2673_v40  ;;  %v2609_v46 = vpop.permute.xlu0 %2608 }
 0xcab   : > { %v2615_v58 = vsel %vm5792_vm9, %v2611_v3, %v2613_v56  ;;  %v2614_v1 = vsel %vm5793_vm0, %v2609_v46, %v2611_v3 }
 0xcac   : > { %2777 = vmatpush.msra.mxu2 %v2654_v47  ;;  %2797 = vmatpush.msra.mxu3 %v2655_v59 }
 0xcae   : > { %3682 = vmatpush.msk.msra.mxu2 %vm3917_vm7, %v2634_v50  ;;  %3688 = vmatpush.msk.msra.mxu3 %vm3911_vm6, %v2635_v51 }
 0xcb0   : > { %3683 = vmatpush.msk.msra.mxu2 %vm3974_vm11, %v2614_v1  ;;  %3689 = vmatpush.msk.msra.mxu3 %vm3987_vm12, %v2615_v58  ;;  %vm5795_vm11 = vcmask 588800  }
 0xcb1   : > { %vm5796_vm12 = vmmov %vm5795_vm11 }
 0xcb2   : > { %v3803_v12 = vpop.permute.xlu0 %3802  ;;  %v2595_v23 = vpop.permute.xlu1 %2594 }
 0xcb3   : > { %v3805_v15 = vunpack.i.h.bf16 %v3803_v12  ;;  %v3804_v11 = vunpack.i.l.bf16 %v3803_v12 }
 0xcb5   : > { %v2596_v25 = vsel %vm5794_vm10, %v3804_v11, %v3805_v15  ;;  %v2597_v26 = vsel %vm5784_vm1, %v3805_v15, %v2595_v23 }
 0xcb6   : > { %2780 = vmatpush.msra.mxu2 %v2596_v25  ;;  %2800 = vmatpush.msra.mxu3 %v2597_v26 }
 0xcb8   : > { %3684 = vmatpush.msk.msra.mxu2 %vm3917_vm7, %v4740_v16  ;;  %3690 = vmatpush.msk.msra.mxu3 %vm3911_vm6, %v4738_v43  ;;  %vm5797_vm6 = vcmask 1040384   ;;  %vm975_vm7 = vcmask 7168  }
 0xcb9   : > { %3638 = vmatmul.msk.f32.vlgmr.msra.gmra.mxu2 %vm5795_vm11, %v4601_v32  ;;  %3639 = vmatmul.msk.f32.vlgmr.msra.gmra.mxu3 %vm5796_vm12, %v4601_v32  ;;  %vm5798_vm2 = vmmov %vm5797_vm6 }
 0xcdd   : > { %v637_v7 = vpop.xlane.xlu1 %636  ;;  %v626_v52 = vpop.xlane.xlu0 %625 }
 0xcde   : > { %v638_v28 = vrot.slane %v637_v7, 4  ;;  %v627_v34 = vrot.slane %v626_v52, 4 }
 0xce0   : > { %v639_v35 = vmin.f32 %v637_v7, %v638_v28  ;;  %v628_v27 = vmax.f32 %v626_v52, %v627_v34 }
 0xce2   : > { %v640_v14 = vrot.slane %v639_v35, 2  ;;  %v629_v33 = vrot.slane %v628_v27, 2 }
 0xce3   : > { %v893_v31 = vpop.xlane.xlu2 %892 }
 0xce4   : > { %v894_v5 = vrot.slane %v893_v31, 4  ;;  %v630_v13 = vmax.f32 %v628_v27, %v629_v33  ;;  %v641_v29 = vmin.f32 %v639_v35, %v640_v14 }
 0xce5   : > { %v1282_v30 = vpop.xlane.xlu1 %1281  ;;  %v1271_v24 = vpop.xlane.xlu0 %1270 }
 0xce6   : > { %v895_v43 = vmax.f32 %v893_v31, %v894_v5  ;;  %v1283_v16 = vrot.slane %v1282_v30, 4  ;;  %v1272_v22 = vrot.slane %v1271_v24, 4  ;;  %v631_v32 = vrot.slane %v630_v13, 1 }
 0xce7   : > { %v642_v36 = vrot.slane %v641_v29, 1 }
 0xce8   : > { %v896_v38 = vrot.slane %v895_v43, 2  ;;  %v1284_v63 = vmin.f32 %v1282_v30, %v1283_v16  ;;  %v1273_v4 = vmax.f32 %v1271_v24, %v1272_v22  ;;  %v632_v9 = vmax.f32 %v630_v13, %v631_v32 }
 0xce9   : > { %v643_v10 = vmin.f32 %v641_v29, %v642_v36 }
 0xcea   : > { %3691 = vpush %v632_v9  ;;  %v897_v17 = vmax.f32 %v895_v43, %v896_v38  ;;  %v1285_v8 = vrot.slane %v1284_v63, 2  ;;  %v1274_v20 = vrot.slane %v1273_v4, 2 }
 0xceb   : > { %3693 = vpush %v643_v10  ;;  %v904_v0 = vpop.xlane.xlu2 %903 }
 0xcec   : > { %v905_v44 = vrot.slane %v904_v0, 4  ;;  %v898_v45 = vrot.slane %v897_v17, 1  ;;  %v1275_v61 = vmax.f32 %v1273_v4, %v1274_v20  ;;  %v1286_v18 = vmin.f32 %v1284_v63, %v1285_v8 }
 0xced   : > { %v1907_v48 = vpop.xlane.xlu1 %1906  ;;  %v1547_v49 = vpop.xlane.xlu0 %1546 }
 0xcee   : > { %v906_v60 = vmin.f32 %v904_v0, %v905_v44  ;;  %v1908_v2 = vrot.slane %v1907_v48, 4  ;;  %v1548_v6 = vrot.slane %v1547_v49, 4  ;;  %v899_v53 = vmax.f32 %v897_v17, %v898_v45 }
 0xcef   : > { %v1276_v42 = vrot.slane %v1275_v61, 1  ;;  %v1287_v39 = vrot.slane %v1286_v18, 1 }
 0xcf0   : > { %v907_v54 = vrot.slane %v906_v60, 2  ;;  %v1909_v55 = vmax.f32 %v1907_v48, %v1908_v2  ;;  %v1549_v62 = vmin.f32 %v1547_v49, %v1548_v6  ;;  %3695 = vpush %v899_v53 }
 0xcf1   : > { %v1277_v1 = vmax.f32 %v1275_v61, %v1276_v42  ;;  %v1288_v12 = vmin.f32 %v1286_v18, %v1287_v39  ;;  %v2912_v61 = vld [vmem:[%s5707_s5 + $0x78] sm:$0xff] }
 0xcf2   : > { %v908_v37 = vmin.f32 %v906_v60, %v907_v54  ;;  %v1550_v19 = vrot.slane %v1549_v62, 2  ;;  %v1910_v40 = vrot.slane %v1909_v55, 2  ;;  %v2928_v18 = vld [vmem:[%s5707_s5 + $0xf8] sm:$0xff]  ;;  %3208 = vmatpush.msrb.mxu0 %v2912_v61  ;;  %v2911_v54 = vld [vmem:[%s5707_s5 + $0x70] sm:$0xff] }
 0xcf3   : > { %v1536_v41 = vpop.xlane.xlu2 %1535  ;;  %3228 = vmatpush.msrb.mxu1 %v2928_v18  ;;  %v2944_v42 = vld [vmem:[%s5707_s5 + $0x178] sm:$0xff] }
 0xcf4   : > { %v1537_v3 = vrot.slane %v1536_v41, 4  ;;  %v909_v46 = vrot.slane %v908_v37, 1  ;;  %v1551_v15 = vmin.f32 %v1549_v62, %v1550_v19  ;;  %v1911_v26 = vmax.f32 %v1909_v55, %v1910_v40  ;;  %v2927_v55 = vld [vmem:[%s5707_s5 + $0xf0] sm:$0xff]  ;;  %3209 = vmatpush.msrb.mxu0 %v2911_v54  ;;  %v2910_v62 = vld [vmem:[%s5707_s5 + $0x68] sm:$0xff]  ;;  %v2909_v19 = vld [vmem:[%s5707_s5 + $0x60] sm:$0xff]  ;;  %3248 = vmatpush.msrb.mxu2 %v2944_v42 }
 0xcf5   : > { %v2183_v47 = vpop.xlane.xlu1 %2182  ;;  %v2172_v59 = vpop.xlane.xlu0 %2171  ;;  %3229 = vmatpush.msrb.mxu1 %v2927_v55  ;;  %v2960_v39 = vld [vmem:[%s5707_s5 + $0x1f8] sm:$0xff]  ;;  %v2975_v54 = vld [vmem:[%s5707_s5 + $0x270] sm:$0xff] }
 0xcf6   : > { %v1538_v50 = vmax.f32 %v1536_v41, %v1537_v3  ;;  %v2184_v51 = vrot.slane %v2183_v47, 4  ;;  %v2173_v56 = vrot.slane %v2172_v59, 4  ;;  %v910_v58 = vmin.f32 %v908_v37, %v909_v46  ;;  %v2926_v37 = vld [vmem:[%s5707_s5 + $0xe8] sm:$0xff]  ;;  %3210 = vmatpush.msrb.mxu0 %v2910_v62  ;;  %v2925_v41 = vld [vmem:[%s5707_s5 + $0xe0] sm:$0xff]  ;;  %3268 = vmatpush.msrb.mxu3 %v2960_v39  ;;  %v2908_v40 = vld [vmem:[%s5707_s5 + $0x58] sm:$0xff] }
 0xcf7   : > { %v1552_v34 = vrot.slane %v1551_v15, 1  ;;  %v1912_v33 = vrot.slane %v1911_v26, 1  ;;  %3230 = vmatpush.msrb.mxu1 %v2926_v37  ;;  %v2924_v3 = vld [vmem:[%s5707_s5 + $0xd8] sm:$0xff]  ;;  %v2943_v46 = vld [vmem:[%s5707_s5 + $0x170] sm:$0xff] }
 0xcf8   : > { %v1539_v11 = vrot.slane %v1538_v50, 2  ;;  %v2185_v23 = vmin.f32 %v2183_v47, %v2184_v51  ;;  %v2174_v25 = vmax.f32 %v2172_v59, %v2173_v56  ;;  %3697 = vpush %v910_v58  ;;  %3211 = vmatpush.msrb.mxu0 %v2909_v19  ;;  %v2959_v47 = vld [vmem:[%s5707_s5 + $0x1f0] sm:$0xff]  ;;  %3249 = vmatpush.msrb.mxu2 %v2943_v46  ;;  %v2942_v51 = vld [vmem:[%s5707_s5 + $0x168] sm:$0xff] }
 0xcf9   : > { %3699 = vpush %v1277_v1  ;;  %v1553_v30 = vmin.f32 %v1551_v15, %v1552_v34  ;;  %v1913_v22 = vmax.f32 %v1911_v26, %v1912_v33  ;;  %3231 = vmatpush.msrb.mxu1 %v2925_v41  ;;  %3269 = vmatpush.msrb.mxu3 %v2959_v47  ;;  %v2907_v59 = vld [vmem:[%s5707_s5 + $0x50] sm:$0xff]  ;;  %v2958_v56 = vld [vmem:[%s5707_s5 + $0x1e8] sm:$0xff]  ;;  %v2957_v15 = vld [vmem:[%s5707_s5 + $0x1e0] sm:$0xff] }
 0xcfa   : > { %3701 = vpush %v1288_v12  ;;  %v1540_v7 = vmax.f32 %v1538_v50, %v1539_v11  ;;  %v2175_v52 = vrot.slane %v2174_v25, 2  ;;  %v2186_v35 = vrot.slane %v2185_v23, 2  ;;  %3212 = vmatpush.msrb.mxu0 %v2908_v40  ;;  %v2923_v50 = vld [vmem:[%s5707_s5 + $0xd0] sm:$0xff]  ;;  %3250 = vmatpush.msrb.mxu2 %v2942_v51  ;;  %v2906_v58 = vld [vmem:[%s5707_s5 + $0x48] sm:$0xff]  ;;  %v2941_v12 = vld [vmem:[%s5707_s5 + $0x160] sm:$0xff] }
 0xcfb   : > { %v1918_v28 = vpop.xlane.xlu2 %1917  ;;  %3232 = vmatpush.msrb.mxu1 %v2924_v3  ;;  %3270 = vmatpush.msrb.mxu3 %v2958_v56  ;;  %v2922_v1 = vld [vmem:[%s5707_s5 + $0xc8] sm:$0xff]  ;;  %v2905_v11 = vld [vmem:[%s5707_s5 + $0x40] sm:$0xff]  ;;  %v2956_v26 = vld [vmem:[%s5707_s5 + $0x1d8] sm:$0xff] }
 0xcfc   : > { %v1919_v27 = vrot.slane %v1918_v28, 4  ;;  %v1541_v14 = vrot.slane %v1540_v7, 1  ;;  %v2176_v24 = vmax.f32 %v2174_v25, %v2175_v52  ;;  %v2187_v32 = vmin.f32 %v2185_v23, %v2186_v35  ;;  %3213 = vmatpush.msrb.mxu0 %v2907_v59  ;;  %3251 = vmatpush.msrb.mxu2 %v2941_v12  ;;  %v2921_v23 = vld [vmem:[%s5707_s5 + $0xc0] sm:$0xff]  ;;  %v2940_v25 = vld [vmem:[%s5707_s5 + $0x158] sm:$0xff]  ;;  %v2955_v34 = vld [vmem:[%s5707_s5 + $0x1d0] sm:$0xff] }
 0xcfd   : > { %v2554_v31 = vpop.xlane.xlu0 %2553  ;;  %3233 = vmatpush.msrb.mxu1 %v2923_v50  ;;  %3271 = vmatpush.msrb.mxu3 %v2957_v15  ;;  %v2920_v52 = vld [vmem:[%s5707_s5 + $0xb8] sm:$0xff]  ;;  %v2903_v35 = vld [vmem:[%s5707_s5 + $0x30] sm:$0xff]  ;;  %v2954_v33 = vld [vmem:[%s5707_s5 + $0x1c8] sm:$0xff] }
 0xcfe   : > { %v1920_v5 = vmin.f32 %v1918_v28, %v1919_v27  ;;  %v2555_v13 = vrot.slane %v2554_v31, 4  ;;  %v1542_v29 = vmax.f32 %v1540_v7, %v1541_v14  ;;  %v2177_v4 = vrot.slane %v2176_v24, 1  ;;  %3214 = vmatpush.msrb.mxu0 %v2906_v58  ;;  %v2904_v7 = vld [vmem:[%s5707_s5 + $0x38] sm:$0xff]  ;;  %3252 = vmatpush.msrb.mxu2 %v2940_v25  ;;  %v2939_v28 = vld [vmem:[%s5707_s5 + $0x150] sm:$0xff]  ;;  %v2938_v14 = vld [vmem:[%s5707_s5 + $0x148] sm:$0xff] }
 0xcff   : > { %v2188_v17 = vrot.slane %v2187_v32, 1  ;;  %3234 = vmatpush.msrb.mxu1 %v2922_v1  ;;  %3272 = vmatpush.msrb.mxu3 %v2956_v26  ;;  %v2919_v27 = vld [vmem:[%s5707_s5 + $0xb0] sm:$0xff]  ;;  %v2930_v19 = vld [vmem:[%s5707_s5 + $0x108] sm:$0xff]  ;;  %v2929_v47 = vld [vmem:[%s5707_s5 + $0x100] sm:$0xff] }
 0xd00   : > { %v1921_v43 = vrot.slane %v1920_v5, 2  ;;  %v2556_v16 = vmin.f32 %v2554_v31, %v2555_v13  ;;  %3703 = vpush %v1542_v29  ;;  %v2178_v0 = vmax.f32 %v2176_v24, %v2177_v4  ;;  %3215 = vmatpush.msrb.mxu0 %v2905_v11  ;;  %3253 = vmatpush.msrb.mxu2 %v2939_v28  ;;  %v2902_v31 = vld [vmem:[%s5707_s5 + $0x28] sm:$0xff]  ;;  %v2937_v13 = vld [vmem:[%s5707_s5 + $0x140] sm:$0xff]  ;;  %v2915_v4 = vld [vmem:[%s5707_s5 + $0x90] sm:$0xff] }
 0xd01   : > { %3705 = vpush %v1553_v30  ;;  %v2189_v48 = vmin.f32 %v2187_v32, %v2188_v17  ;;  %3235 = vmatpush.msrb.mxu1 %v2921_v23  ;;  %3273 = vmatpush.msrb.mxu3 %v2955_v34  ;;  %v2953_v29 = vld [vmem:[%s5707_s5 + $0x1c0] sm:$0xff]  ;;  %v2916_v32 = vld [vmem:[%s5707_s5 + $0x98] sm:$0xff]  ;;  %v2898_v17 = vld [vmem:[%s5707_s5 + $0x8] sm:$0xff] }
 0xd02   : > { %3707 = vpush %v1913_v22  ;;  %v1922_v36 = vmin.f32 %v1920_v5, %v1921_v43  ;;  %v2557_v38 = vrot.slane %v2556_v16, 2  ;;  %3216 = vmatpush.msrb.mxu0 %v2904_v7  ;;  %v2918_v5 = vld [vmem:[%s5707_s5 + $0xa8] sm:$0xff]  ;;  %3254 = vmatpush.msrb.mxu2 %v2938_v14  ;;  %v2901_v30 = vld [vmem:[%s5707_s5 + $0x20] sm:$0xff]  ;;  %v2936_v43 = vld [vmem:[%s5707_s5 + $0x138] sm:$0xff] }
 0xd03   : > { %v2543_v63 = vpop.xlane.xlu2 %2542  ;;  %3236 = vmatpush.msrb.mxu1 %v2920_v52  ;;  %3274 = vmatpush.msrb.mxu3 %v2954_v33  ;;  %v2917_v24 = vld [vmem:[%s5707_s5 + $0xa0] sm:$0xff]  ;;  %v2900_v22 = vld [vmem:[%s5707_s5 + $0x18] sm:$0xff]  ;;  %v2991_v55 = vld [vmem:[%s5707_s5 + $0x2f0] sm:$0xff] }
 0xd04   : > { %v2544_v9 = vrot.slane %v2543_v63, 4  ;;  %v1923_v10 = vrot.slane %v1922_v36, 1  ;;  %v2558_v44 = vmin.f32 %v2556_v16, %v2557_v38  ;;  %3217 = vmatpush.msrb.mxu0 %v2903_v35  ;;  %v2952_v16 = vld [vmem:[%s5707_s5 + $0x1b8] sm:$0xff]  ;;  %3255 = vmatpush.msrb.mxu2 %v2937_v13  ;;  %v2951_v38 = vld [vmem:[%s5707_s5 + $0x1b0] sm:$0xff]  ;;  %v2946_v41 = vld [vmem:[%s5707_s5 + $0x188] sm:$0xff] }
 0xd05   : > { %3237 = vmatpush.msrb.mxu1 %v2919_v27  ;;  %3275 = vmatpush.msrb.mxu3 %v2953_v29  ;;  %v2990_v46 = vld [vmem:[%s5707_s5 + $0x2e8] sm:$0xff]  ;;  %v2945_v59 = vld [vmem:[%s5707_s5 + $0x180] sm:$0xff]  ;;  %v3008_v58 = vld [vmem:[%s5707_s5 + $0x378] sm:$0xff] }
 0xd06   : > { %v2545_v8 = vmax.f32 %v2543_v63, %v2544_v9  ;;  %v1924_v20 = vmin.f32 %v1922_v36, %v1923_v10  ;;  %v2559_v60 = vrot.slane %v2558_v44, 1  ;;  %3218 = vmatpush.msrb.mxu0 %v2902_v31  ;;  %v2935_v36 = vld [vmem:[%s5707_s5 + $0x130] sm:$0xff]  ;;  %3256 = vmatpush.msrb.mxu2 %v2936_v43  ;;  %v2934_v9 = vld [vmem:[%s5707_s5 + $0x128] sm:$0xff]  ;;  %v2973_v51 = vld [vmem:[%s5707_s5 + $0x260] sm:$0xff] }
 0xd07   : > { %3238 = vmatpush.msrb.mxu1 %v2918_v5  ;;  %3276 = vmatpush.msrb.mxu3 %v2952_v16  ;;  %v2899_v63 = vld [vmem:[%s5707_s5 + $0x10] sm:$0xff]  ;;  %v2950_v10 = vld [vmem:[%s5707_s5 + $0x1a8] sm:$0xff]  ;;  %v2989_v56 = vld [vmem:[%s5707_s5 + $0x2e0] sm:$0xff] }
 0xd08   : > { %v2546_v45 = vrot.slane %v2545_v8, 2  ;;  %3709 = vpush %v1924_v20  ;;  %v2560_v53 = vmin.f32 %v2558_v44, %v2559_v60  ;;  %3219 = vmatpush.msrb.mxu0 %v2901_v30  ;;  %3257 = vmatpush.msrb.mxu2 %v2935_v36  ;;  %v2933_v20 = vld [vmem:[%s5707_s5 + $0x120] sm:$0xff]  ;;  %v2976_v60 = vld [vmem:[%s5707_s5 + $0x278] sm:$0xff]  ;;  %v3007_v23 = vld [vmem:[%s5707_s5 + $0x370] sm:$0xff] }
 0xd09   : > { %3711 = vpush %v2178_v0  ;;  %3239 = vmatpush.msrb.mxu1 %v2917_v24  ;;  %3277 = vmatpush.msrb.mxu3 %v2951_v38  ;;  %v2949_v0 = vld [vmem:[%s5707_s5 + $0x1a0] sm:$0xff]  ;;  %v3024_v1 = vld [vmem:[%s5707_s5 + $0x3f8] sm:$0xff]  ;;  %v3023_v25 = vld [vmem:[%s5707_s5 + $0x3f0] sm:$0xff] }
 0xd0a   : > { %3713 = vpush %v2189_v48  ;;  %v2547_v49 = vmax.f32 %v2545_v8, %v2546_v45  ;;  %3220 = vmatpush.msrb.mxu0 %v2900_v22  ;;  %v2914_v8 = vld [vmem:[%s5707_s5 + $0x88] sm:$0xff]  ;;  %3258 = vmatpush.msrb.mxu2 %v2934_v9  ;;  %v2897_v44 = vld [vmem:[%s5707_s5] sm:$0xff]  ;;  %v2932_v48 = vld [vmem:[%s5707_s5 + $0x118] sm:$0xff] }
 0xd0b   : > { %3240 = vmatpush.msrb.mxu1 %v2916_v32  ;;  %3278 = vmatpush.msrb.mxu3 %v2950_v10  ;;  %v2913_v45 = vld [vmem:[%s5707_s5 + $0x80] sm:$0xff]  ;;  %v2972_v15 = vld [vmem:[%s5707_s5 + $0x258] sm:$0xff]  ;;  %v2971_v26 = vld [vmem:[%s5707_s5 + $0x250] sm:$0xff] }
 0xd0c   : > { %v2548_v2 = vrot.slane %v2547_v49, 1  ;;  %3221 = vmatpush.msrb.mxu0 %v2899_v63  ;;  %3259 = vmatpush.msrb.mxu2 %v2933_v20  ;;  %v2988_v11 = vld [vmem:[%s5707_s5 + $0x2d8] sm:$0xff]  ;;  %v2987_v7 = vld [vmem:[%s5707_s5 + $0x2d0] sm:$0xff]  ;;  %v3006_v52 = vld [vmem:[%s5707_s5 + $0x368] sm:$0xff] }
 0xd0d   : > { %3241 = vmatpush.msrb.mxu1 %v2915_v4  ;;  %3279 = vmatpush.msrb.mxu3 %v2949_v0  ;;  %v3022_v28 = vld [vmem:[%s5707_s5 + $0x3e8] sm:$0xff]  ;;  %v3005_v27 = vld [vmem:[%s5707_s5 + $0x360] sm:$0xff]  ;;  %v3004_v5 = vld [vmem:[%s5707_s5 + $0x358] sm:$0xff] }
 0xd0e   : > { %v2549_v6 = vmax.f32 %v2547_v49, %v2548_v2  ;;  %3222 = vmatpush.msrb.mxu0 %v2898_v17  ;;  %v2948_v49 = vld [vmem:[%s5707_s5 + $0x198] sm:$0xff]  ;;  %3260 = vmatpush.msrb.mxu2 %v2932_v48  ;;  %v2970_v34 = vld [vmem:[%s5707_s5 + $0x248] sm:$0xff]  ;;  %v3021_v14 = vld [vmem:[%s5707_s5 + $0x3e0] sm:$0xff] }
 0xd0f   : > { %3242 = vmatpush.msrb.mxu1 %v2914_v8  ;;  %v2992_v2 = vld [vmem:[%s5707_s5 + $0x2f8] sm:$0xff]  ;;  %3280 = vmatpush.msrb.mxu3 %v2948_v49  ;;  %v2986_v35 = vld [vmem:[%s5707_s5 + $0x2c8] sm:$0xff]  ;;  %v2969_v33 = vld [vmem:[%s5707_s5 + $0x240] sm:$0xff] }
 0xd10   : > { %3715 = vpush %v2549_v6  ;;  %3223 = vmatpush.msrb.mxu0 %v2897_v44  ;;  %v2931_v6 = vld [vmem:[%s5707_s5 + $0x110] sm:$0xff]  ;;  %v2985_v31 = vld [vmem:[%s5707_s5 + $0x2c0] sm:$0xff]  ;;  %v3020_v13 = vld [vmem:[%s5707_s5 + $0x3d8] sm:$0xff] }
 0xd11   : > { %3717 = vpush %v2560_v53  ;;  %3243 = vmatpush.msrb.mxu1 %v2913_v45  ;;  %v2947_v53 = vld [vmem:[%s5707_s5 + $0x190] sm:$0xff]  ;;  %3261 = vmatpush.msrb.mxu2 %v2931_v6  ;;  %v2968_v29 = vld [vmem:[%s5707_s5 + $0x238] sm:$0xff]  ;;  %v3002_v36 = vld [vmem:[%s5707_s5 + $0x348] sm:$0xff] }
 0xd12   : > { %3288 = vmatpush.msra.mxu0 %v2976_v60  ;;  %3281 = vmatpush.msrb.mxu3 %v2947_v53  ;;  %v2984_v30 = vld [vmem:[%s5707_s5 + $0x2b8] sm:$0xff]  ;;  %v3003_v43 = vld [vmem:[%s5707_s5 + $0x350] sm:$0xff]  ;;  %v3018_v38 = vld [vmem:[%s5707_s5 + $0x3c8] sm:$0xff] }
 0xd13   : > { %3308 = vmatpush.msra.mxu1 %v2992_v2  ;;  %3262 = vmatpush.msrb.mxu2 %v2930_v19  ;;  %v3019_v16 = vld [vmem:[%s5707_s5 + $0x3d0] sm:$0xff]  ;;  %v2966_v63 = vld [vmem:[%s5707_s5 + $0x228] sm:$0xff]  ;;  %v3001_v9 = vld [vmem:[%s5707_s5 + $0x340] sm:$0xff] }
 0xd14   : > { %3289 = vmatpush.msra.mxu0 %v2975_v54  ;;  %3282 = vmatpush.msrb.mxu3 %v2946_v41  ;;  %v2967_v22 = vld [vmem:[%s5707_s5 + $0x230] sm:$0xff]  ;;  %v2982_v4 = vld [vmem:[%s5707_s5 + $0x2a8] sm:$0xff]  ;;  %v3017_v10 = vld [vmem:[%s5707_s5 + $0x3c0] sm:$0xff] }
 0xd15   : > { %3309 = vmatpush.msra.mxu1 %v2991_v55  ;;  %3263 = vmatpush.msrb.mxu2 %v2929_v47  ;;  %v2983_v32 = vld [vmem:[%s5707_s5 + $0x2b0] sm:$0xff]  ;;  %v2965_v17 = vld [vmem:[%s5707_s5 + $0x220] sm:$0xff]  ;;  %v3000_v20 = vld [vmem:[%s5707_s5 + $0x338] sm:$0xff] }
 0xd16   : > { %3283 = vmatpush.msrb.mxu3 %v2945_v59  ;;  %v2981_v8 = vld [vmem:[%s5707_s5 + $0x2a0] sm:$0xff]  ;;  %v3016_v0 = vld [vmem:[%s5707_s5 + $0x3b8] sm:$0xff]  ;;  %v2999_v48 = vld [vmem:[%s5707_s5 + $0x330] sm:$0xff] }
 0xd17   : > { %3310 = vmatpush.msra.mxu1 %v2990_v46  ;;  %3328 = vmatpush.msra.mxu2 %v3008_v58  ;;  %v2964_v44 = vld [vmem:[%s5707_s5 + $0x218] sm:$0xff]  ;;  %v3015_v49 = vld [vmem:[%s5707_s5 + $0x3b0] sm:$0xff]  ;;  %v2998_v53 = vld [vmem:[%s5707_s5 + $0x328] sm:$0xff] }
 0xd18   : > { %3348 = vmatpush.msra.mxu3 %v3024_v1  ;;  %v2980_v45 = vld [vmem:[%s5707_s5 + $0x298] sm:$0xff]  ;;  %v2963_v60 = vld [vmem:[%s5707_s5 + $0x210] sm:$0xff]  ;;  %v2978_v54 = vld [vmem:[%s5707_s5 + $0x288] sm:$0xff] }
 0xd19   : > { %3311 = vmatpush.msra.mxu1 %v2989_v56  ;;  %3329 = vmatpush.msra.mxu2 %v3007_v23  ;;  %v2979_v2 = vld [vmem:[%s5707_s5 + $0x290] sm:$0xff]  ;;  %v2997_v55 = vld [vmem:[%s5707_s5 + $0x320] sm:$0xff]  ;;  %v2994_v59 = vld [vmem:[%s5707_s5 + $0x308] sm:$0xff] }
 0xd1a   : > { %3349 = vmatpush.msra.mxu3 %v3023_v25  ;;  %v2977_v19 = vld [vmem:[%s5707_s5 + $0x280] sm:$0xff]  ;;  %v2995_v46 = vld [vmem:[%s5707_s5 + $0x310] sm:$0xff]  ;;  %v3056_v25 = vld [vmem:[%s5707_s5 + $0x4f8] sm:$0xff] }
 0xd1b   : > { %3312 = vmatpush.msra.mxu1 %v2988_v11  ;;  %3330 = vmatpush.msra.mxu2 %v3006_v52  ;;  %v3011_v47 = vld [vmem:[%s5707_s5 + $0x390] sm:$0xff]  ;;  %v3009_v56 = vld [vmem:[%s5707_s5 + $0x380] sm:$0xff]  ;;  %v3040_v11 = vld [vmem:[%s5707_s5 + $0x478] sm:$0xff]  ;;  %s5667_s15 = spop %3691 }
 0xd1c   : > { %3350 = vmatpush.msra.mxu3 %v3022_v28  ;;  %v3055_v52 = vld [vmem:[%s5707_s5 + $0x4f0] sm:$0xff]  ;;  %s5669_s20 = spop %3693 }
 0xd1d   : > { %3313 = vmatpush.msra.mxu1 %v2987_v7  ;;  %3331 = vmatpush.msra.mxu2 %v3005_v27  ;;  %v3037_v27 = vld [vmem:[%s5707_s5 + $0x460] sm:$0xff] }
 0xd1e   : > { %3351 = vmatpush.msra.mxu3 %v3021_v14  ;;  %v3053_v14 = vld [vmem:[%s5707_s5 + $0x4e0] sm:$0xff] }
 0xd1f   : > { %3314 = vmatpush.msra.mxu1 %v2986_v35  ;;  %3332 = vmatpush.msra.mxu2 %v3004_v5  ;;  %v3054_v35 = vld [vmem:[%s5707_s5 + $0x4e8] sm:$0xff]  ;;  %v3088_v5 = vld [vmem:[%s5707_s5 + $0x5f8] sm:$0xff] }
 0xd20   : > { %3352 = vmatpush.msra.mxu3 %v3020_v13  ;;  %v3036_v13 = vld [vmem:[%s5707_s5 + $0x458] sm:$0xff] }
 0xd21   : > { %3315 = vmatpush.msra.mxu1 %v2985_v31  ;;  %3333 = vmatpush.msra.mxu2 %v3003_v43  ;;  %v3071_v43 = vld [vmem:[%s5707_s5 + $0x570] sm:$0xff]  ;;  %s5671_s21 = spop %3695 }
 0xd22   : > { %3353 = vmatpush.msra.mxu3 %v3019_v16 }
 0xd23   : > { %3316 = vmatpush.msra.mxu1 %v2984_v30  ;;  %3334 = vmatpush.msra.mxu2 %v3002_v36 }
 0xd24   : > { %3354 = vmatpush.msra.mxu3 %v3018_v38 }
 0xd25   : > { %3317 = vmatpush.msra.mxu1 %v2983_v32  ;;  %3335 = vmatpush.msra.mxu2 %v3001_v9  ;;  %v3035_v32 = vld [vmem:[%s5707_s5 + $0x450] sm:$0xff] }
 0xd26   : > { %3355 = vmatpush.msra.mxu3 %v3017_v10  ;;  %v3051_v9 = vld [vmem:[%s5707_s5 + $0x4d0] sm:$0xff]  ;;  %v3070_v10 = vld [vmem:[%s5707_s5 + $0x568] sm:$0xff] }
 0xd27   : > { %3318 = vmatpush.msra.mxu1 %v2982_v4  ;;  %3336 = vmatpush.msra.mxu2 %v3000_v20  ;;  %v3034_v20 = vld [vmem:[%s5707_s5 + $0x448] sm:$0xff] }
 0xd28   : > { %3356 = vmatpush.msra.mxu3 %v3016_v0  ;;  %v3050_v0 = vld [vmem:[%s5707_s5 + $0x4c8] sm:$0xff] }
 0xd29   : > { %3319 = vmatpush.msra.mxu1 %v2981_v8  ;;  %3337 = vmatpush.msra.mxu2 %v2999_v48  ;;  %v3086_v8 = vld [vmem:[%s5707_s5 + $0x5e8] sm:$0xff]  ;;  %v3033_v48 = vld [vmem:[%s5707_s5 + $0x440] sm:$0xff]  ;;  %s5673_s22 = spop %3697 }
 0xd2a   : > { %3357 = vmatpush.msra.mxu3 %v3015_v49  ;;  %v3049_v49 = vld [vmem:[%s5707_s5 + $0x4c0] sm:$0xff]  ;;  %s3700_s23 = spop %3699 }
 0xd2b   : > { %3320 = vmatpush.msra.mxu1 %v2980_v45  ;;  %3338 = vmatpush.msra.mxu2 %v2998_v53  ;;  %v3085_v45 = vld [vmem:[%s5707_s5 + $0x5e0] sm:$0xff]  ;;  %v3048_v53 = vld [vmem:[%s5707_s5 + $0x4b8] sm:$0xff]  ;;  %s3702_s26 = spop %3701 }
 0xd2d   : > { %3321 = vmatpush.msra.mxu1 %v2979_v2  ;;  %3339 = vmatpush.msra.mxu2 %v2997_v55  ;;  %v3084_v2 = vld [vmem:[%s5707_s5 + $0x5d8] sm:$0xff]  ;;  %v3047_v55 = vld [vmem:[%s5707_s5 + $0x4b0] sm:$0xff] }
 0xd2f   : > { %3322 = vmatpush.msra.mxu1 %v2978_v54  ;;  %v3031_v54 = vld [vmem:[%s5707_s5 + $0x430] sm:$0xff] }
 0xd31   : > { %3323 = vmatpush.msra.mxu1 %v2977_v19  ;;  %v3030_v19 = vld [vmem:[%s5707_s5 + $0x428] sm:$0xff]  ;;  %s3704_s27 = spop %3703 }
 0xd32   : > { %s3706_s28 = spop %3705 }
 0xd33   : > { %s3708_s16 = spop %3707 }
 0xd39   : > { %s3710_s17 = spop %3709 }
 0xd3a   : > { %s3712_s18 = spop %3711 }
 0xd3b   : > { %s3714_s29 = spop %3713 }
 0xd3c   : > { %v2783_v61 = vpop.f32.mrf.mxu2  ;;  %v2803_v18 = vpop.f32.mrf.mxu3 }
 0xd3d   : > { %v2784_v62 = vadd.f32 %v2783_v61, %v4858_v57  ;;  %v2804_v37 = vadd.f32 %v2803_v18, %v4858_v57  ;;  %v2974_v57 = vld [vmem:[%s5707_s5 + $0x268] sm:$0xff] }
 0xd3e   : > { %3290 = vmatpush.msra.mxu0 %v2974_v57  ;;  %v3014_v61 = vld [vmem:[%s5707_s5 + $0x3a8] sm:$0xff]  ;;  %v3012_v57 = vld [vmem:[%s5707_s5 + $0x398] sm:$0xff] }
 0xd3f   : > { %v5060_v42 = vmax.f32 %v2784_v62, 0.0  ;;  %v5062_v39 = vmax.f32 %v2804_v37, 0.0  ;;  %v2817_v40 = vmin.f32 %v2784_v62, %v2804_v37  ;;  %v2806_v3 = vmax.f32 %v2784_v62, %v2804_v37  ;;  %v2962_v18 = vld [vmem:[%s5707_s5 + $0x208] sm:$0xff]  ;;  %v3013_v62 = vld [vmem:[%s5707_s5 + $0x3a0] sm:$0xff]  ;;  %3358 = vmatpush.msra.mxu3 %v3014_v61  ;;  %v3067_v61 = vld [vmem:[%s5707_s5 + $0x550] sm:$0xff] }
 0xd40   : > { %3291 = vmatpush.msra.mxu0 %v2973_v51  ;;  %v2961_v37 = vld [vmem:[%s5707_s5 + $0x200] sm:$0xff] }
 0xd41   : > { %2837 = vst [vmem:[#allocation1] sm:$0xff] %v5060_v42  ;;  %v2832_v50 = vrot.slane %v5062_v39, 7  ;;  %2818 = vmin.xlane.f32.xlu2 %v2817_v40  ;;  %2807 = vmax.xlane.f32.xlu1 %v2806_v3  ;;  %v2996_v3 = vld [vmem:[%s5707_s5 + $0x318] sm:$0xff]  ;;  %v2993_v51 = vld [vmem:[%s5707_s5 + $0x300] sm:$0xff]  ;;  %s3716_s19 = spop %3715 }
 0xd42   : > { %2838 = vst [vmem:[#allocation1 + $0x9] sm:$0xff] %v5062_v39  ;;  %3292 = vmatpush.msra.mxu0 %v2972_v15  ;;  %3359 = vmatpush.msra.mxu3 %v3013_v62  ;;  %v3066_v62 = vld [vmem:[%s5707_s5 + $0x548] sm:$0xff]  ;;  %s3718_s30 = spop %3717 }
 0xd43   : > { %v2833_v12 = vsel %vm5797_vm6, %v5060_v42, %v2832_v50  ;;  %3340 = vmatpush.msra.mxu2 %v2996_v3  ;;  %v3010_v50 = vld [vmem:[%s5707_s5 + $0x388] sm:$0xff]  ;;  %v3081_v3 = vld [vmem:[%s5707_s5 + $0x5c0] sm:$0xff] }
 0xd44   : > { %2836 = vst.msk [vmem:[#allocation6 + $0x3] ss:$4 sm:$0x3] %vm4157_vm4, %v2833_v12  ;;  %3293 = vmatpush.msra.mxu0 %v2971_v26  ;;  %3360 = vmatpush.msra.mxu3 %v3012_v57  ;;  %v3029_v57 = vld [vmem:[%s5707_s5 + $0x420] sm:$0xff] }
 0xd45   : > { %3341 = vmatpush.msra.mxu2 %v2995_v46  ;;  %v3045_v46 = vld [vmem:[%s5707_s5 + $0x4a0] sm:$0xff] }
 0xd46   : > { %3294 = vmatpush.msra.mxu0 %v2970_v34  ;;  %3361 = vmatpush.msra.mxu3 %v3011_v47  ;;  %v3038_v34 = vld [vmem:[%s5707_s5 + $0x468] sm:$0xff]  ;;  %v3064_v47 = vld [vmem:[%s5707_s5 + $0x538] sm:$0xff] }
 0xd47   : > { %3342 = vmatpush.msra.mxu2 %v2994_v59  ;;  %v3080_v59 = vld [vmem:[%s5707_s5 + $0x5b8] sm:$0xff] }
 0xd48   : > { %3295 = vmatpush.msra.mxu0 %v2969_v33  ;;  %3362 = vmatpush.msra.mxu3 %v3010_v50  ;;  %v3072_v33 = vld [vmem:[%s5707_s5 + $0x578] sm:$0xff] }
 0xd49   : > { %v2840_v24 = vld [vmem:[#allocation1 + $0x1] ss:$9 sm:$0xff]  ;;  %3343 = vmatpush.msra.mxu2 %v2993_v51 }
 0xd4a   : > { %2843 = vst.msk [vmem:[#allocation6 + $0xb] ss:$4 sm:$0x3] %vm4157_vm4, %v2840_v24  ;;  %3296 = vmatpush.msra.mxu0 %v2968_v29  ;;  %3363 = vmatpush.msra.mxu3 %v3009_v56  ;;  %v3052_v24 = vld [vmem:[%s5707_s5 + $0x4d8] sm:$0xff]  ;;  %v3063_v56 = vld [vmem:[%s5707_s5 + $0x530] sm:$0xff] }
 0xd4b   : > { %2844 = vst [vmem:[#allocation1] sm:$0xff] %v5060_v42  ;;  %v2889_v12 = vld [vmem:[#allocation6] sm:$0xff] }
 0xd4c   : > { %2845 = vst [vmem:[#allocation1 + $0x9] sm:$0xff] %v5062_v39  ;;  %3297 = vmatpush.msra.mxu0 %v2967_v22  ;;  %v3087_v22 = vld [vmem:[%s5707_s5 + $0x5f0] sm:$0xff]  ;;  %v3028_v50 = vld [vmem:[%s5707_s5 + $0x418] sm:$0xff] }
 0xd4d   : > { %v3044_v51 = vld [vmem:[%s5707_s5 + $0x498] sm:$0xff] }
 0xd4e   : > { %3298 = vmatpush.msra.mxu0 %v2966_v63 }
 0xd50   : > { %3299 = vmatpush.msra.mxu0 %v2965_v17 }
 0xd51   : > { %v2890_v15 = vld [vmem:[#allocation6 + $0x8] sm:$0xff] }
 0xd52   : > { %3300 = vmatpush.msra.mxu0 %v2964_v44  ;;  %v3069_v44 = vld [vmem:[%s5707_s5 + $0x560] sm:$0xff] }
 0xd53   : > { %v2847_v6 = vld [vmem:[#allocation1 + $0x2] ss:$9 sm:$0xff] }
 0xd54   : > { %2851 = vst [vmem:[#allocation1] sm:$0xff] %v5060_v42  ;;  %3301 = vmatpush.msra.mxu0 %v2963_v60  ;;  %v3068_v60 = vld [vmem:[%s5707_s5 + $0x558] sm:$0xff] }
 0xd55   : > { %2852 = vst [vmem:[#allocation1 + $0x9] sm:$0xff] %v5062_v39 }
 0xd56   : > { %2850 = vst.msk [vmem:[#allocation6 + $0x13] ss:$4 sm:$0x3] %vm4157_vm4, %v2847_v6  ;;  %3302 = vmatpush.msra.mxu0 %v2962_v18  ;;  %v3032_v6 = vld [vmem:[%s5707_s5 + $0x438] sm:$0xff]  ;;  %v3083_v18 = vld [vmem:[%s5707_s5 + $0x5d0] sm:$0xff] }
 0xd58   : > { %3303 = vmatpush.msra.mxu0 %v2961_v37  ;;  %v3082_v37 = vld [vmem:[%s5707_s5 + $0x5c8] sm:$0xff] }
 0xd5c   : > { %v2854_v41 = vld [vmem:[#allocation1 + $0x3] ss:$9 sm:$0xff] }
 0xd5d   : > { %2858 = vst [vmem:[#allocation1] sm:$0xff] %v5060_v42  ;;  %v2891_v28 = vld [vmem:[#allocation6 + $0x10] sm:$0xff] }
 0xd5e   : > { %2859 = vst [vmem:[#allocation1 + $0x9] sm:$0xff] %v5062_v39 }
 0xd5f   : > { %2857 = vst.msk [vmem:[#allocation6 + $0x1b] ss:$4 sm:$0x3] %vm4157_vm4, %v2854_v41  ;;  %v3046_v41 = vld [vmem:[%s5707_s5 + $0x4a8] sm:$0xff] }
 0xd65   : > { %v2861_v40 = vld [vmem:[#allocation1 + $0x4] ss:$9 sm:$0xff] }
 0xd66   : > { %2864 = vst.msk [vmem:[#allocation6 + $0x23] ss:$4 sm:$0x3] %vm4157_vm4, %v2861_v40  ;;  %v2892_v21 = vld [vmem:[#allocation6 + $0x18] sm:$0xff]  ;;  %v3065_v40 = vld [vmem:[%s5707_s5 + $0x540] sm:$0xff] }
 0xd67   : > { %2865 = vst [vmem:[#allocation1] sm:$0xff] %v5060_v42 }
 0xd68   : > { %2866 = vst [vmem:[#allocation1 + $0x9] sm:$0xff] %v5062_v39 }
 0xd6d   : > { %v2893_v26 = vld [vmem:[#allocation6 + $0x20] sm:$0xff] }
 0xd6f   : > { %v2868_v58 = vld [vmem:[#allocation1 + $0x5] ss:$9 sm:$0xff] }
 0xd70   : > { %2871 = vst.msk [vmem:[#allocation6 + $0x2b] ss:$4 sm:$0x3] %vm4157_vm4, %v2868_v58  ;;  %v3079_v58 = vld [vmem:[%s5707_s5 + $0x5b0] sm:$0xff] }
 0xd71   : > { %2872 = vst [vmem:[#allocation1] sm:$0xff] %v5060_v42 }
 0xd72   : > { %2873 = vst [vmem:[#allocation1 + $0x9] sm:$0xff] %v5062_v39 }
 0xd77   : > { %v2894_v31 = vld [vmem:[#allocation6 + $0x28] sm:$0xff] }
 0xd79   : > { %v2875_v1 = vld [vmem:[#allocation1 + $0x6] ss:$9 sm:$0xff] }
 0xd7a   : > { %2879 = vst [vmem:[#allocation1] sm:$0xff] %v5060_v42  ;;  %v3039_v42 = vld [vmem:[%s5707_s5 + $0x470] sm:$0xff] }
 0xd7b   : > { %2880 = vst [vmem:[#allocation1 + $0x9] sm:$0xff] %v5062_v39 }
 0xd7c   : > { %3165 = vst [vmem:[#allocation1] ss:$2 sm:$0xff] %v2889_v12  ;;  %v3043_v12 = vld [vmem:[%s5707_s5 + $0x490] sm:$0xff] }
 0xd7d   : > { %2878 = vst.msk [vmem:[#allocation6 + $0x33] ss:$4 sm:$0x3] %vm4157_vm4, %v2875_v1  ;;  %v3027_v1 = vld [vmem:[%s5707_s5 + $0x410] sm:$0xff] }
 0xd82   : > { %v2882_v23 = vld [vmem:[#allocation1 + $0x7] ss:$9 sm:$0xff] }
 0xd83   : > { %2885 = vst.msk [vmem:[#allocation6 + $0x3b] ss:$4 sm:$0x3] %vm4157_vm4, %v2882_v23  ;;  %v3172_v39 = vld.sshfl [vmem:[#allocation1] sm:$0xff pattern:$0x75316420] }
 0xd84   : > { %3224 = vmatmul.f32.vlgmr.msrb.gmra.mxu0 %v3172_v39  ;;  %3167 = vst [vmem:[#allocation1 + $0x10] ss:$2 sm:$0xff] %v2890_v15  ;;  %v3173_v7 = vld.sshfl [vmem:[#allocation1 + $0x8] sm:$0xff pattern:$0x75316420]  ;;  %v3077_v39 = vld [vmem:[%s5707_s5 + $0x5a0] sm:$0xff] }
 0xd85   : > { %3244 = vmatmul.f32.vlgmr.msrb.gmra.mxu1 %v3173_v7  ;;  %3180 = vst [vmem:[#allocation1] ss:$2 sm:$0xff] %v2893_v26  ;;  %3368 = vmatpush.msrb.mxu0 %v3040_v11  ;;  %v2895_v17 = vld [vmem:[#allocation6 + $0x30] sm:$0xff]  ;;  %v3025_v26 = vld [vmem:[%s5707_s5 + $0x400] sm:$0xff]  ;;  %vm977_vm4 = vcmask 15360  }
 0xd86   : > { %3388 = vmatpush.msrb.mxu1 %v3056_v25  ;;  %3169 = vst [vmem:[#allocation1 + $0x20] ss:$2 sm:$0xff] %v2891_v28  ;;  %v3062_v15 = vld [vmem:[%s5707_s5 + $0x528] sm:$0xff]  ;;  %v3041_v7 = vld [vmem:[%s5707_s5 + $0x480] sm:$0xff] }
 0xd87   : > { %3369 = vmatpush.msrb.mxu0 %v3039_v42  ;;  %3171 = vst [vmem:[#allocation1 + $0x30] ss:$2 sm:$0xff] %v2892_v21  ;;  %v3078_v11 = vld [vmem:[%s5707_s5 + $0x5a8] sm:$0xff]  ;;  %v3061_v42 = vld [vmem:[%s5707_s5 + $0x520] sm:$0xff]  ;;  %v3104_v21 = vld [vmem:[%s5707_s5 + $0x678] sm:$0xff] }
 0xd88   : > { %3389 = vmatpush.msrb.mxu1 %v3055_v52  ;;  %v3026_v23 = vld [vmem:[%s5707_s5 + $0x408] sm:$0xff]  ;;  %v3060_v52 = vld [vmem:[%s5707_s5 + $0x518] sm:$0xff] }
 0xd89   : > { %3370 = vmatpush.msrb.mxu0 %v3038_v34  ;;  %v3042_v25 = vld [vmem:[%s5707_s5 + $0x488] sm:$0xff]  ;;  %v3076_v34 = vld [vmem:[%s5707_s5 + $0x598] sm:$0xff] }
 0xd8a   : > { %3390 = vmatpush.msrb.mxu1 %v3054_v35  ;;  %v2896_v16 = vld [vmem:[#allocation6 + $0x38] sm:$0xff] }
 0xd8b   : > { %3371 = vmatpush.msrb.mxu0 %v3037_v27  ;;  %v3174_v29 = vld.sshfl [vmem:[#allocation1 + $0x10] sm:$0xff pattern:$0x75316420]  ;;  %v3175_v30 = vld.sshfl [vmem:[#allocation1 + $0x18] sm:$0xff pattern:$0x75316420] }
 0xd8c   : > { %3391 = vmatpush.msrb.mxu1 %v3053_v14  ;;  %3264 = vmatmul.f32.vlgmr.msrb.gmra.mxu2 %v3174_v29  ;;  %3181 = vst [vmem:[#allocation1 + $0x10] ss:$2 sm:$0xff] %v2894_v31  ;;  %v3184_v28 = vld.sshfl [vmem:[#allocation1] sm:$0xff pattern:$0x75316420]  ;;  %v3120_v27 = vld [vmem:[%s5707_s5 + $0x6f8] sm:$0xff] }
 0xd8d   : > { %3284 = vmatmul.f32.vlgmr.msrb.gmra.mxu3 %v3175_v30  ;;  %3408 = vmatpush.msrb.mxu2 %v3072_v33  ;;  %v3176_v36 = vld.sshfl [vmem:[#allocation1 + $0x20] sm:$0xff pattern:$0x75316420]  ;;  %v3177_v38 = vld.sshfl [vmem:[#allocation1 + $0x28] sm:$0xff pattern:$0x75316420] }
 0xd8e   : > { %3428 = vmatpush.msrb.mxu3 %v3088_v5  ;;  %3304 = vmatmul.f32.vlgmr.msra.gmra.mxu0 %v3176_v36  ;;  %v3178_v63 = vld.sshfl [vmem:[#allocation1 + $0x30] sm:$0xff pattern:$0x75316420]  ;;  %v3179_v4 = vld.sshfl [vmem:[#allocation1 + $0x38] sm:$0xff pattern:$0x75316420] }
 0xd8f   : > { %3324 = vmatmul.f32.vlgmr.msra.gmra.mxu1 %v3177_v38  ;;  %3372 = vmatpush.msrb.mxu0 %v3036_v13  ;;  %3183 = vst [vmem:[#allocation1 + $0x30] ss:$2 sm:$0xff] %v2896_v16  ;;  %v3185_v35 = vld.sshfl [vmem:[#allocation1 + $0x8] sm:$0xff pattern:$0x75316420]  ;;  %v3059_v14 = vld [vmem:[%s5707_s5 + $0x510] sm:$0xff] }
 0xd90   : > { %3392 = vmatpush.msrb.mxu1 %v3052_v24  ;;  %3409 = vmatpush.msrb.mxu2 %v3071_v43  ;;  %3182 = vst [vmem:[#allocation1 + $0x20] ss:$2 sm:$0xff] %v2895_v17  ;;  %v3075_v33 = vld [vmem:[%s5707_s5 + $0x590] sm:$0xff]  ;;  %v3058_v13 = vld [vmem:[%s5707_s5 + $0x508] sm:$0xff]  ;;  %v3057_v43 = vld [vmem:[%s5707_s5 + $0x500] sm:$0xff] }
 0xd91   : > { %3429 = vmatpush.msrb.mxu3 %v3087_v22  ;;  %3373 = vmatpush.msrb.mxu0 %v3035_v32  ;;  %v3103_v31 = vld [vmem:[%s5707_s5 + $0x670] sm:$0xff]  ;;  %v3074_v29 = vld [vmem:[%s5707_s5 + $0x588] sm:$0xff]  ;;  %v3073_v16 = vld [vmem:[%s5707_s5 + $0x580] sm:$0xff] }
 0xd92   : > { %3393 = vmatpush.msrb.mxu1 %v3051_v9  ;;  %3410 = vmatpush.msrb.mxu2 %v3070_v10  ;;  %v3119_v5 = vld [vmem:[%s5707_s5 + $0x6f0] sm:$0xff]  ;;  %v3102_v30 = vld [vmem:[%s5707_s5 + $0x668] sm:$0xff]  ;;  %v3101_v22 = vld [vmem:[%s5707_s5 + $0x660] sm:$0xff] }
 0xd93   : > { %3430 = vmatpush.msrb.mxu3 %v3086_v8  ;;  %3374 = vmatpush.msrb.mxu0 %v3034_v20  ;;  %v3118_v24 = vld [vmem:[%s5707_s5 + $0x6e8] sm:$0xff]  ;;  %v3117_v32 = vld [vmem:[%s5707_s5 + $0x6e0] sm:$0xff]  ;;  %v3136_v36 = vld [vmem:[%s5707_s5 + $0x778] sm:$0xff] }
 0xd94   : > { %3394 = vmatpush.msrb.mxu1 %v3050_v0  ;;  %3411 = vmatpush.msrb.mxu2 %v3069_v44  ;;  %v3186_v38 = vld.sshfl [vmem:[#allocation1 + $0x10] sm:$0xff pattern:$0x75316420]  ;;  %v3187_v9 = vld.sshfl [vmem:[#allocation1 + $0x18] sm:$0xff pattern:$0x75316420] }
 0xd95   : > { %3431 = vmatpush.msrb.mxu3 %v3085_v45  ;;  %3375 = vmatpush.msrb.mxu0 %v3033_v48  ;;  %v3116_v10 = vld [vmem:[%s5707_s5 + $0x6d8] sm:$0xff]  ;;  %v3135_v17 = vld [vmem:[%s5707_s5 + $0x770] sm:$0xff]  ;;  %v3134_v44 = vld [vmem:[%s5707_s5 + $0x768] sm:$0xff] }
 0xd96   : > { %3395 = vmatpush.msrb.mxu1 %v3049_v49  ;;  %3344 = vmatmul.f32.vlgmr.msra.gmra.mxu2 %v3178_v63  ;;  %v3152_v63 = vld [vmem:[%s5707_s5 + $0x7f8] sm:$0xff]  ;;  %v3151_v8 = vld [vmem:[%s5707_s5 + $0x7f0] sm:$0xff]  ;;  %v3150_v49 = vld [vmem:[%s5707_s5 + $0x7e8] sm:$0xff] }
 0xd97   : > { %3364 = vmatmul.f32.vlgmr.msra.gmra.mxu3 %v3179_v4  ;;  %3412 = vmatpush.msrb.mxu2 %v3068_v60  ;;  %v3100_v4 = vld [vmem:[%s5707_s5 + $0x658] sm:$0xff]  ;;  %v3099_v20 = vld [vmem:[%s5707_s5 + $0x650] sm:$0xff]  ;;  %v3098_v60 = vld [vmem:[%s5707_s5 + $0x648] sm:$0xff] }
 0xd98   : > { %3432 = vmatpush.msrb.mxu3 %v3084_v2  ;;  %3376 = vmatpush.msrb.mxu0 %v3032_v6  ;;  %v3115_v0 = vld [vmem:[%s5707_s5 + $0x6d0] sm:$0xff] }
 0xd99   : > { %3396 = vmatpush.msrb.mxu1 %v3048_v53  ;;  %3413 = vmatpush.msrb.mxu2 %v3067_v61  ;;  %v3114_v53 = vld [vmem:[%s5707_s5 + $0x6c8] sm:$0xff]  ;;  %v3133_v61 = vld [vmem:[%s5707_s5 + $0x760] sm:$0xff] }
 0xd9a   : > { %3433 = vmatpush.msrb.mxu3 %v3083_v18  ;;  %3377 = vmatpush.msrb.mxu0 %v3031_v54  ;;  %v3149_v18 = vld [vmem:[%s5707_s5 + $0x7e0] sm:$0xff] }
 0xd9b   : > { %3397 = vmatpush.msrb.mxu1 %v3047_v55  ;;  %3414 = vmatpush.msrb.mxu2 %v3066_v62  ;;  %v3097_v54 = vld [vmem:[%s5707_s5 + $0x640] sm:$0xff] }
 0xd9c   : > { %3434 = vmatpush.msrb.mxu3 %v3082_v37  ;;  %3378 = vmatpush.msrb.mxu0 %v3030_v19  ;;  %v3113_v37 = vld [vmem:[%s5707_s5 + $0x6c0] sm:$0xff]  ;;  %v3132_v19 = vld [vmem:[%s5707_s5 + $0x758] sm:$0xff] }
 0xd9d   : > { %3398 = vmatpush.msrb.mxu1 %v3046_v41  ;;  %3415 = vmatpush.msrb.mxu2 %v3065_v40  ;;  %v3148_v41 = vld [vmem:[%s5707_s5 + $0x7d8] sm:$0xff] }
 0xd9e   : > { %3435 = vmatpush.msrb.mxu3 %v3081_v3  ;;  %3379 = vmatpush.msrb.mxu0 %v3029_v57  ;;  %v3096_v40 = vld [vmem:[%s5707_s5 + $0x638] sm:$0xff] }
 0xd9f   : > { %3399 = vmatpush.msrb.mxu1 %v3045_v46  ;;  %3416 = vmatpush.msrb.mxu2 %v3064_v47  ;;  %v3112_v46 = vld [vmem:[%s5707_s5 + $0x6b8] sm:$0xff]  ;;  %v3131_v47 = vld [vmem:[%s5707_s5 + $0x750] sm:$0xff] }
 0xda0   : > { %3436 = vmatpush.msrb.mxu3 %v3080_v59  ;;  %3380 = vmatpush.msrb.mxu0 %v3028_v50  ;;  %v3147_v59 = vld [vmem:[%s5707_s5 + $0x7d0] sm:$0xff] }
 0xda1   : > { %3400 = vmatpush.msrb.mxu1 %v3044_v51  ;;  %3417 = vmatpush.msrb.mxu2 %v3063_v56  ;;  %v3095_v50 = vld [vmem:[%s5707_s5 + $0x630] sm:$0xff] }
 0xda2   : > { %3437 = vmatpush.msrb.mxu3 %v3079_v58  ;;  %3381 = vmatpush.msrb.mxu0 %v3027_v1  ;;  %v3111_v58 = vld [vmem:[%s5707_s5 + $0x6b0] sm:$0xff]  ;;  %v3130_v1 = vld [vmem:[%s5707_s5 + $0x748] sm:$0xff] }
 0xda3   : > { %3401 = vmatpush.msrb.mxu1 %v3043_v12  ;;  %3418 = vmatpush.msrb.mxu2 %v3062_v15  ;;  %v3146_v12 = vld [vmem:[%s5707_s5 + $0x7c8] sm:$0xff] }
 0xda4   : > { %3438 = vmatpush.msrb.mxu3 %v3078_v11  ;;  %3382 = vmatpush.msrb.mxu0 %v3026_v23  ;;  %v3094_v15 = vld [vmem:[%s5707_s5 + $0x628] sm:$0xff] }
 0xda5   : > { %3402 = vmatpush.msrb.mxu1 %v3042_v25  ;;  %3419 = vmatpush.msrb.mxu2 %v3061_v42  ;;  %v3110_v25 = vld [vmem:[%s5707_s5 + $0x6a8] sm:$0xff]  ;;  %v3129_v42 = vld [vmem:[%s5707_s5 + $0x740] sm:$0xff] }
 0xda6   : > { %3439 = vmatpush.msrb.mxu3 %v3077_v39  ;;  %3383 = vmatpush.msrb.mxu0 %v3025_v26  ;;  %v3145_v39 = vld [vmem:[%s5707_s5 + $0x7c0] sm:$0xff] }
 0xda7   : > { %3403 = vmatpush.msrb.mxu1 %v3041_v7  ;;  %3384 = vmatmul.f32.vlgmr.msrb.gmra.mxu0 %v3184_v28  ;;  %v3093_v26 = vld [vmem:[%s5707_s5 + $0x620] sm:$0xff] }
 0xda8   : > { %3404 = vmatmul.f32.vlgmr.msrb.gmra.mxu1 %v3185_v35  ;;  %3420 = vmatpush.msrb.mxu2 %v3060_v52  ;;  %v3109_v28 = vld [vmem:[%s5707_s5 + $0x6a0] sm:$0xff]  ;;  %v3092_v35 = vld [vmem:[%s5707_s5 + $0x618] sm:$0xff] }
 0xda9   : > { %3440 = vmatpush.msrb.mxu3 %v3076_v34  ;;  %3448 = vmatpush.msra.mxu0 %v3104_v21  ;;  %v3128_v34 = vld [vmem:[%s5707_s5 + $0x738] sm:$0xff] }
 0xdaa   : > { %3468 = vmatpush.msra.mxu1 %v3120_v27  ;;  %3421 = vmatpush.msrb.mxu2 %v3059_v14  ;;  %v3144_v21 = vld [vmem:[%s5707_s5 + $0x7b8] sm:$0xff]  ;;  %v3127_v14 = vld [vmem:[%s5707_s5 + $0x730] sm:$0xff] }
 0xdab   : > { %3441 = vmatpush.msrb.mxu3 %v3075_v33  ;;  %3449 = vmatpush.msra.mxu0 %v3103_v31  ;;  %v3108_v27 = vld [vmem:[%s5707_s5 + $0x698] sm:$0xff]  ;;  %v3143_v33 = vld [vmem:[%s5707_s5 + $0x7b0] sm:$0xff] }
 0xdac   : > { %3469 = vmatpush.msra.mxu1 %v3119_v5  ;;  %3422 = vmatpush.msrb.mxu2 %v3058_v13  ;;  %v3091_v31 = vld [vmem:[%s5707_s5 + $0x610] sm:$0xff]  ;;  %v3126_v13 = vld [vmem:[%s5707_s5 + $0x728] sm:$0xff] }
 0xdad   : > { %3442 = vmatpush.msrb.mxu3 %v3074_v29  ;;  %3450 = vmatpush.msra.mxu0 %v3102_v30  ;;  %v3107_v5 = vld [vmem:[%s5707_s5 + $0x690] sm:$0xff]  ;;  %v3142_v29 = vld [vmem:[%s5707_s5 + $0x7a8] sm:$0xff] }
 0xdae   : > { %3470 = vmatpush.msra.mxu1 %v3118_v24  ;;  %3423 = vmatpush.msrb.mxu2 %v3057_v43  ;;  %v3090_v30 = vld [vmem:[%s5707_s5 + $0x608] sm:$0xff]  ;;  %v3125_v43 = vld [vmem:[%s5707_s5 + $0x720] sm:$0xff] }
 0xdaf   : > { %3443 = vmatpush.msrb.mxu3 %v3073_v16  ;;  %3451 = vmatpush.msra.mxu0 %v3101_v22  ;;  %v3106_v24 = vld [vmem:[%s5707_s5 + $0x688] sm:$0xff]  ;;  %v3141_v16 = vld [vmem:[%s5707_s5 + $0x7a0] sm:$0xff] }
 0xdb0   : > { %3471 = vmatpush.msra.mxu1 %v3117_v32  ;;  %3424 = vmatmul.f32.vlgmr.msrb.gmra.mxu2 %v3186_v38  ;;  %v3089_v22 = vld [vmem:[%s5707_s5 + $0x600] sm:$0xff] }
 0xdb1   : > { %3444 = vmatmul.f32.vlgmr.msrb.gmra.mxu3 %v3187_v9  ;;  %3488 = vmatpush.msra.mxu2 %v3136_v36  ;;  %v3105_v32 = vld [vmem:[%s5707_s5 + $0x680] sm:$0xff]  ;;  %v3124_v36 = vld [vmem:[%s5707_s5 + $0x718] sm:$0xff]  ;;  %v3123_v9 = vld [vmem:[%s5707_s5 + $0x710] sm:$0xff] }
 0xdb2   : > { %3508 = vmatpush.msra.mxu3 %v3152_v63  ;;  %3452 = vmatpush.msra.mxu0 %v3100_v4  ;;  %v3188_v38 = vld.sshfl [vmem:[#allocation1 + $0x20] sm:$0xff pattern:$0x75316420]  ;;  %v3140_v63 = vld [vmem:[%s5707_s5 + $0x798] sm:$0xff] }
 0xdb3   : > { %3472 = vmatpush.msra.mxu1 %v3116_v10  ;;  %3489 = vmatpush.msra.mxu2 %v3135_v17  ;;  %v3189_v4 = vld.sshfl [vmem:[#allocation1 + $0x28] sm:$0xff pattern:$0x75316420]  ;;  %v3139_v10 = vld [vmem:[%s5707_s5 + $0x790] sm:$0xff] }
 0xdb4   : > { %v2819_v45 = vpop.xlane.xlu2 %2818  ;;  %v2808_v48 = vpop.xlane.xlu1 %2807  ;;  %3509 = vmatpush.msra.mxu3 %v3151_v8  ;;  %3453 = vmatpush.msra.mxu0 %v3099_v20  ;;  %v3122_v17 = vld [vmem:[%s5707_s5 + $0x708] sm:$0xff]  ;;  %v3121_v20 = vld [vmem:[%s5707_s5 + $0x700] sm:$0xff] }
 0xdb5   : > { %v2820_v2 = vrot.slane %v2819_v45, 4  ;;  %v2809_v6 = vrot.slane %v2808_v48, 4  ;;  %3473 = vmatpush.msra.mxu1 %v3115_v0  ;;  %3490 = vmatpush.msra.mxu2 %v3134_v44  ;;  %v3138_v8 = vld [vmem:[%s5707_s5 + $0x788] sm:$0xff]  ;;  %v3137_v0 = vld [vmem:[%s5707_s5 + $0x780] sm:$0xff] }
 0xdb6   : > { %3510 = vmatpush.msra.mxu3 %v3150_v49  ;;  %3454 = vmatpush.msra.mxu0 %v3098_v60  ;;  %v3190_v44 = vld.sshfl [vmem:[#allocation1 + $0x30] sm:$0xff pattern:$0x75316420]  ;;  %v1279_v49 = vstv %s3700_s23  ;;  %v1290_v60 = vstv %s3702_s26 }
 0xdb7   : > { %v2821_v55 = vmin.f32 %v2819_v45, %v2820_v2  ;;  %v2810_v62 = vmax.f32 %v2808_v48, %v2809_v6  ;;  %3474 = vmatpush.msra.mxu1 %v3114_v53  ;;  %3491 = vmatpush.msra.mxu2 %v3133_v61  ;;  %v3191_v45 = vld.sshfl [vmem:[#allocation1 + $0x38] sm:$0xff pattern:$0x75316420]  ;;  %v1926_v48 = vstv %s3710_s17  ;;  %v1544_v2 = vstv %s3704_s27 }
 0xdb8   : > { %3511 = vmatpush.msra.mxu3 %v3149_v18  ;;  %3455 = vmatpush.msra.mxu0 %v3097_v54  ;;  %v1915_v6 = vstv %s3708_s16  ;;  %v2180_v61 = vstv %s3712_s18  ;;  %v1614_v18 = vsel %vm975_vm7, %v1279_v49, %v1290_v60 }
 0xdb9   : > { %v2822_v3 = vrot.slane %v2821_v55, 2  ;;  %v2811_v57 = vrot.slane %v2810_v62, 2  ;;  %3475 = vmatpush.msra.mxu1 %v3113_v37  ;;  %3492 = vmatpush.msra.mxu2 %v3132_v19  ;;  %v2250_v53 = vsel %vm975_vm7, %v1915_v6, %v1926_v48  ;;  %v1615_v54 = vsel %vm977_vm4, %v1614_v18, %v1544_v2 }
 0xdba   : > { %3512 = vmatpush.msra.mxu3 %v3148_v41  ;;  %3456 = vmatpush.msra.mxu0 %v3096_v40  ;;  %v634_v37 = vstv %s5667_s15  ;;  %v2191_v41 = vstv %s3714_s29  ;;  %v645_v40 = vstv %s5669_s20  ;;  %s276_s20 = scalar_lea.vmem %s5709_s7, %s3612_s13 }
 0xdbb   : > { %v2823_v51 = vmin.f32 %v2821_v55, %v2822_v3  ;;  %v2812_v56 = vmax.f32 %v2810_v62, %v2811_v57  ;;  %3476 = vmatpush.msra.mxu1 %v3112_v46  ;;  %3493 = vmatpush.msra.mxu2 %v3131_v47  ;;  %v1555_v55 = vstv %s3706_s28  ;;  %v2251_v62 = vsel %vm977_vm4, %v2250_v53, %v2180_v61 }
 0xdbc   : > { %3513 = vmatpush.msra.mxu3 %v3147_v59  ;;  %3457 = vmatpush.msra.mxu0 %v3095_v50  ;;  %v1616_v19 = vsel %vm979_vm3, %v1615_v54, %v1555_v55  ;;  %v2252_v3 = vsel %vm979_vm3, %v2251_v62, %v2191_v41  ;;  %v2551_v57 = vstv %s3716_s19  ;;  %v2562_v46 = vstv %s3718_s30 }
 0xdbd   : > { %v2813_v11 = vrot.slane %v2812_v56, 1  ;;  %v2824_v23 = vrot.slane %v2823_v51, 1  ;;  %3477 = vmatpush.msra.mxu1 %v3111_v58  ;;  %3494 = vmatpush.msra.mxu2 %v3130_v1  ;;  %v901_v47 = vstv %s5671_s21  ;;  %v912_v59 = vstv %s5673_s22 }
 0xdbe   : > { %3514 = vmatpush.msra.mxu3 %v3146_v12  ;;  %3458 = vmatpush.msra.mxu0 %v3094_v15  ;;  %v3529_v50 = vrot.slane %v1616_v19, 7  ;;  %v2886_v58 = vsel %vm975_vm7, %v2551_v57, %v2562_v46 }
 0xdbf   : > { %v2814_v7 = vmax.f32 %v2812_v56, %v2813_v11  ;;  %v2825_v52 = vmin.f32 %v2823_v51, %v2824_v23  ;;  %3478 = vmatpush.msra.mxu1 %v3110_v25  ;;  %3495 = vmatpush.msra.mxu2 %v3129_v42  ;;  %v976_v51 = vsel %vm975_vm7, %v634_v37, %v645_v40  ;;  %v3532_v56 = vrot.slane %v2252_v3, 6 }
 0xdc0   : > { %3515 = vmatpush.msra.mxu3 %v3145_v39  ;;  %3459 = vmatpush.msra.mxu0 %v3093_v26  ;;  %v978_v12 = vsel %vm977_vm4, %v976_v51, %v901_v47 }
 0xdc1   : > { %3719 = vpush %v2814_v7  ;;  %3479 = vmatpush.msra.mxu1 %v3109_v28  ;;  %3496 = vmatpush.msra.mxu2 %v3128_v34  ;;  %v980_v23 = vsel %vm979_vm3, %v978_v12, %v912_v59 }
 0xdc2   : > { %3721 = vpush %v2825_v52  ;;  %3516 = vmatpush.msra.mxu3 %v3144_v21  ;;  %3460 = vmatpush.msra.mxu0 %v3092_v35  ;;  %v3537_v42 = vsel %vm5798_vm2, %v980_v23, %v3529_v50  ;;  %v3806_v52 = vld [vmem:[%s5708_s6] ss:$0 sm:$0xff] }
 0xdc3   : > { %3480 = vmatpush.msra.mxu1 %v3108_v27  ;;  %3497 = vmatpush.msra.mxu2 %v3127_v14  ;;  %v3539_v26 = vsel %vm3538_vm5, %v3537_v42, %v3532_v56 }
 0xdc4   : > { %3517 = vmatpush.msra.mxu3 %v3143_v33  ;;  %3461 = vmatpush.msra.mxu0 %v3091_v31 }
 0xdc5   : > { %3481 = vmatpush.msra.mxu1 %v3107_v5  ;;  %3498 = vmatpush.msra.mxu2 %v3126_v13 }
 0xdc6   : > { %3518 = vmatpush.msra.mxu3 %v3142_v29  ;;  %3462 = vmatpush.msra.mxu0 %v3090_v30 }
 0xdc7   : > { %3482 = vmatpush.msra.mxu1 %v3106_v24  ;;  %3499 = vmatpush.msra.mxu2 %v3125_v43 }
 0xdc8   : > { %3519 = vmatpush.msra.mxu3 %v3141_v16  ;;  %3463 = vmatpush.msra.mxu0 %v3089_v22 }
 0xdc9   : > { %3483 = vmatpush.msra.mxu1 %v3105_v32  ;;  %3464 = vmatmul.f32.vlgmr.msra.gmra.mxu0 %v3188_v38 }
 0xdca   : > { %3484 = vmatmul.f32.vlgmr.msra.gmra.mxu1 %v3189_v4  ;;  %3500 = vmatpush.msra.mxu2 %v3124_v36 }
 0xdcb   : > { %3520 = vmatpush.msra.mxu3 %v3140_v63 }
 0xdcc   : > { %3501 = vmatpush.msra.mxu2 %v3123_v9 }
 0xdcd   : > { %3521 = vmatpush.msra.mxu3 %v3139_v10 }
 0xdce   : > { %3502 = vmatpush.msra.mxu2 %v3122_v17 }
 0xdcf   : > { %3522 = vmatpush.msra.mxu3 %v3138_v8 }
 0xdd0   : > { %3503 = vmatpush.msra.mxu2 %v3121_v20 }
 0xdd1   : > { %3523 = vmatpush.msra.mxu3 %v3137_v0  ;;  %3504 = vmatmul.f32.vlgmr.msra.gmra.mxu2 %v3190_v44 }
 0xdd2   : > { %3524 = vmatmul.f32.vlgmr.msra.gmra.mxu3 %v3191_v45 }
 0xdf2   : > { %s3720_s8 = spop %3719 }
 0xdf3   : > { %v2816_v1 = vstv %s3720_s8  ;;  %s3722_s9 = spop %3721 }
 0xdf4   : > { %v2887_v15 = vsel %vm977_vm4, %v2886_v58, %v2816_v1  ;;  %v2827_v11 = vstv %s3722_s9 }
 0xdf5   : > { %v2888_v25 = vsel %vm979_vm3, %v2887_v15, %v2827_v11 }
 0xdf6   : > { %v3535_v39 = vrot.slane %v2888_v25, 5 }
 0xdf8   : > { %v3541_v7 = vsel %vm3540_vm8, %v3539_v26, %v3535_v39 }
 0xdf9   : > { %3543 = vrot.lane.b32.xlu0 %v3541_v7, %s3826_s10 }
 0xe01   : > { %v3225_v28 = vpop.f32.mrf.mxu0 }
 0xe02   : > { %v3226_v34 = vadd.f32 %v3806_v52, %v3225_v28  ;;  %v3245_v21 = vpop.f32.mrf.mxu1 }
 0xe04   : > { %v3246_v27 = vadd.f32 %v3245_v21, %v3226_v34 }
 0xe0b   : > { %v3305_v5 = vpop.f32.mrf.mxu0 }
 0xe0c   : > { %v3325_v29 = vpop.f32.mrf.mxu1 }
 0xe0f   : > { %v3265_v35 = vpop.f32.mrf.mxu2 }
 0xe10   : > { %v3266_v14 = vadd.f32 %v3265_v35, %v3246_v27  ;;  %v3285_v33 = vpop.f32.mrf.mxu3 }
 0xe12   : > { %v3286_v31 = vadd.f32 %v3285_v33, %v3266_v14 }
 0xe14   : > { %v3306_v13 = vadd.f32 %v3305_v5, %v3286_v31 }
 0xe16   : > { %v3326_v30 = vadd.f32 %v3325_v29, %v3306_v13 }
 0xe19   : > { %v3345_v24 = vpop.f32.mrf.mxu2 }
 0xe1a   : > { %v3346_v43 = vadd.f32 %v3345_v24, %v3326_v30  ;;  %v3365_v16 = vpop.f32.mrf.mxu3 }
 0xe1c   : > { %v3366_v32 = vadd.f32 %v3365_v16, %v3346_v43 }
 0xe24   : > { %v3385_v22 = vpop.f32.mrf.mxu0 }
 0xe25   : > { %v3386_v36 = vadd.f32 %v3385_v22, %v3366_v32  ;;  %v3405_v38 = vpop.f32.mrf.mxu1 }
 0xe27   : > { %v3406_v4 = vadd.f32 %v3405_v38, %v3386_v36 }
 0xe33   : > { %v3425_v63 = vpop.f32.mrf.mxu2 }
 0xe34   : > { %v3426_v9 = vadd.f32 %v3425_v63, %v3406_v4  ;;  %v3445_v10 = vpop.f32.mrf.mxu3 }
 0xe36   : > { %v3446_v8 = vadd.f32 %v3445_v10, %v3426_v9 }
 0xe46   : > { %v3465_v17 = vpop.f32.mrf.mxu0 }
 0xe47   : > { %v3466_v20 = vadd.f32 %v3465_v17, %v3446_v8  ;;  %v3485_v0 = vpop.f32.mrf.mxu1 }
 0xe49   : > { %v3486_v45 = vadd.f32 %v3485_v0, %v3466_v20 }
 0xe54   : > { %v3505_v44 = vpop.f32.mrf.mxu2 }
 0xe55   : > { %v3506_v48 = vadd.f32 %v3505_v44, %v3486_v45  ;;  %v3525_v49 = vpop.f32.mrf.mxu3 }
 0xe57   : > { %v3526_v2 = vadd.f32 %v3525_v49, %v3506_v48 }
 0xe6b   : > { %v3544_v60 = vpop.permute.xlu0 %3543 }
 0xe6c   : > { %v3547_v6 = vsel %vm3546_vm15, 0.0, %v3544_v60 }
 0xe6d   : > { %v3549_v53 = vsel %vm3548_vm13, %v3547_v6, 0.0 }
 0xe6e   : > { %v3550_v61 = vadd.f32 %v3549_v53, %v3526_v2 }
 0xe70   : > { %3551 = vst [vmem:[%s276_s20] sm:$0xf] %v3550_v61 }
 0xe71 PF: > { %s17_s24 = sadd.s32 1, %s3813_s24  }
 0xe72   : > { %p14_p4 = scmp.ge.s32.totalorder %s17_s24, 4  }
 0xe74   :  { %16 = sbr.rel (!%p14_p4) target bundleno = 1 (0x1), region = 183 }

</bundles_post_ra>
